<compile_context>
chip_gen: v6e
topology: v6e:2x2x1
jax: 0.10.0
libtpu: 0.0.40
codegen_flags: <defaults>
</compile_context>

<pallas_src>
import functools
import math

import jax
import jax.numpy as jnp
from jax.experimental import pallas as pl
from jax.experimental.pallas import tpu as pltpu


def _pick_tq(S):
    # Chunk of query columns (lane dimension of the transposed energy tile).
    for t in (128, 64, 32, 16, 8):
        if S % t == 0:
            return t
    return S


def _pick_batch_block(N):
    # Amortize per-grid-step overhead for large N, but keep >= 2 grid points so
    # both v7x TensorCores get work from the "parallel" batch axis.
    for nb in (8, 4, 2):
        if N % nb == 0 and N // nb >= 2:
            return nb
    return 1


# ---------------------------------------------------------------------------
# Fused CMHSA kernel: one grid point = one block of `nb` batch elements.
# ---------------------------------------------------------------------------
def cmhsa_kernel(x_ref, wsc_ref, bsc_ref, wlin_ref, blin_ref, o_ref, acc_ref,
                 *, nb, heads, dh, S, scale, tq):
    n_chunks = S // tq
    inv_n = 1.0 / float(S * S)
    mu = 1.0 / float(S)          # softmax rows sum to exactly 1 -> mean is 1/S

    wsc = wsc_ref[...]
    bsc = bsc_ref[...]
    wlin = wlin_ref[...]
    blin = blin_ref[...]

    for n in range(nb):                                            # static unroll
        x = x_ref[n]                                               # (C, S)

        # startconv (1x1 conv + bias); q = k = v = z.
        z = jnp.dot(wsc, x, preferred_element_type=jnp.float32) + bsc   # (C, S)
        # per-channel mean over positions (= mu * sum_t v[d, t])
        zmean = jnp.sum(z, axis=1, keepdims=True) * mu             # (C, 1)

        inv_stds = []
        for h in range(heads):                                     # static unroll
            v = z[h * dh:(h + 1) * dh, :]                          # (dh, S)
            vmean = zmean[h * dh:(h + 1) * dh, :]                  # (dh, 1)

            att_sq = jnp.zeros((1, 1), jnp.float32)
            for c in range(n_chunks):                              # static unroll
                qc = v[:, c * tq:(c + 1) * tq] * scale             # (dh, tq)
                # transposed energy: e[t, s] = scale * sum_d v[d, t] * v[d, c*tq+s]
                e = jax.lax.dot_general(
                    v, qc, (((0,), (0,)), ((), ())),
                    preferred_element_type=jnp.float32)            # (S, tq)

                # softmax over t = axis 0 -> sublane reductions (cheap VPU adds)
                m = jnp.max(e, axis=0, keepdims=True)              # (1, tq)
                e = jnp.exp(e - m)
                r = jnp.sum(e, axis=0, keepdims=True)              # (1, tq)
                # exact reciprocal: only touches (1,tq) and InstanceNorm's
                # inv_std amplifies softmax error -> keep the 2e-3 budget safe.
                rinv = pl.reciprocal(r, approx=False)

                # InstanceNorm stats: sum att^2 = sum_s (sum_t e^2) * rinv^2
                esq = jnp.sum(e * e, axis=0, keepdims=True)        # (1, tq)
                att_sq = att_sq + jnp.sum(esq * rinv * rinv, keepdims=True)

                # out_u[d, s] = (sum_t v[d, t] e[t, s]) * rinv[s]  (MXU-natural,
                # no transpose); subtract mu*vsum = vmean here, scale by inv_std
                # later (after the Linear, since the Linear is linear).
                ou = jnp.dot(v, e, preferred_element_type=jnp.float32)   # (dh, tq)
                off = h * S + c * tq
                acc_ref[:, off:off + tq] = ou * rinv - vmean

            var = att_sq * inv_n - mu * mu                         # biased var
            inv_stds.append(jax.lax.rsqrt(var + 1e-5))             # (1, 1)

        # One Linear for all heads: (dh, dh) @ (dh, heads*S).  Bias and the
        # per-head inv_std scale are applied in the store epilogue.
        y0 = jnp.dot(wlin, acc_ref[...], preferred_element_type=jnp.float32)
        for h in range(heads):
            y = inv_stds[h] * y0[:, h * S:(h + 1) * S] + blin      # (dh, S)
            o_ref[n, h * dh:(h + 1) * dh, :] = (
                y + x[h * dh:(h + 1) * dh, :]).astype(o_ref.dtype)


@functools.partial(jax.jit, static_argnums=(2,))
def cmhsa_forward(x_nchw, params, heads):
    N, C, H, W = x_nchw.shape
    S = H * W
    dh = C // heads
    scale = 1.0 / math.sqrt(C / 4.0)
    tq = _pick_tq(S)
    nb = _pick_batch_block(N)

    x_ncs = x_nchw.reshape(N, C, S)
    kernel = functools.partial(cmhsa_kernel, nb=nb, heads=heads, dh=dh, S=S,
                               scale=scale, tq=tq)

    out = pl.pallas_call(
        kernel,
        out_shape=jax.ShapeDtypeStruct((N, C, S), jnp.float32),
        grid=(N // nb,),
        in_specs=[
            pl.BlockSpec((nb, C, S), lambda b: (b, 0, 0)),
            pl.BlockSpec((C, C), lambda b: (0, 0)),
            pl.BlockSpec((C, 1), lambda b: (0, 0)),
            pl.BlockSpec((dh, dh), lambda b: (0, 0)),
            pl.BlockSpec((dh, 1), lambda b: (0, 0)),
        ],
        out_specs=pl.BlockSpec((nb, C, S), lambda b: (b, 0, 0)),
        scratch_shapes=[pltpu.VMEM((dh, heads * S), jnp.float32)],
        compiler_params=pltpu.CompilerParams(
            dimension_semantics=("parallel",)),
    )(x_ncs,
      params["w_start"],
      params["b_start"].reshape(C, 1),
      params["w_lin"],
      params["b_lin"].reshape(dh, 1))

    return out.reshape(N, C, H, W)


# ---------------------------------------------------------------------------
# Pure-JAX reference (mirrors the PyTorch forward) for the correctness check.
# ---------------------------------------------------------------------------
def reference_forward(x, params, heads):
    N, C, H, W = x.shape
    S = H * W
    dh = C // heads
    hp = jax.lax.Precision.HIGHEST

    xf = x.reshape(N, C, S)
    z = jnp.einsum("oc,ncs->nos", params["w_start"], xf, precision=hp) \
        + params["b_start"][None, :, None]
    zh = z.reshape(N, heads, dh, S)                                  # q = k = v

    energy = jnp.einsum("nhds,nhdt->nhst", zh, zh, precision=hp) / math.sqrt(C / 4.0)
    att = jax.nn.softmax(energy, axis=-1)
    mu = jnp.mean(att, axis=(-2, -1), keepdims=True)
    var = jnp.var(att, axis=(-2, -1), keepdims=True)                 # biased, as PyTorch
    att_n = (att - mu) / jnp.sqrt(var + 1e-5)

    out = jnp.einsum("nhdt,nhst->nhds", zh, att_n, precision=hp)
    out = jnp.einsum("ji,nhis->nhjs", params["w_lin"], out, precision=hp) \
        + params["b_lin"][None, None, :, None]
    return out.reshape(N, C, H, W) + x


# ---------------------------------------------------------------------------
if __name__ == "__main__":
    # Small shapes consistent with CMHSA(n_dims=32, heads=4) on a 16x16 map.
    N, C, H, W, heads = 2, 32, 16, 16, 4
    dh = C // heads

    key = jax.random.PRNGKey(0)
    ks = jax.random.split(key, 5)
    f32 = jnp.float32

    x = jax.random.normal(ks[0], (N, C, H, W), dtype=f32)
    params = {
        # startconv: Conv2d(C, C, 1) with bias
        "w_start": 0.1 * jax.random.normal(ks[1], (C, C), dtype=f32),
        "b_start": 0.05 * jax.random.normal(ks[2], (C,), dtype=f32),
        # linear: Linear(dh, dh)
        "w_lin": 0.1 * jax.random.normal(ks[3], (dh, dh), dtype=f32),
        "b_lin": 0.05 * jax.random.normal(ks[4], (dh,), dtype=f32),
    }

    out = cmhsa_forward(x, params, heads)
    out = jax.block_until_ready(out)

    ref = reference_forward(x, params, heads)
    assert out.shape == (N, C, H, W), out.shape
    max_err = float(jnp.max(jnp.abs(out - ref)))
    assert jnp.allclose(out, ref, atol=2e-3, rtol=2e-3), max_err

    print("KERNEL_OK")
</pallas_src>

<mosaic_0001>
module attributes {stable_mosaic.version = 11 : i64} {
  func.func @cmhsa_kernel(%arg0: i32, %arg1: memref<1x32x256xf32, #tpu.memory_space<vmem>>, %arg2: memref<32x32xf32, #tpu.memory_space<vmem>>, %arg3: memref<32x1xf32, #tpu.memory_space<vmem>>, %arg4: memref<8x8xf32, #tpu.memory_space<vmem>>, %arg5: memref<8x1xf32, #tpu.memory_space<vmem>>, %arg6: memref<1x32x256xf32, #tpu.memory_space<vmem>>, %arg7: memref<8x1024xf32, #tpu.memory_space<vmem>>) attributes {dimension_semantics = [#tpu.dimension_semantics<parallel>], iteration_bounds = array<i64: 2>, scalar_prefetch = 0 : i64, scratch_operands = 1 : i64, tpu.core_type = #tpu.core_type<tc>, window_params = [{transform_indices = @transform_0, window_bounds = array<i64: 1, 32, 256>}, {pipeline_mode = #tpu.pipeline_mode<synchronous>, transform_indices = @transform_1, window_bounds = array<i64: 32, 32>}, {pipeline_mode = #tpu.pipeline_mode<synchronous>, transform_indices = @transform_2, window_bounds = array<i64: 32, 1>}, {pipeline_mode = #tpu.pipeline_mode<synchronous>, transform_indices = @transform_3, window_bounds = array<i64: 8, 8>}, {pipeline_mode = #tpu.pipeline_mode<synchronous>, transform_indices = @transform_4, window_bounds = array<i64: 8, 1>}, {transform_indices = @transform_5, window_bounds = array<i64: 1, 32, 256>}]} {
    %c0 = arith.constant 0 : index
    %c0_0 = arith.constant 0 : index
    %0 = vector.load %arg2[%c0, %c0_0] : memref<32x32xf32, #tpu.memory_space<vmem>>, vector<32x32xf32>
    %c0_1 = arith.constant 0 : index
    %c0_2 = arith.constant 0 : index
    %1 = vector.load %arg3[%c0_1, %c0_2] : memref<32x1xf32, #tpu.memory_space<vmem>>, vector<32x1xf32>
    %c0_3 = arith.constant 0 : index
    %c0_4 = arith.constant 0 : index
    %2 = vector.load %arg4[%c0_3, %c0_4] : memref<8x8xf32, #tpu.memory_space<vmem>>, vector<8x8xf32>
    %c0_5 = arith.constant 0 : index
    %c0_6 = arith.constant 0 : index
    %3 = vector.load %arg5[%c0_5, %c0_6] : memref<8x1xf32, #tpu.memory_space<vmem>>, vector<8x1xf32>
    %c0_7 = arith.constant 0 : index
    %c0_8 = arith.constant 0 : index
    %c0_9 = arith.constant 0 : index
    %4 = vector.load %arg1[%c0_7, %c0_8, %c0_9] : memref<1x32x256xf32, #tpu.memory_space<vmem>>, vector<1x32x256xf32>
    %5 = vector.shape_cast %4 : vector<1x32x256xf32> to vector<32x256xf32>
    %cst = arith.constant dense<0.000000e+00> : vector<32x256xf32>
    %6 = tpu.matmul %0, %5, %cst {dimension_numbers = #tpu.dot_dimension_numbers<[1], [0], [0], [1], [0, 0, 1, 1], [], []>} : vector<32x32xf32>, vector<32x256xf32>, vector<32x256xf32> -> vector<32x256xf32>
    %7 = vector.broadcast %1 : vector<32x1xf32> to vector<32x256xf32>
    %8 = arith.addf %6, %7 : vector<32x256xf32>
    %cst_10 = arith.constant dense<0.000000e+00> : vector<32xf32>
    %9 = vector.multi_reduction <add>, %8, %cst_10 [1] : vector<32x256xf32> to vector<32xf32>
    %10 = vector.shape_cast %9 : vector<32xf32> to vector<32x1xf32>
    %cst_11 = arith.constant 3.906250e-03 : f32
    %11 = vector.broadcast %cst_11 : f32 to vector<32x1xf32>
    %12 = arith.mulf %10, %11 : vector<32x1xf32>
    %13 = vector.extract_strided_slice %8 {offsets = [0, 0], sizes = [8, 256], strides = [1, 1]} : vector<32x256xf32> to vector<8x256xf32>
    %14 = vector.extract_strided_slice %12 {offsets = [0, 0], sizes = [8, 1], strides = [1, 1]} : vector<32x1xf32> to vector<8x1xf32>
    %cst_12 = arith.constant 0.000000e+00 : f32
    %15 = vector.broadcast %cst_12 : f32 to vector<1x1xf32>
    %16 = vector.extract_strided_slice %13 {offsets = [0, 0], sizes = [8, 128], strides = [1, 1]} : vector<8x256xf32> to vector<8x128xf32>
    %cst_13 = arith.constant 0.353553385 : f32
    %17 = vector.broadcast %cst_13 : f32 to vector<8x128xf32>
    %18 = arith.mulf %16, %17 : vector<8x128xf32>
    %cst_14 = arith.constant dense<0.000000e+00> : vector<256x128xf32>
    %19 = tpu.matmul %13, %18, %cst_14 {dimension_numbers = #tpu.dot_dimension_numbers<[0], [0], [1], [1], [0, 1, 1, 1], [], []>} : vector<8x256xf32>, vector<8x128xf32>, vector<256x128xf32> -> vector<256x128xf32>
    %cst_15 = arith.constant dense<0xFF800000> : vector<128xf32>
    %20 = vector.multi_reduction <maximumf>, %19, %cst_15 [0] : vector<256x128xf32> to vector<128xf32>
    %21 = vector.shape_cast %20 : vector<128xf32> to vector<1x128xf32>
    %22 = vector.broadcast %21 : vector<1x128xf32> to vector<256x128xf32>
    %23 = arith.subf %19, %22 : vector<256x128xf32>
    %24 = math.exp %23 : vector<256x128xf32>
    %cst_16 = arith.constant dense<0.000000e+00> : vector<128xf32>
    %25 = vector.multi_reduction <add>, %24, %cst_16 [0] : vector<256x128xf32> to vector<128xf32>
    %26 = vector.shape_cast %25 : vector<128xf32> to vector<1x128xf32>
    %27 = tpu.reciprocal %26 : vector<1x128xf32> -> vector<1x128xf32>
    %28 = arith.mulf %24, %24 : vector<256x128xf32>
    %cst_17 = arith.constant dense<0.000000e+00> : vector<128xf32>
    %29 = vector.multi_reduction <add>, %28, %cst_17 [0] : vector<256x128xf32> to vector<128xf32>
    %30 = vector.shape_cast %29 : vector<128xf32> to vector<1x128xf32>
    %31 = arith.mulf %30, %27 : vector<1x128xf32>
    %32 = arith.mulf %31, %27 : vector<1x128xf32>
    %33 = vector.shape_cast %32 : vector<1x128xf32> to vector<1x1x128xf32>
    %cst_18 = arith.constant dense<0.000000e+00> : vector<1xf32>
    %34 = vector.multi_reduction <add>, %33, %cst_18 [1, 2] : vector<1x1x128xf32> to vector<1xf32>
    %35 = vector.shape_cast %34 : vector<1xf32> to vector<1x1x1xf32>
    %36 = vector.extract %35[0, 0, 0] : f32 from vector<1x1x1xf32>
    %37 = vector.broadcast %36 : f32 to vector<1x1xf32>
    %38 = arith.addf %15, %37 : vector<1x1xf32>
    %cst_19 = arith.constant dense<0.000000e+00> : vector<8x128xf32>
    %39 = tpu.matmul %13, %24, %cst_19 {dimension_numbers = #tpu.dot_dimension_numbers<[1], [0], [0], [1], [0, 0, 1, 1], [], []>} : vector<8x256xf32>, vector<256x128xf32>, vector<8x128xf32> -> vector<8x128xf32>
    %40 = vector.broadcast %27 : vector<1x128xf32> to vector<8x128xf32>
    %41 = arith.mulf %39, %40 : vector<8x128xf32>
    %42 = vector.broadcast %14 : vector<8x1xf32> to vector<8x128xf32>
    %43 = arith.subf %41, %42 : vector<8x128xf32>
    %c0_20 = arith.constant 0 : index
    %c0_21 = arith.constant 0 : index
    %44 = vector.load %arg7[%c0_20, %c0_21] : memref<8x1024xf32, #tpu.memory_space<vmem>>, vector<8x128xf32>
    tpu.vector_store %arg7[%c0_20, %c0_21], %43 {strides = array<i32>} : memref<8x1024xf32, #tpu.memory_space<vmem>>, vector<8x128xf32>,
    %45 = vector.extract_strided_slice %13 {offsets = [0, 128], sizes = [8, 128], strides = [1, 1]} : vector<8x256xf32> to vector<8x128xf32>
    %cst_22 = arith.constant 0.353553385 : f32
    %46 = vector.broadcast %cst_22 : f32 to vector<8x128xf32>
    %47 = arith.mulf %45, %46 : vector<8x128xf32>
    %cst_23 = arith.constant dense<0.000000e+00> : vector<256x128xf32>
    %48 = tpu.matmul %13, %47, %cst_23 {dimension_numbers = #tpu.dot_dimension_numbers<[0], [0], [1], [1], [0, 1, 1, 1], [], []>} : vector<8x256xf32>, vector<8x128xf32>, vector<256x128xf32> -> vector<256x128xf32>
    %cst_24 = arith.constant dense<0xFF800000> : vector<128xf32>
    %49 = vector.multi_reduction <maximumf>, %48, %cst_24 [0] : vector<256x128xf32> to vector<128xf32>
    %50 = vector.shape_cast %49 : vector<128xf32> to vector<1x128xf32>
    %51 = vector.broadcast %50 : vector<1x128xf32> to vector<256x128xf32>
    %52 = arith.subf %48, %51 : vector<256x128xf32>
    %53 = math.exp %52 : vector<256x128xf32>
    %cst_25 = arith.constant dense<0.000000e+00> : vector<128xf32>
    %54 = vector.multi_reduction <add>, %53, %cst_25 [0] : vector<256x128xf32> to vector<128xf32>
    %55 = vector.shape_cast %54 : vector<128xf32> to vector<1x128xf32>
    %56 = tpu.reciprocal %55 : vector<1x128xf32> -> vector<1x128xf32>
    %57 = arith.mulf %53, %53 : vector<256x128xf32>
    %cst_26 = arith.constant dense<0.000000e+00> : vector<128xf32>
    %58 = vector.multi_reduction <add>, %57, %cst_26 [0] : vector<256x128xf32> to vector<128xf32>
    %59 = vector.shape_cast %58 : vector<128xf32> to vector<1x128xf32>
    %60 = arith.mulf %59, %56 : vector<1x128xf32>
    %61 = arith.mulf %60, %56 : vector<1x128xf32>
    %62 = vector.shape_cast %61 : vector<1x128xf32> to vector<1x1x128xf32>
    %cst_27 = arith.constant dense<0.000000e+00> : vector<1xf32>
    %63 = vector.multi_reduction <add>, %62, %cst_27 [1, 2] : vector<1x1x128xf32> to vector<1xf32>
    %64 = vector.shape_cast %63 : vector<1xf32> to vector<1x1x1xf32>
    %65 = vector.extract %64[0, 0, 0] : f32 from vector<1x1x1xf32>
    %66 = vector.broadcast %65 : f32 to vector<1x1xf32>
    %67 = arith.addf %38, %66 : vector<1x1xf32>
    %cst_28 = arith.constant dense<0.000000e+00> : vector<8x128xf32>
    %68 = tpu.matmul %13, %53, %cst_28 {dimension_numbers = #tpu.dot_dimension_numbers<[1], [0], [0], [1], [0, 0, 1, 1], [], []>} : vector<8x256xf32>, vector<256x128xf32>, vector<8x128xf32> -> vector<8x128xf32>
    %69 = vector.broadcast %56 : vector<1x128xf32> to vector<8x128xf32>
    %70 = arith.mulf %68, %69 : vector<8x128xf32>
    %71 = vector.broadcast %14 : vector<8x1xf32> to vector<8x128xf32>
    %72 = arith.subf %70, %71 : vector<8x128xf32>
    %c0_29 = arith.constant 0 : index
    %c128 = arith.constant 128 : index
    %73 = vector.load %arg7[%c0_29, %c128] : memref<8x1024xf32, #tpu.memory_space<vmem>>, vector<8x128xf32>
    tpu.vector_store %arg7[%c0_29, %c128], %72 {strides = array<i32>} : memref<8x1024xf32, #tpu.memory_space<vmem>>, vector<8x128xf32>,
    %cst_30 = arith.constant 1.52587891E-5 : f32
    %74 = vector.broadcast %cst_30 : f32 to vector<1x1xf32>
    %75 = arith.mulf %67, %74 : vector<1x1xf32>
    %cst_31 = arith.constant 1.52587891E-5 : f32
    %76 = vector.broadcast %cst_31 : f32 to vector<1x1xf32>
    %77 = arith.subf %75, %76 : vector<1x1xf32>
    %cst_32 = arith.constant 9.99999974E-6 : f32
    %78 = vector.broadcast %cst_32 : f32 to vector<1x1xf32>
    %79 = arith.addf %77, %78 : vector<1x1xf32>
    %80 = math.rsqrt %79 : vector<1x1xf32>
    %81 = vector.extract_strided_slice %8 {offsets = [8, 0], sizes = [8, 256], strides = [1, 1]} : vector<32x256xf32> to vector<8x256xf32>
    %82 = vector.extract_strided_slice %12 {offsets = [8, 0], sizes = [8, 1], strides = [1, 1]} : vector<32x1xf32> to vector<8x1xf32>
    %cst_33 = arith.constant 0.000000e+00 : f32
    %83 = vector.broadcast %cst_33 : f32 to vector<1x1xf32>
    %84 = vector.extract_strided_slice %81 {offsets = [0, 0], sizes = [8, 128], strides = [1, 1]} : vector<8x256xf32> to vector<8x128xf32>
    %cst_34 = arith.constant 0.353553385 : f32
    %85 = vector.broadcast %cst_34 : f32 to vector<8x128xf32>
    %86 = arith.mulf %84, %85 : vector<8x128xf32>
    %cst_35 = arith.constant dense<0.000000e+00> : vector<256x128xf32>
    %87 = tpu.matmul %81, %86, %cst_35 {dimension_numbers = #tpu.dot_dimension_numbers<[0], [0], [1], [1], [0, 1, 1, 1], [], []>} : vector<8x256xf32>, vector<8x128xf32>, vector<256x128xf32> -> vector<256x128xf32>
    %cst_36 = arith.constant dense<0xFF800000> : vector<128xf32>
    %88 = vector.multi_reduction <maximumf>, %87, %cst_36 [0] : vector<256x128xf32> to vector<128xf32>
    %89 = vector.shape_cast %88 : vector<128xf32> to vector<1x128xf32>
    %90 = vector.broadcast %89 : vector<1x128xf32> to vector<256x128xf32>
    %91 = arith.subf %87, %90 : vector<256x128xf32>
    %92 = math.exp %91 : vector<256x128xf32>
    %cst_37 = arith.constant dense<0.000000e+00> : vector<128xf32>
    %93 = vector.multi_reduction <add>, %92, %cst_37 [0] : vector<256x128xf32> to vector<128xf32>
    %94 = vector.shape_cast %93 : vector<128xf32> to vector<1x128xf32>
    %95 = tpu.reciprocal %94 : vector<1x128xf32> -> vector<1x128xf32>
    %96 = arith.mulf %92, %92 : vector<256x128xf32>
    %cst_38 = arith.constant dense<0.000000e+00> : vector<128xf32>
    %97 = vector.multi_reduction <add>, %96, %cst_38 [0] : vector<256x128xf32> to vector<128xf32>
    %98 = vector.shape_cast %97 : vector<128xf32> to vector<1x128xf32>
    %99 = arith.mulf %98, %95 : vector<1x128xf32>
    %100 = arith.mulf %99, %95 : vector<1x128xf32>
    %101 = vector.shape_cast %100 : vector<1x128xf32> to vector<1x1x128xf32>
    %cst_39 = arith.constant dense<0.000000e+00> : vector<1xf32>
    %102 = vector.multi_reduction <add>, %101, %cst_39 [1, 2] : vector<1x1x128xf32> to vector<1xf32>
    %103 = vector.shape_cast %102 : vector<1xf32> to vector<1x1x1xf32>
    %104 = vector.extract %103[0, 0, 0] : f32 from vector<1x1x1xf32>
    %105 = vector.broadcast %104 : f32 to vector<1x1xf32>
    %106 = arith.addf %83, %105 : vector<1x1xf32>
    %cst_40 = arith.constant dense<0.000000e+00> : vector<8x128xf32>
    %107 = tpu.matmul %81, %92, %cst_40 {dimension_numbers = #tpu.dot_dimension_numbers<[1], [0], [0], [1], [0, 0, 1, 1], [], []>} : vector<8x256xf32>, vector<256x128xf32>, vector<8x128xf32> -> vector<8x128xf32>
    %108 = vector.broadcast %95 : vector<1x128xf32> to vector<8x128xf32>
    %109 = arith.mulf %107, %108 : vector<8x128xf32>
    %110 = vector.broadcast %82 : vector<8x1xf32> to vector<8x128xf32>
    %111 = arith.subf %109, %110 : vector<8x128xf32>
    %c0_41 = arith.constant 0 : index
    %c256 = arith.constant 256 : index
    %112 = vector.load %arg7[%c0_41, %c256] : memref<8x1024xf32, #tpu.memory_space<vmem>>, vector<8x128xf32>
    tpu.vector_store %arg7[%c0_41, %c256], %111 {strides = array<i32>} : memref<8x1024xf32, #tpu.memory_space<vmem>>, vector<8x128xf32>,
    %113 = vector.extract_strided_slice %81 {offsets = [0, 128], sizes = [8, 128], strides = [1, 1]} : vector<8x256xf32> to vector<8x128xf32>
    %cst_42 = arith.constant 0.353553385 : f32
    %114 = vector.broadcast %cst_42 : f32 to vector<8x128xf32>
    %115 = arith.mulf %113, %114 : vector<8x128xf32>
    %cst_43 = arith.constant dense<0.000000e+00> : vector<256x128xf32>
    %116 = tpu.matmul %81, %115, %cst_43 {dimension_numbers = #tpu.dot_dimension_numbers<[0], [0], [1], [1], [0, 1, 1, 1], [], []>} : vector<8x256xf32>, vector<8x128xf32>, vector<256x128xf32> -> vector<256x128xf32>
    %cst_44 = arith.constant dense<0xFF800000> : vector<128xf32>
    %117 = vector.multi_reduction <maximumf>, %116, %cst_44 [0] : vector<256x128xf32> to vector<128xf32>
    %118 = vector.shape_cast %117 : vector<128xf32> to vector<1x128xf32>
    %119 = vector.broadcast %118 : vector<1x128xf32> to vector<256x128xf32>
    %120 = arith.subf %116, %119 : vector<256x128xf32>
    %121 = math.exp %120 : vector<256x128xf32>
    %cst_45 = arith.constant dense<0.000000e+00> : vector<128xf32>
    %122 = vector.multi_reduction <add>, %121, %cst_45 [0] : vector<256x128xf32> to vector<128xf32>
    %123 = vector.shape_cast %122 : vector<128xf32> to vector<1x128xf32>
    %124 = tpu.reciprocal %123 : vector<1x128xf32> -> vector<1x128xf32>
    %125 = arith.mulf %121, %121 : vector<256x128xf32>
    %cst_46 = arith.constant dense<0.000000e+00> : vector<128xf32>
    %126 = vector.multi_reduction <add>, %125, %cst_46 [0] : vector<256x128xf32> to vector<128xf32>
    %127 = vector.shape_cast %126 : vector<128xf32> to vector<1x128xf32>
    %128 = arith.mulf %127, %124 : vector<1x128xf32>
    %129 = arith.mulf %128, %124 : vector<1x128xf32>
    %130 = vector.shape_cast %129 : vector<1x128xf32> to vector<1x1x128xf32>
    %cst_47 = arith.constant dense<0.000000e+00> : vector<1xf32>
    %131 = vector.multi_reduction <add>, %130, %cst_47 [1, 2] : vector<1x1x128xf32> to vector<1xf32>
    %132 = vector.shape_cast %131 : vector<1xf32> to vector<1x1x1xf32>
    %133 = vector.extract %132[0, 0, 0] : f32 from vector<1x1x1xf32>
    %134 = vector.broadcast %133 : f32 to vector<1x1xf32>
    %135 = arith.addf %106, %134 : vector<1x1xf32>
    %cst_48 = arith.constant dense<0.000000e+00> : vector<8x128xf32>
    %136 = tpu.matmul %81, %121, %cst_48 {dimension_numbers = #tpu.dot_dimension_numbers<[1], [0], [0], [1], [0, 0, 1, 1], [], []>} : vector<8x256xf32>, vector<256x128xf32>, vector<8x128xf32> -> vector<8x128xf32>
    %137 = vector.broadcast %124 : vector<1x128xf32> to vector<8x128xf32>
    %138 = arith.mulf %136, %137 : vector<8x128xf32>
    %139 = vector.broadcast %82 : vector<8x1xf32> to vector<8x128xf32>
    %140 = arith.subf %138, %139 : vector<8x128xf32>
    %c0_49 = arith.constant 0 : index
    %c384 = arith.constant 384 : index
    %141 = vector.load %arg7[%c0_49, %c384] : memref<8x1024xf32, #tpu.memory_space<vmem>>, vector<8x128xf32>
    tpu.vector_store %arg7[%c0_49, %c384], %140 {strides = array<i32>} : memref<8x1024xf32, #tpu.memory_space<vmem>>, vector<8x128xf32>,
    %cst_50 = arith.constant 1.52587891E-5 : f32
    %142 = vector.broadcast %cst_50 : f32 to vector<1x1xf32>
    %143 = arith.mulf %135, %142 : vector<1x1xf32>
    %cst_51 = arith.constant 1.52587891E-5 : f32
    %144 = vector.broadcast %cst_51 : f32 to vector<1x1xf32>
    %145 = arith.subf %143, %144 : vector<1x1xf32>
    %cst_52 = arith.constant 9.99999974E-6 : f32
    %146 = vector.broadcast %cst_52 : f32 to vector<1x1xf32>
    %147 = arith.addf %145, %146 : vector<1x1xf32>
    %148 = math.rsqrt %147 : vector<1x1xf32>
    %149 = vector.extract_strided_slice %8 {offsets = [16, 0], sizes = [8, 256], strides = [1, 1]} : vector<32x256xf32> to vector<8x256xf32>
    %150 = vector.extract_strided_slice %12 {offsets = [16, 0], sizes = [8, 1], strides = [1, 1]} : vector<32x1xf32> to vector<8x1xf32>
    %cst_53 = arith.constant 0.000000e+00 : f32
    %151 = vector.broadcast %cst_53 : f32 to vector<1x1xf32>
    %152 = vector.extract_strided_slice %149 {offsets = [0, 0], sizes = [8, 128], strides = [1, 1]} : vector<8x256xf32> to vector<8x128xf32>
    %cst_54 = arith.constant 0.353553385 : f32
    %153 = vector.broadcast %cst_54 : f32 to vector<8x128xf32>
    %154 = arith.mulf %152, %153 : vector<8x128xf32>
    %cst_55 = arith.constant dense<0.000000e+00> : vector<256x128xf32>
    %155 = tpu.matmul %149, %154, %cst_55 {dimension_numbers = #tpu.dot_dimension_numbers<[0], [0], [1], [1], [0, 1, 1, 1], [], []>} : vector<8x256xf32>, vector<8x128xf32>, vector<256x128xf32> -> vector<256x128xf32>
    %cst_56 = arith.constant dense<0xFF800000> : vector<128xf32>
    %156 = vector.multi_reduction <maximumf>, %155, %cst_56 [0] : vector<256x128xf32> to vector<128xf32>
    %157 = vector.shape_cast %156 : vector<128xf32> to vector<1x128xf32>
    %158 = vector.broadcast %157 : vector<1x128xf32> to vector<256x128xf32>
    %159 = arith.subf %155, %158 : vector<256x128xf32>
    %160 = math.exp %159 : vector<256x128xf32>
    %cst_57 = arith.constant dense<0.000000e+00> : vector<128xf32>
    %161 = vector.multi_reduction <add>, %160, %cst_57 [0] : vector<256x128xf32> to vector<128xf32>
    %162 = vector.shape_cast %161 : vector<128xf32> to vector<1x128xf32>
    %163 = tpu.reciprocal %162 : vector<1x128xf32> -> vector<1x128xf32>
    %164 = arith.mulf %160, %160 : vector<256x128xf32>
    %cst_58 = arith.constant dense<0.000000e+00> : vector<128xf32>
    %165 = vector.multi_reduction <add>, %164, %cst_58 [0] : vector<256x128xf32> to vector<128xf32>
    %166 = vector.shape_cast %165 : vector<128xf32> to vector<1x128xf32>
    %167 = arith.mulf %166, %163 : vector<1x128xf32>
    %168 = arith.mulf %167, %163 : vector<1x128xf32>
    %169 = vector.shape_cast %168 : vector<1x128xf32> to vector<1x1x128xf32>
    %cst_59 = arith.constant dense<0.000000e+00> : vector<1xf32>
    %170 = vector.multi_reduction <add>, %169, %cst_59 [1, 2] : vector<1x1x128xf32> to vector<1xf32>
    %171 = vector.shape_cast %170 : vector<1xf32> to vector<1x1x1xf32>
    %172 = vector.extract %171[0, 0, 0] : f32 from vector<1x1x1xf32>
    %173 = vector.broadcast %172 : f32 to vector<1x1xf32>
    %174 = arith.addf %151, %173 : vector<1x1xf32>
    %cst_60 = arith.constant dense<0.000000e+00> : vector<8x128xf32>
    %175 = tpu.matmul %149, %160, %cst_60 {dimension_numbers = #tpu.dot_dimension_numbers<[1], [0], [0], [1], [0, 0, 1, 1], [], []>} : vector<8x256xf32>, vector<256x128xf32>, vector<8x128xf32> -> vector<8x128xf32>
    %176 = vector.broadcast %163 : vector<1x128xf32> to vector<8x128xf32>
    %177 = arith.mulf %175, %176 : vector<8x128xf32>
    %178 = vector.broadcast %150 : vector<8x1xf32> to vector<8x128xf32>
    %179 = arith.subf %177, %178 : vector<8x128xf32>
    %c0_61 = arith.constant 0 : index
    %c512 = arith.constant 512 : index
    %180 = vector.load %arg7[%c0_61, %c512] : memref<8x1024xf32, #tpu.memory_space<vmem>>, vector<8x128xf32>
    tpu.vector_store %arg7[%c0_61, %c512], %179 {strides = array<i32>} : memref<8x1024xf32, #tpu.memory_space<vmem>>, vector<8x128xf32>,
    %181 = vector.extract_strided_slice %149 {offsets = [0, 128], sizes = [8, 128], strides = [1, 1]} : vector<8x256xf32> to vector<8x128xf32>
    %cst_62 = arith.constant 0.353553385 : f32
    %182 = vector.broadcast %cst_62 : f32 to vector<8x128xf32>
    %183 = arith.mulf %181, %182 : vector<8x128xf32>
    %cst_63 = arith.constant dense<0.000000e+00> : vector<256x128xf32>
    %184 = tpu.matmul %149, %183, %cst_63 {dimension_numbers = #tpu.dot_dimension_numbers<[0], [0], [1], [1], [0, 1, 1, 1], [], []>} : vector<8x256xf32>, vector<8x128xf32>, vector<256x128xf32> -> vector<256x128xf32>
    %cst_64 = arith.constant dense<0xFF800000> : vector<128xf32>
    %185 = vector.multi_reduction <maximumf>, %184, %cst_64 [0] : vector<256x128xf32> to vector<128xf32>
    %186 = vector.shape_cast %185 : vector<128xf32> to vector<1x128xf32>
    %187 = vector.broadcast %186 : vector<1x128xf32> to vector<256x128xf32>
    %188 = arith.subf %184, %187 : vector<256x128xf32>
    %189 = math.exp %188 : vector<256x128xf32>
    %cst_65 = arith.constant dense<0.000000e+00> : vector<128xf32>
    %190 = vector.multi_reduction <add>, %189, %cst_65 [0] : vector<256x128xf32> to vector<128xf32>
    %191 = vector.shape_cast %190 : vector<128xf32> to vector<1x128xf32>
    %192 = tpu.reciprocal %191 : vector<1x128xf32> -> vector<1x128xf32>
    %193 = arith.mulf %189, %189 : vector<256x128xf32>
    %cst_66 = arith.constant dense<0.000000e+00> : vector<128xf32>
    %194 = vector.multi_reduction <add>, %193, %cst_66 [0] : vector<256x128xf32> to vector<128xf32>
    %195 = vector.shape_cast %194 : vector<128xf32> to vector<1x128xf32>
    %196 = arith.mulf %195, %192 : vector<1x128xf32>
    %197 = arith.mulf %196, %192 : vector<1x128xf32>
    %198 = vector.shape_cast %197 : vector<1x128xf32> to vector<1x1x128xf32>
    %cst_67 = arith.constant dense<0.000000e+00> : vector<1xf32>
    %199 = vector.multi_reduction <add>, %198, %cst_67 [1, 2] : vector<1x1x128xf32> to vector<1xf32>
    %200 = vector.shape_cast %199 : vector<1xf32> to vector<1x1x1xf32>
    %201 = vector.extract %200[0, 0, 0] : f32 from vector<1x1x1xf32>
    %202 = vector.broadcast %201 : f32 to vector<1x1xf32>
    %203 = arith.addf %174, %202 : vector<1x1xf32>
    %cst_68 = arith.constant dense<0.000000e+00> : vector<8x128xf32>
    %204 = tpu.matmul %149, %189, %cst_68 {dimension_numbers = #tpu.dot_dimension_numbers<[1], [0], [0], [1], [0, 0, 1, 1], [], []>} : vector<8x256xf32>, vector<256x128xf32>, vector<8x128xf32> -> vector<8x128xf32>
    %205 = vector.broadcast %192 : vector<1x128xf32> to vector<8x128xf32>
    %206 = arith.mulf %204, %205 : vector<8x128xf32>
    %207 = vector.broadcast %150 : vector<8x1xf32> to vector<8x128xf32>
    %208 = arith.subf %206, %207 : vector<8x128xf32>
    %c0_69 = arith.constant 0 : index
    %c640 = arith.constant 640 : index
    %209 = vector.load %arg7[%c0_69, %c640] : memref<8x1024xf32, #tpu.memory_space<vmem>>, vector<8x128xf32>
    tpu.vector_store %arg7[%c0_69, %c640], %208 {strides = array<i32>} : memref<8x1024xf32, #tpu.memory_space<vmem>>, vector<8x128xf32>,
    %cst_70 = arith.constant 1.52587891E-5 : f32
    %210 = vector.broadcast %cst_70 : f32 to vector<1x1xf32>
    %211 = arith.mulf %203, %210 : vector<1x1xf32>
    %cst_71 = arith.constant 1.52587891E-5 : f32
    %212 = vector.broadcast %cst_71 : f32 to vector<1x1xf32>
    %213 = arith.subf %211, %212 : vector<1x1xf32>
    %cst_72 = arith.constant 9.99999974E-6 : f32
    %214 = vector.broadcast %cst_72 : f32 to vector<1x1xf32>
    %215 = arith.addf %213, %214 : vector<1x1xf32>
    %216 = math.rsqrt %215 : vector<1x1xf32>
    %217 = vector.extract_strided_slice %8 {offsets = [24, 0], sizes = [8, 256], strides = [1, 1]} : vector<32x256xf32> to vector<8x256xf32>
    %218 = vector.extract_strided_slice %12 {offsets = [24, 0], sizes = [8, 1], strides = [1, 1]} : vector<32x1xf32> to vector<8x1xf32>
    %cst_73 = arith.constant 0.000000e+00 : f32
    %219 = vector.broadcast %cst_73 : f32 to vector<1x1xf32>
    %220 = vector.extract_strided_slice %217 {offsets = [0, 0], sizes = [8, 128], strides = [1, 1]} : vector<8x256xf32> to vector<8x128xf32>
    %cst_74 = arith.constant 0.353553385 : f32
    %221 = vector.broadcast %cst_74 : f32 to vector<8x128xf32>
    %222 = arith.mulf %220, %221 : vector<8x128xf32>
    %cst_75 = arith.constant dense<0.000000e+00> : vector<256x128xf32>
    %223 = tpu.matmul %217, %222, %cst_75 {dimension_numbers = #tpu.dot_dimension_numbers<[0], [0], [1], [1], [0, 1, 1, 1], [], []>} : vector<8x256xf32>, vector<8x128xf32>, vector<256x128xf32> -> vector<256x128xf32>
    %cst_76 = arith.constant dense<0xFF800000> : vector<128xf32>
    %224 = vector.multi_reduction <maximumf>, %223, %cst_76 [0] : vector<256x128xf32> to vector<128xf32>
    %225 = vector.shape_cast %224 : vector<128xf32> to vector<1x128xf32>
    %226 = vector.broadcast %225 : vector<1x128xf32> to vector<256x128xf32>
    %227 = arith.subf %223, %226 : vector<256x128xf32>
    %228 = math.exp %227 : vector<256x128xf32>
    %cst_77 = arith.constant dense<0.000000e+00> : vector<128xf32>
    %229 = vector.multi_reduction <add>, %228, %cst_77 [0] : vector<256x128xf32> to vector<128xf32>
    %230 = vector.shape_cast %229 : vector<128xf32> to vector<1x128xf32>
    %231 = tpu.reciprocal %230 : vector<1x128xf32> -> vector<1x128xf32>
    %232 = arith.mulf %228, %228 : vector<256x128xf32>
    %cst_78 = arith.constant dense<0.000000e+00> : vector<128xf32>
    %233 = vector.multi_reduction <add>, %232, %cst_78 [0] : vector<256x128xf32> to vector<128xf32>
    %234 = vector.shape_cast %233 : vector<128xf32> to vector<1x128xf32>
    %235 = arith.mulf %234, %231 : vector<1x128xf32>
    %236 = arith.mulf %235, %231 : vector<1x128xf32>
    %237 = vector.shape_cast %236 : vector<1x128xf32> to vector<1x1x128xf32>
    %cst_79 = arith.constant dense<0.000000e+00> : vector<1xf32>
    %238 = vector.multi_reduction <add>, %237, %cst_79 [1, 2] : vector<1x1x128xf32> to vector<1xf32>
    %239 = vector.shape_cast %238 : vector<1xf32> to vector<1x1x1xf32>
    %240 = vector.extract %239[0, 0, 0] : f32 from vector<1x1x1xf32>
    %241 = vector.broadcast %240 : f32 to vector<1x1xf32>
    %242 = arith.addf %219, %241 : vector<1x1xf32>
    %cst_80 = arith.constant dense<0.000000e+00> : vector<8x128xf32>
    %243 = tpu.matmul %217, %228, %cst_80 {dimension_numbers = #tpu.dot_dimension_numbers<[1], [0], [0], [1], [0, 0, 1, 1], [], []>} : vector<8x256xf32>, vector<256x128xf32>, vector<8x128xf32> -> vector<8x128xf32>
    %244 = vector.broadcast %231 : vector<1x128xf32> to vector<8x128xf32>
    %245 = arith.mulf %243, %244 : vector<8x128xf32>
    %246 = vector.broadcast %218 : vector<8x1xf32> to vector<8x128xf32>
    %247 = arith.subf %245, %246 : vector<8x128xf32>
    %c0_81 = arith.constant 0 : index
    %c768 = arith.constant 768 : index
    %248 = vector.load %arg7[%c0_81, %c768] : memref<8x1024xf32, #tpu.memory_space<vmem>>, vector<8x128xf32>
    tpu.vector_store %arg7[%c0_81, %c768], %247 {strides = array<i32>} : memref<8x1024xf32, #tpu.memory_space<vmem>>, vector<8x128xf32>,
    %249 = vector.extract_strided_slice %217 {offsets = [0, 128], sizes = [8, 128], strides = [1, 1]} : vector<8x256xf32> to vector<8x128xf32>
    %cst_82 = arith.constant 0.353553385 : f32
    %250 = vector.broadcast %cst_82 : f32 to vector<8x128xf32>
    %251 = arith.mulf %249, %250 : vector<8x128xf32>
    %cst_83 = arith.constant dense<0.000000e+00> : vector<256x128xf32>
    %252 = tpu.matmul %217, %251, %cst_83 {dimension_numbers = #tpu.dot_dimension_numbers<[0], [0], [1], [1], [0, 1, 1, 1], [], []>} : vector<8x256xf32>, vector<8x128xf32>, vector<256x128xf32> -> vector<256x128xf32>
    %cst_84 = arith.constant dense<0xFF800000> : vector<128xf32>
    %253 = vector.multi_reduction <maximumf>, %252, %cst_84 [0] : vector<256x128xf32> to vector<128xf32>
    %254 = vector.shape_cast %253 : vector<128xf32> to vector<1x128xf32>
    %255 = vector.broadcast %254 : vector<1x128xf32> to vector<256x128xf32>
    %256 = arith.subf %252, %255 : vector<256x128xf32>
    %257 = math.exp %256 : vector<256x128xf32>
    %cst_85 = arith.constant dense<0.000000e+00> : vector<128xf32>
    %258 = vector.multi_reduction <add>, %257, %cst_85 [0] : vector<256x128xf32> to vector<128xf32>
    %259 = vector.shape_cast %258 : vector<128xf32> to vector<1x128xf32>
    %260 = tpu.reciprocal %259 : vector<1x128xf32> -> vector<1x128xf32>
    %261 = arith.mulf %257, %257 : vector<256x128xf32>
    %cst_86 = arith.constant dense<0.000000e+00> : vector<128xf32>
    %262 = vector.multi_reduction <add>, %261, %cst_86 [0] : vector<256x128xf32> to vector<128xf32>
    %263 = vector.shape_cast %262 : vector<128xf32> to vector<1x128xf32>
    %264 = arith.mulf %263, %260 : vector<1x128xf32>
    %265 = arith.mulf %264, %260 : vector<1x128xf32>
    %266 = vector.shape_cast %265 : vector<1x128xf32> to vector<1x1x128xf32>
    %cst_87 = arith.constant dense<0.000000e+00> : vector<1xf32>
    %267 = vector.multi_reduction <add>, %266, %cst_87 [1, 2] : vector<1x1x128xf32> to vector<1xf32>
    %268 = vector.shape_cast %267 : vector<1xf32> to vector<1x1x1xf32>
    %269 = vector.extract %268[0, 0, 0] : f32 from vector<1x1x1xf32>
    %270 = vector.broadcast %269 : f32 to vector<1x1xf32>
    %271 = arith.addf %242, %270 : vector<1x1xf32>
    %cst_88 = arith.constant dense<0.000000e+00> : vector<8x128xf32>
    %272 = tpu.matmul %217, %257, %cst_88 {dimension_numbers = #tpu.dot_dimension_numbers<[1], [0], [0], [1], [0, 0, 1, 1], [], []>} : vector<8x256xf32>, vector<256x128xf32>, vector<8x128xf32> -> vector<8x128xf32>
    %273 = vector.broadcast %260 : vector<1x128xf32> to vector<8x128xf32>
    %274 = arith.mulf %272, %273 : vector<8x128xf32>
    %275 = vector.broadcast %218 : vector<8x1xf32> to vector<8x128xf32>
    %276 = arith.subf %274, %275 : vector<8x128xf32>
    %c0_89 = arith.constant 0 : index
    %c896 = arith.constant 896 : index
    %277 = vector.load %arg7[%c0_89, %c896] : memref<8x1024xf32, #tpu.memory_space<vmem>>, vector<8x128xf32>
    tpu.vector_store %arg7[%c0_89, %c896], %276 {strides = array<i32>} : memref<8x1024xf32, #tpu.memory_space<vmem>>, vector<8x128xf32>,
    %cst_90 = arith.constant 1.52587891E-5 : f32
    %278 = vector.broadcast %cst_90 : f32 to vector<1x1xf32>
    %279 = arith.mulf %271, %278 : vector<1x1xf32>
    %cst_91 = arith.constant 1.52587891E-5 : f32
    %280 = vector.broadcast %cst_91 : f32 to vector<1x1xf32>
    %281 = arith.subf %279, %280 : vector<1x1xf32>
    %cst_92 = arith.constant 9.99999974E-6 : f32
    %282 = vector.broadcast %cst_92 : f32 to vector<1x1xf32>
    %283 = arith.addf %281, %282 : vector<1x1xf32>
    %284 = math.rsqrt %283 : vector<1x1xf32>
    %c0_93 = arith.constant 0 : index
    %c0_94 = arith.constant 0 : index
    %285 = vector.load %arg7[%c0_93, %c0_94] : memref<8x1024xf32, #tpu.memory_space<vmem>>, vector<8x1024xf32>
    %cst_95 = arith.constant dense<0.000000e+00> : vector<8x1024xf32>
    %286 = tpu.matmul %2, %285, %cst_95 {dimension_numbers = #tpu.dot_dimension_numbers<[1], [0], [0], [1], [0, 0, 1, 1], [], []>} : vector<8x8xf32>, vector<8x1024xf32>, vector<8x1024xf32> -> vector<8x1024xf32>
    %287 = vector.extract_strided_slice %286 {offsets = [0, 0], sizes = [8, 256], strides = [1, 1]} : vector<8x1024xf32> to vector<8x256xf32>
    %288 = vector.broadcast %80 : vector<1x1xf32> to vector<8x256xf32>
    %289 = arith.mulf %288, %287 : vector<8x256xf32>
    %290 = vector.broadcast %3 : vector<8x1xf32> to vector<8x256xf32>
    %291 = arith.addf %289, %290 : vector<8x256xf32>
    %292 = vector.extract_strided_slice %5 {offsets = [0, 0], sizes = [8, 256], strides = [1, 1]} : vector<32x256xf32> to vector<8x256xf32>
    %293 = arith.addf %291, %292 : vector<8x256xf32>
    %c0_96 = arith.constant 0 : index
    %c0_97 = arith.constant 0 : index
    %c0_98 = arith.constant 0 : index
    %294 = vector.load %arg6[%c0_96, %c0_97, %c0_98] : memref<1x32x256xf32, #tpu.memory_space<vmem>>, vector<1x8x256xf32>
    %295 = vector.shape_cast %294 : vector<1x8x256xf32> to vector<8x256xf32>
    %296 = vector.shape_cast %293 : vector<8x256xf32> to vector<1x8x256xf32>
    tpu.vector_store %arg6[%c0_96, %c0_97, %c0_98], %296 {strides = array<i32>} : memref<1x32x256xf32, #tpu.memory_space<vmem>>, vector<1x8x256xf32>,
    %297 = vector.extract_strided_slice %286 {offsets = [0, 256], sizes = [8, 256], strides = [1, 1]} : vector<8x1024xf32> to vector<8x256xf32>
    %298 = vector.broadcast %148 : vector<1x1xf32> to vector<8x256xf32>
    %299 = arith.mulf %298, %297 : vector<8x256xf32>
    %300 = vector.broadcast %3 : vector<8x1xf32> to vector<8x256xf32>
    %301 = arith.addf %299, %300 : vector<8x256xf32>
    %302 = vector.extract_strided_slice %5 {offsets = [8, 0], sizes = [8, 256], strides = [1, 1]} : vector<32x256xf32> to vector<8x256xf32>
    %303 = arith.addf %301, %302 : vector<8x256xf32>
    %c0_99 = arith.constant 0 : index
    %c8 = arith.constant 8 : index
    %c0_100 = arith.constant 0 : index
    %304 = vector.load %arg6[%c0_99, %c8, %c0_100] : memref<1x32x256xf32, #tpu.memory_space<vmem>>, vector<1x8x256xf32>
    %305 = vector.shape_cast %304 : vector<1x8x256xf32> to vector<8x256xf32>
    %306 = vector.shape_cast %303 : vector<8x256xf32> to vector<1x8x256xf32>
    tpu.vector_store %arg6[%c0_99, %c8, %c0_100], %306 {strides = array<i32>} : memref<1x32x256xf32, #tpu.memory_space<vmem>>, vector<1x8x256xf32>,
    %307 = vector.extract_strided_slice %286 {offsets = [0, 512], sizes = [8, 256], strides = [1, 1]} : vector<8x1024xf32> to vector<8x256xf32>
    %308 = vector.broadcast %216 : vector<1x1xf32> to vector<8x256xf32>
    %309 = arith.mulf %308, %307 : vector<8x256xf32>
    %310 = vector.broadcast %3 : vector<8x1xf32> to vector<8x256xf32>
    %311 = arith.addf %309, %310 : vector<8x256xf32>
    %312 = vector.extract_strided_slice %5 {offsets = [16, 0], sizes = [8, 256], strides = [1, 1]} : vector<32x256xf32> to vector<8x256xf32>
    %313 = arith.addf %311, %312 : vector<8x256xf32>
    %c0_101 = arith.constant 0 : index
    %c16 = arith.constant 16 : index
    %c0_102 = arith.constant 0 : index
    %314 = vector.load %arg6[%c0_101, %c16, %c0_102] : memref<1x32x256xf32, #tpu.memory_space<vmem>>, vector<1x8x256xf32>
    %315 = vector.shape_cast %314 : vector<1x8x256xf32> to vector<8x256xf32>
    %316 = vector.shape_cast %313 : vector<8x256xf32> to vector<1x8x256xf32>
    tpu.vector_store %arg6[%c0_101, %c16, %c0_102], %316 {strides = array<i32>} : memref<1x32x256xf32, #tpu.memory_space<vmem>>, vector<1x8x256xf32>,
    %317 = vector.extract_strided_slice %286 {offsets = [0, 768], sizes = [8, 256], strides = [1, 1]} : vector<8x1024xf32> to vector<8x256xf32>
    %318 = vector.broadcast %284 : vector<1x1xf32> to vector<8x256xf32>
    %319 = arith.mulf %318, %317 : vector<8x256xf32>
    %320 = vector.broadcast %3 : vector<8x1xf32> to vector<8x256xf32>
    %321 = arith.addf %319, %320 : vector<8x256xf32>
    %322 = vector.extract_strided_slice %5 {offsets = [24, 0], sizes = [8, 256], strides = [1, 1]} : vector<32x256xf32> to vector<8x256xf32>
    %323 = arith.addf %321, %322 : vector<8x256xf32>
    %c0_103 = arith.constant 0 : index
    %c24 = arith.constant 24 : index
    %c0_104 = arith.constant 0 : index
    %324 = vector.load %arg6[%c0_103, %c24, %c0_104] : memref<1x32x256xf32, #tpu.memory_space<vmem>>, vector<1x8x256xf32>
    %325 = vector.shape_cast %324 : vector<1x8x256xf32> to vector<8x256xf32>
    %326 = vector.shape_cast %323 : vector<8x256xf32> to vector<1x8x256xf32>
    tpu.vector_store %arg6[%c0_103, %c24, %c0_104], %326 {strides = array<i32>} : memref<1x32x256xf32, #tpu.memory_space<vmem>>, vector<1x8x256xf32>,
    return
  }
  func.func @transform_0(%arg0: i32) -> (i32, i32, i32) {
    %c0_i32 = arith.constant 0 : i32
    %c0_i32_0 = arith.constant 0 : i32
    %c0_i32_1 = arith.constant 0 : i32
    return %arg0, %c0_i32, %c0_i32_0 : i32, i32, i32
  }
  func.func @transform_1(%arg0: i32) -> (i32, i32) {
    %c0_i32 = arith.constant 0 : i32
    %c0_i32_0 = arith.constant 0 : i32
    %c0_i32_1 = arith.constant 0 : i32
    return %c0_i32, %c0_i32_0 : i32, i32
  }
  func.func @transform_2(%arg0: i32) -> (i32, i32) {
    %c0_i32 = arith.constant 0 : i32
    %c0_i32_0 = arith.constant 0 : i32
    %c0_i32_1 = arith.constant 0 : i32
    return %c0_i32, %c0_i32_0 : i32, i32
  }
  func.func @transform_3(%arg0: i32) -> (i32, i32) {
    %c0_i32 = arith.constant 0 : i32
    %c0_i32_0 = arith.constant 0 : i32
    %c0_i32_1 = arith.constant 0 : i32
    return %c0_i32, %c0_i32_0 : i32, i32
  }
  func.func @transform_4(%arg0: i32) -> (i32, i32) {
    %c0_i32 = arith.constant 0 : i32
    %c0_i32_0 = arith.constant 0 : i32
    %c0_i32_1 = arith.constant 0 : i32
    return %c0_i32, %c0_i32_0 : i32, i32
  }
  func.func @transform_5(%arg0: i32) -> (i32, i32, i32) {
    %c0_i32 = arith.constant 0 : i32
    %c0_i32_0 = arith.constant 0 : i32
    %c0_i32_1 = arith.constant 0 : i32
    return %arg0, %c0_i32, %c0_i32_0 : i32, i32, i32
  }
}

</mosaic_0001>

<bundles_post_ra>
// kernel: cmhsa_forward.1
= control target key start
LH: loop header
LB: loop body
LE: loop exit
PB: predicated region body
PF: predicated region fallthrough
CT: control target
= control target key end

     0   :  { %s7687_s18 = smov 0   ;;  %s10966_s0 = inlined_call_operand.vmem [shape: f32[2,32,256], index: 0, kind: input, shape index: {}]   ;;  %s10967_s1 = inlined_call_operand.vmem [shape: f32[32,32], index: 1, kind: input, shape index: {}]   ;;  %s10968_s2 = inlined_call_operand.vmem [shape: f32[32,1], index: 2, kind: input, shape index: {}]   ;;  %s10969_s3 = inlined_call_operand.vmem [shape: f32[8,8], index: 3, kind: input, shape index: {}]   ;;  %s10970_s4 = inlined_call_operand.vmem [shape: f32[8,1], index: 4, kind: input, shape index: {}]   ;;  %s10971_s5 = inlined_call_operand.vmem [shape: f32[2,32,256], index: 5, kind: output, shape index: {}]  }
   0x1 LB: > { %s5850_s19 = sadd.s32 4294967295, %s7653_s18   ;;  %p5854_p0 = scmp.ge.s32.totalorder %s7653_s18, 1  ;;  %s7653_s18 = sphi %s7687_s18, %s15_s18  }
   0x2   : > { %p187_p1 = scmp.lt.s32.totalorder %s7653_s18, 3 }
   0x4   : > { %p188_p2 = pnand %p5854_p0, %p187_p1 }
   0x6   : > { %191 = sbr.rel (%p188_p2) target bundleno = 3589 (0xe05), region = 40 }
   0xb   : > { %p215_p3 = scmp.lt.s32.totalorder %s5850_s19, 1  ;;  %v229_v0 = vld [vmem:[%s10968_s2] sm:$0xff]  ;;  %v10972_v1 = vmov 0.0   ;;  %v7656_v2 = vmov 0   ;;  %vm263_vm0 = vcmask 261120   ;;  %v226_v12 = vld [vmem:[%s10967_s1 + $0x8] sm:$0xff] }
   0xc   : > { %340 = vmatprep.mubr.f32.mxu0 %v10972_v1  ;;  %7101 = vset.pattern.permute.xlu0 %v7656_v2  ;;  %v225_v11 = vld [vmem:[%s10967_s1] sm:$0xff]  ;;  %v227_v13 = vld [vmem:[%s10967_s1 + $0x10] sm:$0xff]  ;;  %v228_v14 = vld [vmem:[%s10967_s1 + $0x18] sm:$0xff]  ;;  %vm446_vm1 = vcmask 64512   ;;  %vm1010_vm2 = vcmask 1040384  }
   0xd   : > { %s11431_s19 = smov (!%p215_p3, %s5850_s19), 1  ;;  %245 = vperm.xlu0 %7101, %v229_v0   ;;  %v230_v21 = vld [vmem:[%s10968_s2 + $0x8] sm:$0xff]  ;;  %v231_v59 = vld [vmem:[%s10968_s2 + $0x10] sm:$0xff] }
   0xe   : > { %s6129_s22 = sshll.u32 %s11431_s19, 6 }
   0xf   : > { %s7707_s25 = scalar_lea.vmem %s10966_s0, %s6129_s22  ;;  %s10940_s6 = scalar_lea.vmem %s10971_s5, %s6129_s22 }
  0x10   : > { %v242_v3 = vld [vmem:[%s7707_s25 + $0x38] sm:$0xff]  ;;  %v241_v4 = vld [vmem:[%s7707_s25 + $0x30] sm:$0xff]  ;;  %v240_v5 = vld [vmem:[%s7707_s25 + $0x28] sm:$0xff] }
  0x11   : > { %300 = vmatprep.subr.mxu0 %v242_v3  ;;  %v239_v6 = vld [vmem:[%s7707_s25 + $0x20] sm:$0xff]  ;;  %v238_v7 = vld [vmem:[%s7707_s25 + $0x18] sm:$0xff]  ;;  %v237_v8 = vld [vmem:[%s7707_s25 + $0x10] sm:$0xff] }
  0x12   : > { %301 = vmatpush1.msra.mxu0 %v241_v4  ;;  %v236_v9 = vld [vmem:[%s7707_s25 + $0x8] sm:$0xff]  ;;  %v235_v10 = vld [vmem:[%s7707_s25] sm:$0xff] }
  0x13   : > { %302 = vmatprep.subr.mxu0 %v240_v5 }
  0x14   : > { %303 = vmatpush1.msra.mxu0 %v239_v6 }
  0x15   : > { %304 = vmatprep.subr.mxu0 %v238_v7 }
  0x16   : > { %305 = vmatpush1.msra.mxu0 %v237_v8 }
  0x17   : > { %306 = vmatprep.subr.mxu0 %v236_v9 }
  0x18   : > { %307 = vmatpush1.msra.mxu0 %v235_v10 }
  0x19   : > { %5859 = vmatmul.mubr.msk.f32.vlgmr.msra.gmra.mxu0 %vm263_vm0, %v225_v11 }
  0x1a   : > { %346 = vmatprep.mubr.f32.mxu0 %v10972_v1 }
  0x1d   : > { %5860 = vmatmul.mubr.msk.f32.gmra.mxu0 %vm263_vm0, %v226_v12 }
  0x1e   : > { %352 = vmatprep.mubr.f32.mxu0 %v10972_v1 }
  0x21   : > { %5861 = vmatmul.mubr.msk.f32.gmra.mxu0 %vm263_vm0, %v227_v13 }
  0x22   : > { %358 = vmatprep.mubr.f32.mxu0 %v10972_v1 }
  0x25   : > { %5862 = vmatmul.mubr.msk.f32.gmra.mxu0 %vm263_vm0, %v228_v14 }
  0x88   : > { %v246_v15 = vpop.permute.xlu0 %245 }
  0xd9   : > { %v342_v16 = vpop.f32.mrf.mxu0 }
  0xda   : > { %v7732_v17 = vadd.f32 %v342_v16, %v246_v15 }
  0xdb   : > { %v344_v18 = vpop.f32.mrf.mxu0 }
  0xdc   : > { %v7734_v19 = vadd.f32 %v344_v18, %v246_v15  ;;  %382 = vxpose.xlu0.b32.start.end [1/1] (short) %v7732_v17, 128  ;;  %v381_v20 = vmul.f32 0.35355338, %v7732_v17 }
  0xdd   : > { %v348_v54 = vpop.f32.mrf.mxu0 }
  0xde   : > { %414 = vxpose.xlu1.b32.start.end [1/1] (short) %v7734_v19, 128  ;;  %6675 = vmatprep.subr.mxu1 %v381_v20 }
  0xdf   : > { %1087 = vmatprep.mubr.f32.mxu0 %v7734_v19  ;;  %6676 = vmatpush3.msra.mxu1 %v381_v20  ;;  %v350_v57 = vpop.f32.mrf.mxu0 }
  0xfc   : > { %7102 = vset.pattern.permute.xlu1 %v7656_v2 }
 0x138   : > { %250 = vperm.xlu1 %7102, %v230_v21  }
 0x158   : > { %v7743_v22 = vpop.trf.xlu0 }
 0x159   : > { %6677 = vmatprep.mubr.msk.f32.mxu1 %vm446_vm1, %v7743_v22 }
 0x15a   : > { %v7747_v23 = vpop.trf.xlu1 }
 0x15b   : > { %11114 = vst [vmem:[#allocation3_spill] sm:$0xff] %v7747_v23 }
 0x15c   : > { %v7749_v24 = vpop.trf.xlu0 }
 0x15d   : > { %6678 = vmatmul.mubr.msk.f32.vlgmr.msra.gmra.mxu1 %vm446_vm1, %v7749_v24 }
 0x15e   : > { %v7753_v25 = vpop.trf.xlu1 }
 0x15f   : > { %11115 = vst [vmem:[#allocation4_spill] sm:$0xff] %v7753_v25 }
 0x160   : > { %v7755_v26 = vpop.trf.xlu0 }
 0x161   : > { %6680 = vmatprep.mubr.msk.f32.mxu1 %vm446_vm1, %v7755_v26 }
 0x162   : > { %v7759_v27 = vpop.trf.xlu1 }
 0x163   : > { %11116 = vst [vmem:[#allocation5_spill] sm:$0xff] %v7759_v27 }
 0x164   : > { %v7761_v28 = vpop.trf.xlu0 }
 0x165   : > { %6681 = vmatmul.mubr.msk.f32.gmra.mxu1 %vm446_vm1, %v7761_v28 }
 0x166   : > { %v7765_v29 = vpop.trf.xlu1 }
 0x167   : > { %11117 = vst [vmem:[#allocation6_spill] sm:$0xff] %v7765_v29 }
 0x168   : > { %v7767_v30 = vpop.trf.xlu0 }
 0x169   : > { %6683 = vmatprep.mubr.msk.f32.mxu1 %vm446_vm1, %v7767_v30 }
 0x16a   : > { %v7771_v31 = vpop.trf.xlu1 }
 0x16b   : > { %11118 = vst [vmem:[#allocation7_spill] sm:$0xff] %v7771_v31 }
 0x16c   : > { %v7773_v32 = vpop.trf.xlu0 }
 0x16d   : > { %6684 = vmatmul.mubr.msk.f32.gmra.mxu1 %vm446_vm1, %v7773_v32 }
 0x16e   : > { %v7781_v34 = vpop.trf.xlu1 }
 0x16f   : > { %11119 = vst [vmem:[#allocation8_spill] sm:$0xff] %v7781_v34 }
 0x170   : > { %v7777_v33 = vpop.trf.xlu0 }
 0x171   : > { %6686 = vmatprep.mubr.msk.f32.mxu1 %vm446_vm1, %v7777_v33 }
 0x172   : > { %v7787_v36 = vpop.trf.xlu1 }
 0x173   : > { %11120 = vst [vmem:[#allocation9_spill] sm:$0xff] %v7787_v36 }
 0x174   : > { %v7783_v35 = vpop.trf.xlu0 }
 0x175   : > { %6687 = vmatmul.mubr.msk.f32.gmra.mxu1 %vm446_vm1, %v7783_v35 }
 0x176   : > { %v7797_v39 = vpop.trf.xlu1 }
 0x177   : > { %11121 = vst [vmem:[#allocation10_spill] sm:$0xff] %v7797_v39 }
 0x178   : > { %v7789_v37 = vpop.trf.xlu0 }
 0x179   : > { %6689 = vmatprep.mubr.msk.f32.mxu1 %vm446_vm1, %v7789_v37 }
 0x17a   : > { %v7803_v41 = vpop.trf.xlu1 }
 0x17b   : > { %11122 = vst [vmem:[#allocation11_spill] sm:$0xff] %v7803_v41 }
 0x17c   : > { %v7793_v38 = vpop.trf.xlu0 }
 0x17d   : > { %6690 = vmatmul.mubr.msk.f32.gmra.mxu1 %vm446_vm1, %v7793_v38 }
 0x17e   : > { %v7813_v44 = vpop.trf.xlu1 }
 0x17f   : > { %11125 = vst [vmem:[#allocation14_spill] sm:$0xff] %v7813_v44 }
 0x180   : > { %v7799_v40 = vpop.trf.xlu0 }
 0x181   : > { %6692 = vmatprep.mubr.msk.f32.mxu1 %vm446_vm1, %v7799_v40 }
 0x182   : > { %v7819_v46 = vpop.trf.xlu1 }
 0x183   : > { %11127 = vst [vmem:[#allocation16_spill] sm:$0xff] %v7819_v46 }
 0x184   : > { %v7805_v42 = vpop.trf.xlu0 }
 0x185   : > { %11123 = vst [vmem:[#allocation12_spill] sm:$0xff] %v7805_v42  ;;  %6693 = vmatmul.mubr.msk.f32.gmra.mxu1 %vm446_vm1, %v7805_v42 }
 0x186   : > { %v7829_v49 = vpop.trf.xlu1 }
 0x187   : > { %11130 = vst [vmem:[#allocation19_spill] sm:$0xff] %v7829_v49 }
 0x188   : > { %v7809_v43 = vpop.trf.xlu0 }
 0x189   : > { %11124 = vst [vmem:[#allocation13_spill] sm:$0xff] %v7809_v43  ;;  %6695 = vmatprep.mubr.msk.f32.mxu1 %vm446_vm1, %v7809_v43 }
 0x18a   : > { %v7837_v50 = vpop.trf.xlu1 }
 0x18b   : > { %11131 = vst [vmem:[#allocation20_spill] sm:$0xff] %v7837_v50 }
 0x18c   : > { %v7815_v45 = vpop.trf.xlu0 }
 0x18d   : > { %11126 = vst [vmem:[#allocation15_spill] sm:$0xff] %v7815_v45  ;;  %6696 = vmatmul.mubr.msk.f32.gmra.mxu1 %vm446_vm1, %v7815_v45 }
 0x18e   : > { %v7845_v51 = vpop.trf.xlu1 }
 0x18f   : > { %11132 = vst [vmem:[#allocation21_spill] sm:$0xff] %v7845_v51 }
 0x190   : > { %v7821_v47 = vpop.trf.xlu0 }
 0x191   : > { %11128 = vst [vmem:[#allocation17_spill] sm:$0xff] %v7821_v47  ;;  %6698 = vmatprep.mubr.msk.f32.mxu1 %vm446_vm1, %v7821_v47 }
 0x192   : > { %v7853_v52 = vpop.trf.xlu1 }
 0x193   : > { %11133 = vst [vmem:[#allocation22_spill] sm:$0xff] %v7853_v52 }
 0x194   : > { %v7825_v48 = vpop.trf.xlu0 }
 0x195   : > { %11129 = vst [vmem:[#allocation18_spill] sm:$0xff] %v7825_v48  ;;  %6699 = vmatmul.mubr.msk.f32.gmra.mxu1 %vm446_vm1, %v7825_v48 }
 0x196   : > { %6701 = vmatprep.mubr.msk.f32.mxu1 %vm446_vm1, %v7747_v23  ;;  %v7861_v53 = vpop.trf.xlu1 }
 0x197   : > { %11134 = vst [vmem:[#allocation23_spill] sm:$0xff] %v7861_v53 }
 0x199   : > { %6702 = vmatmul.mubr.msk.f32.gmra.mxu1 %vm446_vm1, %v7753_v25 }
 0x19a   : > { %6704 = vmatprep.mubr.msk.f32.mxu1 %vm446_vm1, %v7759_v27 }
 0x19d   : > { %6705 = vmatmul.mubr.msk.f32.gmra.mxu1 %vm446_vm1, %v7765_v29 }
 0x19e   : > { %6707 = vmatprep.mubr.msk.f32.mxu1 %vm446_vm1, %v7771_v31 }
 0x1a1   : > { %6708 = vmatmul.mubr.msk.f32.gmra.mxu1 %vm446_vm1, %v7781_v34 }
 0x1a2   : > { %6710 = vmatprep.mubr.msk.f32.mxu1 %vm446_vm1, %v7787_v36 }
 0x1a5   : > { %6711 = vmatmul.mubr.msk.f32.gmra.mxu1 %vm446_vm1, %v7797_v39 }
 0x1a6   : > { %6713 = vmatprep.mubr.msk.f32.mxu1 %vm446_vm1, %v7803_v41 }
 0x1a9   : > { %6714 = vmatmul.mubr.msk.f32.gmra.mxu1 %vm446_vm1, %v7813_v44 }
 0x1aa   : > { %6716 = vmatprep.mubr.msk.f32.mxu1 %vm446_vm1, %v7819_v46 }
 0x1ad   : > { %6717 = vmatmul.mubr.msk.f32.gmra.mxu1 %vm446_vm1, %v7829_v49 }
 0x1ae   : > { %6719 = vmatprep.mubr.msk.f32.mxu1 %vm446_vm1, %v7837_v50 }
 0x1b1   : > { %6720 = vmatmul.mubr.msk.f32.gmra.mxu1 %vm446_vm1, %v7845_v51 }
 0x1b2   : > { %6722 = vmatprep.mubr.msk.f32.mxu1 %vm446_vm1, %v7853_v52 }
 0x1b3   : > { %v251_v55 = vpop.permute.xlu1 %250 }
 0x1b4   : > { %v7869_v56 = vadd.f32 %v348_v54, %v251_v55  ;;  %v7875_v58 = vadd.f32 %v350_v57, %v251_v55 }
 0x1b5   : > { %6723 = vmatmul.mubr.msk.f32.gmra.mxu1 %vm446_vm1, %v7861_v53 }
 0x1b6   : > { %11135 = vst [vmem:[#allocation24_spill] sm:$0xff] %v7869_v56  ;;  %1654 = vxpose.xlu0.b32.start.end [1/1] (short) %v7869_v56, 128  ;;  %1640 = vmatprep.mubr.f32.mxu1 %v7734_v19  ;;  %11136 = vst [vmem:[#allocation25_spill] sm:$0xff] %v7875_v58 }
 0x1b7   : > { %1686 = vxpose.xlu1.b32.start.end [1/1] (short) %v7875_v58, 128 }
 0x21b   : > { %255 = vperm.xlu0 %7101, %v231_v59  }
 0x21d   : > { %v7881_v60 = vpop.f32.mrf.mxu1 }
 0x21f   : > { %v7883_v61 = vpop.f32.mrf.mxu1 }
 0x225   : > { %v7885_v62 = vpop.f32.mrf.mxu1 }
 0x227   : > { %v7887_v63 = vpop.f32.mrf.mxu1 }
 0x22d   : > { %v7889_v0 = vpop.f32.mrf.mxu1 }
 0x22e   : > { %v769_v58 = vmax.f32 %v7881_v60, %v7889_v0 }
 0x22f   : > { %v7893_v3 = vpop.f32.mrf.mxu1 }
 0x230   : > { %v768_v56 = vmax.f32 %v7883_v61, %v7893_v3 }
 0x232   : > { %v7891_v2 = vpop.trf.xlu0 }
 0x233   : > { %11137 = vst [vmem:[#allocation26_spill] sm:$0xff] %v7891_v2 }
 0x235   : > { %v7895_v4 = vpop.f32.mrf.mxu1 }
 0x236   : > { %v7897_v5 = vpop.trf.xlu0  ;;  %v771_v53 = vmax.f32 %v7885_v62, %v7895_v4 }
 0x237   : > { %11138 = vst [vmem:[#allocation27_spill] sm:$0xff] %v7897_v5  ;;  %v7899_v6 = vpop.f32.mrf.mxu1 }
 0x23a   : > { %v7903_v8 = vpop.trf.xlu0 }
 0x23b   : > { %11139 = vst [vmem:[#allocation28_spill] sm:$0xff] %v7903_v8 }
 0x23d   : > { %v7901_v7 = vpop.f32.mrf.mxu1 }
 0x23e   : > { %v7909_v11 = vpop.trf.xlu0 }
 0x23f   : > { %v7905_v9 = vpop.f32.mrf.mxu1  ;;  %11140 = vst [vmem:[#allocation29_spill] sm:$0xff] %v7909_v11 }
 0x240   : > { %v772_v52 = vmax.f32 %v768_v56, %v7905_v9 }
 0x242   : > { %v7915_v14 = vpop.trf.xlu0 }
 0x243   : > { %11141 = vst [vmem:[#allocation30_spill] sm:$0xff] %v7915_v14 }
 0x245   : > { %v7907_v10 = vpop.f32.mrf.mxu1 }
 0x246   : > { %v7923_v20 = vpop.trf.xlu0  ;;  %v775_v50 = vmax.f32 %v771_v53, %v7907_v10 }
 0x247   : > { %v7911_v12 = vpop.f32.mrf.mxu1  ;;  %11142 = vst [vmem:[#allocation31_spill] sm:$0xff] %v7923_v20 }
 0x24a   : > { %v7931_v57 = vpop.trf.xlu0 }
 0x24b   : > { %11143 = vst [vmem:[#allocation32_spill] sm:$0xff] %v7931_v57 }
 0x24d   : > { %v7913_v13 = vpop.f32.mrf.mxu1 }
 0x24e   : > { %v7939_v11 = vpop.trf.xlu0 }
 0x24f   : > { %v7917_v15 = vpop.f32.mrf.mxu1  ;;  %11144 = vst [vmem:[#allocation33_spill] sm:$0xff] %v7939_v11  ;;  %v770_v11 = vmax.f32 %v7887_v63, %v7899_v6 }
 0x250   : > { %v776_v46 = vmax.f32 %v772_v52, %v7917_v15 }
 0x251   : > { %v774_v49 = vmax.f32 %v770_v11, %v7911_v12 }
 0x252   : > { %v7947_v2 = vpop.trf.xlu0 }
 0x253   : > { %11145 = vst [vmem:[#allocation34_spill] sm:$0xff] %v7947_v2  ;;  %v773_v2 = vmax.f32 %v769_v58, %v7901_v7 }
 0x255   : > { %v7919_v16 = vpop.f32.mrf.mxu1  ;;  %v777_v39 = vmax.f32 %v773_v2, %v7913_v13 }
 0x256   : > { %v7968_v41 = vpop.trf.xlu0  ;;  %v779_v36 = vmax.f32 %v775_v50, %v7919_v16 }
 0x257   : > { %v7921_v18 = vpop.f32.mrf.mxu1  ;;  %11146 = vst [vmem:[#allocation35_spill] sm:$0xff] %v7968_v41 }
 0x258   : > { %v778_v56 = vmax.f32 %v774_v49, %v7921_v18 }
 0x259   : > { %v7925_v21 = vpop.f32.mrf.mxu1 }
 0x25a   : > { %v781_v53 = vmax.f32 %v777_v39, %v7925_v21  ;;  %v7988_v27 = vpop.trf.xlu0 }
 0x25b   : > { %v7927_v54 = vpop.f32.mrf.mxu1  ;;  %11147 = vst [vmem:[#allocation36_spill] sm:$0xff] %v7988_v27 }
 0x25c   : > { %v780_v34 = vmax.f32 %v776_v46, %v7927_v54 }
 0x25d   : > { %v7929_v55 = vpop.f32.mrf.mxu1 }
 0x25e   : > { %v783_v58 = vmax.f32 %v779_v36, %v7929_v55  ;;  %v7999_v48 = vpop.trf.xlu0 }
 0x25f   : > { %v7933_v59 = vpop.f32.mrf.mxu1  ;;  %11148 = vst [vmem:[#allocation37_spill] sm:$0xff] %v7999_v48 }
 0x260   : > { %v782_v52 = vmax.f32 %v778_v56, %v7933_v59 }
 0x261   : > { %v7935_v1 = vpop.f32.mrf.mxu1 }
 0x262   : > { %v785_v2 = vmax.f32 %v781_v53, %v7935_v1 }
 0x263   : > { %v7937_v14 = vpop.f32.mrf.mxu1 }
 0x264   : > { %v784_v11 = vmax.f32 %v780_v34, %v7937_v14 }
 0x265   : > { %v7941_v8 = vpop.f32.mrf.mxu1 }
 0x266   : > { %v787_v50 = vmax.f32 %v783_v58, %v7941_v8 }
 0x267   : > { %v7943_v5 = vpop.f32.mrf.mxu1 }
 0x268   : > { %v786_v49 = vmax.f32 %v782_v52, %v7943_v5 }
 0x269   : > { %v7945_v20 = vpop.f32.mrf.mxu1 }
 0x26a   : > { %v789_v36 = vmax.f32 %v785_v2, %v7945_v20 }
 0x26b   : > { %v7951_v57 = vpop.f32.mrf.mxu1 }
 0x26c   : > { %v788_v46 = vmax.f32 %v784_v11, %v7951_v57 }
 0x26d   : > { %v7960_v51 = vpop.f32.mrf.mxu1 }
 0x26e   : > { %v791_v39 = vmax.f32 %v787_v50, %v7960_v51  ;;  %v8001_v50 = vpop.trf.xlu0 }
 0x26f   : > { %v7966_v44 = vpop.f32.mrf.mxu1  ;;  %11149 = vst [vmem:[#allocation38_spill] sm:$0xff] %v8001_v50 }
 0x270   : > { %v790_v34 = vmax.f32 %v786_v49, %v7966_v44 }
 0x271   : > { %v7974_v31 = vpop.f32.mrf.mxu1 }
 0x272   : > { %v793_v53 = vmax.f32 %v789_v36, %v7974_v31  ;;  %v8003_v43 = vpop.trf.xlu0 }
 0x273   : > { %v7980_v29 = vpop.f32.mrf.mxu1  ;;  %11150 = vst [vmem:[#allocation39_spill] sm:$0xff] %v8003_v43 }
 0x274   : > { %v792_v56 = vmax.f32 %v788_v46, %v7980_v29 }
 0x275   : > { %v7986_v41 = vpop.f32.mrf.mxu1 }
 0x276   : > { %v795_v58 = vmax.f32 %v791_v39, %v7986_v41  ;;  %v796_v11 = vmax.f32 %v792_v56, %v793_v53  ;;  %v8007_v36 = vpop.trf.xlu0 }
 0x277   : > { %v7994_v25 = vpop.f32.mrf.mxu1  ;;  %11151 = vst [vmem:[#allocation40_spill] sm:$0xff] %v8007_v36 }
 0x278   : > { %v794_v52 = vmax.f32 %v790_v34, %v7994_v25 }
 0x27a   : > { %v797_v23 = vmax.f32 %v794_v52, %v795_v58 }
 0x27c   : > { %v798_v27 = vmax.f32 %v796_v11, %v797_v23 }
 0x27e   : > { %v799_v2 = vrot.slane %v798_v27, 4 }
 0x280   : > { %v800_v47 = vmax.f32 %v798_v27, %v799_v2 }
 0x282   : > { %v801_v49 = vrot.slane %v800_v47, 2 }
 0x284   : > { %v802_v45 = vmax.f32 %v800_v47, %v801_v49 }
 0x286   : > { %v803_v46 = vrot.slane %v802_v45, 1 }
 0x288   : > { %v8005_v42 = vmax.f32 %v802_v45, %v803_v46 }
 0x28a   : > { %v805_v39 = vsub.f32 %v7883_v61, %v8005_v42  ;;  %v806_v34 = vsub.f32 %v7881_v60, %v8005_v42  ;;  %v807_v23 = vsub.f32 %v7887_v63, %v8005_v42  ;;  %v808_v27 = vsub.f32 %v7885_v62, %v8005_v42  ;;  %v8021_v61 = vpop.trf.xlu0  ;;  %v354_v62 = vpop.f32.mrf.mxu0 }
 0x28b   : > { %v809_v47 = vsub.f32 %v7893_v3, %v8005_v42  ;;  %v810_v58 = vsub.f32 %v7889_v0, %v8005_v42  ;;  %11152 = vst [vmem:[#allocation41_spill] sm:$0xff] %v8021_v61  ;;  %v811_v60 = vsub.f32 %v7899_v6, %v8005_v42  ;;  %v812_v3 = vsub.f32 %v7895_v4, %v8005_v42 }
 0x28c   : > { %v837_v56 = vmul.f32 1.442695, %v805_v39  ;;  %v839_v45 = vmul.f32 1.442695, %v806_v34  ;;  %v841_v53 = vmul.f32 1.442695, %v807_v23  ;;  %v813_v2 = vsub.f32 %v7905_v9, %v8005_v42  ;;  %v356_v46 = vpop.f32.mrf.mxu0 }
 0x28d   : > { %v843_v52 = vmul.f32 1.442695, %v808_v27  ;;  %v845_v63 = vmul.f32 1.442695, %v809_v47  ;;  %v847_v11 = vmul.f32 1.442695, %v810_v58  ;;  %v814_v39 = vsub.f32 %v7901_v7, %v8005_v42 }
 0x28e   : > { %7103 = vpow2.f32 %v837_v56  ;;  %v849_v0 = vmul.f32 1.442695, %v811_v60  ;;  %v851_v6 = vmul.f32 1.442695, %v812_v3  ;;  %v815_v23 = vsub.f32 %v7911_v12, %v8005_v42 }
 0x28f   : > { %7105 = vpow2.f32 %v839_v45  ;;  %v853_v4 = vmul.f32 1.442695, %v813_v2  ;;  %v816_v9 = vsub.f32 %v7907_v10, %v8005_v42  ;;  %v855_v47 = vmul.f32 1.442695, %v814_v39 }
 0x290   : > { %7107 = vpow2.f32 %v841_v53  ;;  %v817_v7 = vsub.f32 %v7917_v15, %v8005_v42  ;;  %v857_v12 = vmul.f32 1.442695, %v815_v23  ;;  %v818_v53 = vsub.f32 %v7913_v13, %v8005_v42 }
 0x291   : > { %7109 = vpow2.f32 %v843_v52  ;;  %v859_v52 = vmul.f32 1.442695, %v816_v9  ;;  %v822_v9 = vsub.f32 %v7925_v21, %v8005_v42 }
 0x292   : > { %7111 = vpow2.f32 %v845_v63  ;;  %v861_v3 = vmul.f32 1.442695, %v817_v7 }
 0x293   : > { %7113 = vpow2.f32 %v847_v11 }
 0x294   : > { %7115 = vpow2.f32 %v849_v0 }
 0x295   : > { %7117 = vpow2.f32 %v851_v6 }
 0x296   : > { %v256_v49 = vpop.permute.xlu0 %255  ;;  %7119 = vpow2.f32 %v853_v4  ;;  %v821_v4 = vsub.f32 %v7927_v54, %v8005_v42  ;;  %v836_v54 = vsub.f32 %v7986_v41, %v8005_v42 }
 0x297   : > { %v8031_v34 = vadd.f32 %v354_v62, %v256_v49  ;;  %v8035_v27 = vadd.f32 %v356_v46, %v256_v49  ;;  %7121 = vpow2.f32 %v855_v47  ;;  %v819_v62 = vsub.f32 %v7921_v18, %v8005_v42 }
 0x298   : > { %7123 = vpow2.f32 %v857_v12  ;;  %v820_v49 = vsub.f32 %v7919_v16, %v8005_v42  ;;  %v863_v46 = vmul.f32 1.442695, %v818_v53  ;;  %v869_v41 = vmul.f32 1.442695, %v821_v4 }
 0x299   : > { %11153 = vst [vmem:[#allocation42_spill] sm:$0xff] %v8031_v34  ;;  %11154 = vst [vmem:[#allocation43_spill] sm:$0xff] %v8035_v27  ;;  %2924 = vxpose.xlu1.b32.start.end [1/1] (short) %v8031_v34, 128  ;;  %2956 = vxpose.xlu0.b32.start.end [1/1] (short) %v8035_v27, 128  ;;  %7125 = vpow2.f32 %v859_v52  ;;  %v865_v47 = vmul.f32 1.442695, %v819_v62  ;;  %v824_v52 = vsub.f32 %v7929_v55, %v8005_v42 }
 0x29a   : > { %7127 = vpow2.f32 %v861_v3  ;;  %v867_v21 = vmul.f32 1.442695, %v820_v49  ;;  %v835_v55 = vsub.f32 %v7994_v25, %v8005_v42 }
 0x29b   : > { %v8043_v56 = vpop.eup %7103  ;;  %7129 = vpow2.f32 %v863_v46 }
 0x29c   : > { %v8045_v45 = vpop.eup %7105  ;;  %v939_v58 = vmul.f32 %v8043_v56, %v8043_v56  ;;  %7131 = vpow2.f32 %v865_v47 }
 0x29d   : > { %v8051_v10 = vpop.eup %7107  ;;  %v901_v60 = vadd.f32 %v8045_v45, %v8043_v56  ;;  %v940_v15 = vmul.f32 %v8045_v45, %v8045_v45  ;;  %7133 = vpow2.f32 %v867_v21 }
 0x29e   : > { %v8057_v63 = vpop.eup %7109  ;;  %v941_v11 = vmul.f32 %v8051_v10, %v8051_v10  ;;  %7135 = vpow2.f32 %v869_v41  ;;  %v831_v41 = vsub.f32 %v7966_v44, %v8005_v42 }
 0x29f   : > { %v902_v13 = vadd.f32 %v8051_v10, %v901_v60  ;;  %v971_v2 = vadd.f32 %v940_v15, %v939_v58  ;;  %v8064_v0 = vpop.eup %7111  ;;  %v942_v18 = vmul.f32 %v8057_v63, %v8057_v63  ;;  %v823_v58 = vsub.f32 %v7933_v59, %v8005_v42 }
 0x2a0   : > { %v8071_v23 = vpop.eup %7113  ;;  %v943_v7 = vmul.f32 %v8064_v0, %v8064_v0  ;;  %v826_v59 = vsub.f32 %v7935_v1, %v8005_v42  ;;  %v871_v1 = vmul.f32 1.442695, %v822_v9 }
 0x2a1   : > { %v903_v39 = vadd.f32 %v8057_v63, %v902_v13  ;;  %v972_v6 = vadd.f32 %v971_v2, %v941_v11  ;;  %v8080_v53 = vpop.eup %7115  ;;  %v944_v15 = vmul.f32 %v8071_v23, %v8071_v23  ;;  %v825_v13 = vsub.f32 %v7937_v14, %v8005_v42 }
 0x2a2   : > { %v8091_v3 = vpop.eup %7117  ;;  %v945_v2 = vmul.f32 %v8080_v53, %v8080_v53  ;;  %v834_v14 = vsub.f32 %v7974_v31, %v8005_v42  ;;  %7137 = vpow2.f32 %v871_v1  ;;  %v830_v1 = vsub.f32 %v7945_v20, %v8005_v42 }
 0x2a3   : > { %v904_v16 = vadd.f32 %v8064_v0, %v903_v39  ;;  %v973_v12 = vadd.f32 %v972_v6, %v942_v18  ;;  %v8102_v46 = vpop.eup %7119  ;;  %v827_v39 = vsub.f32 %v7943_v5, %v8005_v42  ;;  %v899_v18 = vmul.f32 1.442695, %v836_v54 }
 0x2a4   : > { %v946_v6 = vmul.f32 %v8091_v3, %v8091_v3  ;;  %v8111_v47 = vpop.eup %7121  ;;  %v833_v5 = vsub.f32 %v7980_v29, %v8005_v42  ;;  %v947_v9 = vmul.f32 %v8102_v46, %v8102_v46 }
 0x2a5   : > { %v905_v60 = vadd.f32 %v8071_v23, %v904_v16  ;;  %v974_v62 = vadd.f32 %v973_v12, %v943_v7  ;;  %v828_v16 = vsub.f32 %v7941_v8, %v8005_v42  ;;  %v873_v7 = vmul.f32 1.442695, %v823_v58  ;;  %v8120_v21 = vpop.eup %7123 }
 0x2a6   : > { %v897_v12 = vmul.f32 1.442695, %v835_v55  ;;  %v895_v8 = vmul.f32 1.442695, %v834_v14  ;;  %7139 = vpow2.f32 %v899_v18  ;;  %v948_v58 = vmul.f32 %v8111_v47, %v8111_v47  ;;  %v8127_v55 = vpop.eup %7125 }
 0x2a7   : > { %v906_v11 = vadd.f32 %v8080_v53, %v905_v60  ;;  %v975_v49 = vadd.f32 %v974_v62, %v944_v15  ;;  %v832_v60 = vsub.f32 %v7960_v51, %v8005_v42  ;;  %v875_v15 = vmul.f32 1.442695, %v824_v52  ;;  %v8134_v14 = vpop.eup %7127 }
 0x2a8   : > { %7141 = vpow2.f32 %v873_v7  ;;  %v949_v52 = vmul.f32 %v8120_v21, %v8120_v21  ;;  %v879_v18 = vmul.f32 1.442695, %v826_v59  ;;  %v881_v7 = vmul.f32 1.442695, %v827_v39 }
 0x2a9   : > { %v907_v25 = vadd.f32 %v8091_v3, %v906_v11  ;;  %v976_v4 = vadd.f32 %v975_v49, %v945_v2  ;;  %v877_v11 = vmul.f32 1.442695, %v825_v13  ;;  %v893_v2 = vmul.f32 1.442695, %v833_v5 }
 0x2aa   : > { %7143 = vpow2.f32 %v897_v12  ;;  %v950_v13 = vmul.f32 %v8127_v55, %v8127_v55  ;;  %v829_v5 = vsub.f32 %v7951_v57, %v8005_v42  ;;  %v889_v12 = vmul.f32 1.442695, %v831_v41 }
 0x2ab   : > { %v908_v31 = vadd.f32 %v8102_v46, %v907_v25  ;;  %v977_v54 = vadd.f32 %v976_v4, %v946_v6  ;;  %7145 = vpow2.f32 %v875_v15  ;;  %v891_v25 = vmul.f32 1.442695, %v832_v60  ;;  %v7130_v4 = vpop.eup %7129  ;;  %v8146_v15 = vpop.trf.xlu1 }
 0x2ac   : > { %7147 = vpow2.f32 %v895_v8  ;;  %v951_v59 = vmul.f32 %v8134_v14, %v8134_v14  ;;  %v887_v60 = vmul.f32 1.442695, %v830_v1  ;;  %11155 = vst [vmem:[#allocation44_spill] sm:$0xff] %v8146_v15  ;;  %v885_v39 = vmul.f32 1.442695, %v829_v5 }
 0x2ad   : > { %v909_v29 = vadd.f32 %v8111_v47, %v908_v31  ;;  %v978_v62 = vadd.f32 %v977_v54, %v947_v9  ;;  %7149 = vpow2.f32 %v877_v11  ;;  %v7132_v9 = vpop.eup %7131  ;;  %v883_v54 = vmul.f32 1.442695, %v828_v16 }
 0x2ae   : > { %7151 = vpow2.f32 %v893_v2  ;;  %v7134_v57 = vpop.eup %7133 }
 0x2af   : > { %v910_v51 = vadd.f32 %v8120_v21, %v909_v29  ;;  %v979_v49 = vadd.f32 %v978_v62, %v948_v58  ;;  %7153 = vpow2.f32 %v879_v18  ;;  %v952_v29 = vmul.f32 %v7130_v4, %v7130_v4  ;;  %v8148_v11 = vpop.eup %7135  ;;  %v8154_v1 = vpop.trf.xlu1 }
 0x2b0   : > { %7155 = vpow2.f32 %v891_v25  ;;  %v953_v62 = vmul.f32 %v7132_v9, %v7132_v9  ;;  %v8150_v2 = vpop.eup %7137  ;;  %11156 = vst [vmem:[#allocation45_spill] sm:$0xff] %v8154_v1 }
 0x2b1   : > { %v911_v44 = vadd.f32 %v8127_v55, %v910_v51  ;;  %v980_v6 = vadd.f32 %v979_v49, %v949_v52  ;;  %7157 = vpow2.f32 %v881_v7  ;;  %v954_v51 = vmul.f32 %v7134_v57, %v7134_v57 }
 0x2b2   : > { %7159 = vpow2.f32 %v889_v12  ;;  %v956_v12 = vmul.f32 %v8150_v2, %v8150_v2 }
 0x2b3   : > { %v912_v20 = vadd.f32 %v8134_v14, %v911_v44  ;;  %v981_v31 = vadd.f32 %v980_v6, %v950_v13  ;;  %7161 = vpow2.f32 %v883_v54  ;;  %v8152_v49 = vpop.eup %7139  ;;  %v955_v44 = vmul.f32 %v8148_v11, %v8148_v11 }
 0x2b4   : > { %7163 = vpow2.f32 %v887_v60  ;;  %6164 = vmatprep.subr.mxu0 %v8152_v49 }
 0x2b5   : > { %v913_v8 = vadd.f32 %v7130_v4, %v912_v20  ;;  %v982_v42 = vadd.f32 %v981_v31, %v951_v59  ;;  %v8156_v18 = vpop.eup %7141  ;;  %7165 = vpow2.f32 %v885_v39  ;;  %6165 = vmatpush3.msra.mxu0 %v7134_v57 }
 0x2b6   : > { %v957_v60 = vmul.f32 %v8156_v18, %v8156_v18 }
 0x2b7   : > { %v914_v58 = vadd.f32 %v7132_v9, %v913_v8  ;;  %v983_v41 = vadd.f32 %v982_v42, %v952_v29  ;;  %v8162_v6 = vpop.eup %7143  ;;  %v8176_v42 = vpop.trf.xlu1 }
 0x2b8   : > { %v8164_v5 = vpop.eup %7145  ;;  %6166 = vmatprep.subr.mxu0 %v8162_v6  ;;  %11157 = vst [vmem:[#allocation46_spill] sm:$0xff] %v8176_v42 }
 0x2b9   : > { %v915_v16 = vadd.f32 %v7134_v57, %v914_v58  ;;  %v984_v52 = vadd.f32 %v983_v41, %v953_v62  ;;  %v8170_v59 = vpop.eup %7147  ;;  %6167 = vmatpush3.msra.mxu0 %v7132_v9  ;;  %v958_v58 = vmul.f32 %v8164_v5, %v8164_v5 }
 0x2ba   : > { %v7150_v31 = vpop.eup %7149  ;;  %6168 = vmatprep.subr.mxu0 %v8170_v59 }
 0x2bb   : > { %v916_v25 = vadd.f32 %v8148_v11, %v915_v16  ;;  %v985_v13 = vadd.f32 %v984_v52, %v954_v51  ;;  %v7152_v29 = vpop.eup %7151  ;;  %6169 = vmatpush3.msra.mxu0 %v7130_v4  ;;  %v959_v51 = vmul.f32 %v7150_v31, %v7150_v31 }
 0x2bc   : > { %v7154_v57 = vpop.eup %7153  ;;  %6170 = vmatprep.subr.mxu0 %v7152_v29 }
 0x2bd   : > { %v917_v7 = vadd.f32 %v8150_v2, %v916_v25  ;;  %v986_v20 = vadd.f32 %v985_v13, %v955_v44  ;;  %v7156_v62 = vpop.eup %7155  ;;  %6171 = vmatpush3.msra.mxu0 %v8134_v14  ;;  %v960_v13 = vmul.f32 %v7154_v57, %v7154_v57 }
 0x2be   : > { %v7158_v41 = vpop.eup %7157  ;;  %6172 = vmatprep.subr.mxu0 %v7156_v62 }
 0x2bf   : > { %v918_v54 = vadd.f32 %v8156_v18, %v917_v7  ;;  %v987_v8 = vadd.f32 %v986_v20, %v956_v12  ;;  %v7160_v25 = vpop.eup %7159  ;;  %6173 = vmatpush3.msra.mxu0 %v8127_v55  ;;  %v8184_v20 = vpop.trf.xlu1  ;;  %v961_v14 = vmul.f32 %v7158_v41, %v7158_v41 }
 0x2c0   : > { %v7162_v4 = vpop.eup %7161  ;;  %6174 = vmatprep.subr.mxu0 %v7160_v25  ;;  %11158 = vst [vmem:[#allocation47_spill] sm:$0xff] %v8184_v20 }
 0x2c1   : > { %v919_v39 = vadd.f32 %v8164_v5, %v918_v54  ;;  %v988_v9 = vadd.f32 %v987_v8, %v957_v60  ;;  %v7164_v12 = vpop.eup %7163  ;;  %6175 = vmatpush3.msra.mxu0 %v8120_v21  ;;  %v962_v55 = vmul.f32 %v7162_v4, %v7162_v4 }
 0x2c2   : > { %6176 = vmatprep.subr.mxu0 %v7164_v12  ;;  %v7166_v8 = vpop.eup %7165 }
 0x2c3   : > { %v920_v16 = vadd.f32 %v7150_v31, %v919_v39  ;;  %v989_v52 = vadd.f32 %v988_v9, %v958_v58  ;;  %6177 = vmatpush3.msra.mxu0 %v8111_v47  ;;  %v8189_v21 = vpop.trf.xlu1 }
 0x2c4   : > { %6178 = vmatprep.subr.mxu0 %v7166_v8  ;;  %11159 = vst [vmem:[#allocation48_spill] sm:$0xff] %v8189_v21 }
 0x2c5   : > { %v921_v44 = vadd.f32 %v7154_v57, %v920_v16  ;;  %v990_v7 = vadd.f32 %v989_v52, %v959_v51  ;;  %6179 = vmatpush3.msra.mxu0 %v8102_v46  ;;  %v963_v16 = vmul.f32 %v7166_v8, %v7166_v8 }
 0x2c6   : > { %6180 = vmatprep.subr.mxu0 %v7162_v4 }
 0x2c7   : > { %v922_v54 = vadd.f32 %v7158_v41, %v921_v44  ;;  %v991_v60 = vadd.f32 %v990_v7, %v960_v13  ;;  %6181 = vmatpush3.msra.mxu0 %v8091_v3  ;;  %v964_v44 = vmul.f32 %v7164_v12, %v7164_v12  ;;  %v965_v7 = vmul.f32 %v7160_v25, %v7160_v25  ;;  %v8194_v3 = vpop.trf.xlu1 }
 0x2c8   : > { %6182 = vmatprep.subr.mxu0 %v7158_v41  ;;  %11160 = vst [vmem:[#allocation49_spill] sm:$0xff] %v8194_v3  ;;  %v967_v41 = vmul.f32 %v7152_v29, %v7152_v29 }
 0x2c9   : > { %v923_v39 = vadd.f32 %v7162_v4, %v922_v54  ;;  %v992_v58 = vadd.f32 %v991_v60, %v961_v14  ;;  %6183 = vmatpush3.msra.mxu0 %v8080_v53  ;;  %v966_v4 = vmul.f32 %v7156_v62, %v7156_v62 }
 0x2ca   : > { %6184 = vmatprep.subr.mxu0 %v7154_v57 }
 0x2cb   : > { %v924_v9 = vadd.f32 %v7166_v8, %v923_v39  ;;  %v993_v51 = vadd.f32 %v992_v58, %v962_v55  ;;  %6185 = vmatpush3.msra.mxu0 %v8071_v23  ;;  %v968_v23 = vmul.f32 %v8170_v59, %v8170_v59  ;;  %v11179_v8 = vld [vmem:[#allocation8_spill] sm:$0xff]  ;;  %v11180_v39 = vld [vmem:[#allocation9_spill] sm:$0xff]  ;;  %v11182_v58 = vld [vmem:[#allocation10_spill] sm:$0xff] }
 0x2cc   : > { %6186 = vmatprep.subr.mxu0 %v7150_v31 }
 0x2cd   : > { %v925_v52 = vadd.f32 %v7164_v12, %v924_v9  ;;  %v994_v13 = vadd.f32 %v993_v51, %v963_v16  ;;  %6187 = vmatpush3.msra.mxu0 %v8064_v0  ;;  %v11183_v9 = vld [vmem:[#allocation11_spill] sm:$0xff]  ;;  %v11185_v51 = vld [vmem:[#allocation14_spill] sm:$0xff] }
 0x2ce   : > { %6188 = vmatprep.subr.mxu0 %v8164_v5  ;;  %v969_v5 = vmul.f32 %v8162_v6, %v8162_v6 }
 0x2cf   : > { %v926_v47 = vadd.f32 %v7160_v25, %v925_v52  ;;  %v995_v54 = vadd.f32 %v994_v13, %v964_v44  ;;  %6189 = vmatpush3.msra.mxu0 %v8057_v63  ;;  %v8208_v63 = vpop.trf.xlu1  ;;  %v11178_v25 = vld [vmem:[#allocation7_spill] sm:$0xff]  ;;  %v11186_v52 = vld [vmem:[#allocation16_spill] sm:$0xff] }
 0x2d0   : > { %6190 = vmatprep.subr.mxu0 %v8156_v18  ;;  %11161 = vst [vmem:[#allocation50_spill] sm:$0xff] %v8208_v63  ;;  %v11187_v44 = vld [vmem:[#allocation19_spill] sm:$0xff]  ;;  %v11188_v13 = vld [vmem:[#allocation20_spill] sm:$0xff] }
 0x2d1   : > { %v927_v46 = vadd.f32 %v7156_v62, %v926_v47  ;;  %v996_v14 = vadd.f32 %v995_v54, %v965_v7  ;;  %6191 = vmatpush3.msra.mxu0 %v8051_v10  ;;  %v970_v10 = vmul.f32 %v8152_v49, %v8152_v49  ;;  %v11177_v62 = vld [vmem:[#allocation6_spill] sm:$0xff]  ;;  %v11190_v7 = vld [vmem:[#allocation21_spill] sm:$0xff] }
 0x2d2   : > { %6192 = vmatprep.subr.mxu0 %v8150_v2  ;;  %v11191_v54 = vld [vmem:[#allocation22_spill] sm:$0xff] }
 0x2d3   : > { %v928_v60 = vadd.f32 %v7152_v29, %v927_v46  ;;  %v997_v12 = vadd.f32 %v996_v14, %v966_v4  ;;  %6193 = vmatpush3.msra.mxu0 %v8045_v45  ;;  %v8223_v45 = vpop.trf.xlu1  ;;  %v11193_v4 = vld [vmem:[#allocation23_spill] sm:$0xff] }
 0x2d4   : > { %6194 = vmatprep.subr.mxu0 %v8148_v11  ;;  %11162 = vst [vmem:[#allocation51_spill] sm:$0xff] %v8223_v45  ;;  %v11174_v11 = vld [vmem:[#allocation4_spill] sm:$0xff] }
 0x2d5   : > { %v929_v53 = vadd.f32 %v8170_v59, %v928_v60  ;;  %v998_v31 = vadd.f32 %v997_v12, %v967_v41  ;;  %v1096_v59 = vmul.f32 0.35355338, %v7734_v19  ;;  %6195 = vmatpush3.msra.mxu0 %v8043_v56  ;;  %v11195_v60 = vld [vmem:[#allocation25_spill] sm:$0xff] }
 0x2d6   : > { %1088 = vmatmul.mubr.f32.vlgmr.msra.gmra.mxu0 %v7732_v17 }
 0x2d7   : > { %v930_v0 = vadd.f32 %v8162_v6, %v929_v53  ;;  %v999_v29 = vadd.f32 %v998_v31, %v968_v23  ;;  %6725 = vmatprep.subr.mxu0 %v1096_v59  ;;  %6727 = vmatprep.mubr.msk.f32.mxu0 %vm446_vm1, %v7743_v22  ;;  %v8233_v56 = vpop.trf.xlu1 }
 0x2d8   : > { %6726 = vmatpush3.msra.mxu0 %v1096_v59  ;;  %11163 = vst [vmem:[#allocation52_spill] sm:$0xff] %v8233_v56 }
 0x2d9   : > { %v8211_v18 = vadd.f32 %v8152_v49, %v930_v0  ;;  %v1000_v57 = vadd.f32 %v999_v29, %v969_v5  ;;  %v11175_v49 = vld [vmem:[#allocation5_spill] sm:$0xff] }
 0x2da   : > { %6728 = vmatmul.mubr.msk.f32.vlgmr.msra.gmra.mxu0 %vm446_vm1, %v7749_v24  ;;  %v232_v24 = vld [vmem:[%s10968_s2 + $0x18] sm:$0xff] }
 0x2db   : > { %v8219_v2 = vadd.f32 %v1000_v57, %v970_v10  ;;  %6730 = vmatprep.mubr.msk.f32.mxu0 %vm446_vm1, %v7755_v26  ;;  %v8239_v22 = vpop.trf.xlu1 }
 0x2dc   : > { %11164 = vst [vmem:[#allocation53_spill] sm:$0xff] %v8239_v22 }
 0x2de   : > { %6731 = vmatmul.mubr.msk.f32.gmra.mxu0 %vm446_vm1, %v7761_v28  ;;  %v11166_v28 = vld [vmem:[#allocation12_spill] sm:$0xff] }
 0x2df   : > { %6733 = vmatprep.mubr.msk.f32.mxu0 %vm446_vm1, %v7767_v30  ;;  %v8252_v26 = vpop.trf.xlu1  ;;  %v11167_v30 = vld [vmem:[#allocation13_spill] sm:$0xff] }
 0x2e0   : > { %11165 = vst [vmem:[#allocation54_spill] sm:$0xff] %v8252_v26 }
 0x2e2   : > { %6734 = vmatmul.mubr.msk.f32.gmra.mxu0 %vm446_vm1, %v7773_v32 }
 0x2e3   : > { %6736 = vmatprep.mubr.msk.f32.mxu0 %vm446_vm1, %v7777_v33  ;;  %v8258_v32 = vpop.trf.xlu1  ;;  %v11169_v33 = vld [vmem:[#allocation15_spill] sm:$0xff] }
 0x2e4   : > { %11168 = vst [vmem:[#allocation12_spill] sm:$0xff] %v8258_v32 }
 0x2e6   : > { %6737 = vmatmul.mubr.msk.f32.gmra.mxu0 %vm446_vm1, %v7783_v35  ;;  %v11170_v35 = vld [vmem:[#allocation17_spill] sm:$0xff] }
 0x2e7   : > { %6739 = vmatprep.mubr.msk.f32.mxu0 %vm446_vm1, %v7789_v37  ;;  %v11171_v37 = vld [vmem:[#allocation18_spill] sm:$0xff] }
 0x2ea   : > { %6740 = vmatmul.mubr.msk.f32.gmra.mxu0 %vm446_vm1, %v7793_v38  ;;  %v11172_v38 = vld [vmem:[#allocation3_spill] sm:$0xff] }
 0x2eb   : > { %6742 = vmatprep.mubr.msk.f32.mxu0 %vm446_vm1, %v7799_v40  ;;  %v8268_v40 = vpop.trf.xlu1 }
 0x2ec   : > { %11173 = vst [vmem:[#allocation13_spill] sm:$0xff] %v8268_v40 }
 0x2ee   : > { %6743 = vmatmul.mubr.msk.f32.gmra.mxu0 %vm446_vm1, %v11166_v28 }
 0x2ef   : > { %6745 = vmatprep.mubr.msk.f32.mxu0 %vm446_vm1, %v11167_v30  ;;  %v8274_v6 = vpop.trf.xlu1  ;;  %v360_v30 = vpop.f32.mrf.mxu0 }
 0x2f0   : > { %11176 = vst [vmem:[#allocation15_spill] sm:$0xff] %v8274_v6 }
 0x2f2   : > { %6746 = vmatmul.mubr.msk.f32.gmra.mxu0 %vm446_vm1, %v11169_v33  ;;  %v362_v33 = vpop.f32.mrf.mxu0 }
 0x2f3   : > { %260 = vperm.xlu1 %7102, %v232_v24   ;;  %6748 = vmatprep.mubr.msk.f32.mxu0 %vm446_vm1, %v11170_v35  ;;  %v8284_v55 = vpop.trf.xlu1 }
 0x2f4   : > { %11181 = vst [vmem:[#allocation17_spill] sm:$0xff] %v8284_v55 }
 0x2f6   : > { %6749 = vmatmul.mubr.msk.f32.gmra.mxu0 %vm446_vm1, %v11171_v37 }
 0x2f7   : > { %6751 = vmatprep.mubr.msk.f32.mxu0 %vm446_vm1, %v11172_v38  ;;  %v8290_v16 = vpop.trf.xlu1 }
 0x2f8   : > { %11184 = vst [vmem:[#allocation18_spill] sm:$0xff] %v8290_v16 }
 0x2fa   : > { %6752 = vmatmul.mubr.msk.f32.gmra.mxu0 %vm446_vm1, %v11174_v11 }
 0x2fb   : > { %6754 = vmatprep.mubr.msk.f32.mxu0 %vm446_vm1, %v11175_v49 }
 0x2fe   : > { %6755 = vmatmul.mubr.msk.f32.gmra.mxu0 %vm446_vm1, %v11177_v62 }
 0x2ff   : > { %6757 = vmatprep.mubr.msk.f32.mxu0 %vm446_vm1, %v11178_v25 }
 0x302   : > { %6758 = vmatmul.mubr.msk.f32.gmra.mxu0 %vm446_vm1, %v11179_v8 }
 0x303   : > { %6760 = vmatprep.mubr.msk.f32.mxu0 %vm446_vm1, %v11180_v39 }
 0x306   : > { %6761 = vmatmul.mubr.msk.f32.gmra.mxu0 %vm446_vm1, %v11182_v58 }
 0x307   : > { %6763 = vmatprep.mubr.msk.f32.mxu0 %vm446_vm1, %v11183_v9 }
 0x30a   : > { %6764 = vmatmul.mubr.msk.f32.gmra.mxu0 %vm446_vm1, %v11185_v51 }
 0x30b   : > { %6766 = vmatprep.mubr.msk.f32.mxu0 %vm446_vm1, %v11186_v52 }
 0x30e   : > { %6767 = vmatmul.mubr.msk.f32.gmra.mxu0 %vm446_vm1, %v11187_v44 }
 0x30f   : > { %6769 = vmatprep.mubr.msk.f32.mxu0 %vm446_vm1, %v11188_v13 }
 0x312   : > { %6770 = vmatmul.mubr.msk.f32.gmra.mxu0 %vm446_vm1, %v11190_v7 }
 0x313   : > { %6772 = vmatprep.mubr.msk.f32.mxu0 %vm446_vm1, %v11191_v54 }
 0x315   : > { %v8300_v47 = vpop.trf.xlu1  ;;  %v8359_v9 = vpop.trf.xlu0 }
 0x316   : > { %11189 = vst [vmem:[#allocation3_spill] sm:$0xff] %v8300_v47  ;;  %6773 = vmatmul.mubr.msk.f32.gmra.mxu0 %vm446_vm1, %v11193_v4  ;;  %11211 = vst [vmem:[#allocation57_spill] sm:$0xff] %v8359_v9 }
 0x317   : > { %2357 = vmatprep.mubr.f32.mxu0 %v11195_v60 }
 0x319   : > { %v8306_v46 = vpop.trf.xlu1  ;;  %v8365_v44 = vpop.trf.xlu0 }
 0x31a   : > { %11192 = vst [vmem:[#allocation4_spill] sm:$0xff] %v8306_v46  ;;  %11212 = vst [vmem:[#allocation58_spill] sm:$0xff] %v8365_v44 }
 0x31d   : > { %v8310_v14 = vpop.trf.xlu1  ;;  %v8371_v54 = vpop.trf.xlu0 }
 0x31e   : > { %11194 = vst [vmem:[#allocation5_spill] sm:$0xff] %v8310_v14  ;;  %11213 = vst [vmem:[#allocation59_spill] sm:$0xff] %v8371_v54 }
 0x321   : > { %v8313_v41 = vpop.trf.xlu1 }
 0x322   : > { %11196 = vst [vmem:[#allocation6_spill] sm:$0xff] %v8313_v41 }
 0x325   : > { %v8315_v12 = vpop.trf.xlu1 }
 0x326   : > { %11197 = vst [vmem:[#allocation7_spill] sm:$0xff] %v8315_v12 }
 0x329   : > { %v8317_v53 = vpop.trf.xlu1 }
 0x32a   : > { %11198 = vst [vmem:[#allocation8_spill] sm:$0xff] %v8317_v53 }
 0x32d   : > { %v8319_v23 = vpop.trf.xlu1 }
 0x32e   : > { %11199 = vst [vmem:[#allocation9_spill] sm:$0xff] %v8319_v23  ;;  %v1002_v23 = vrot.slane %v8219_v2, 4 }
 0x331   : > { %v8321_v31 = vpop.trf.xlu1 }
 0x332   : > { %11200 = vst [vmem:[#allocation10_spill] sm:$0xff] %v8321_v31 }
 0x335   : > { %v8323_v0 = vpop.trf.xlu1 }
 0x336   : > { %11201 = vst [vmem:[#allocation11_spill] sm:$0xff] %v8323_v0 }
 0x339   : > { %v8325_v5 = vpop.trf.xlu1 }
 0x33a   : > { %11202 = vst [vmem:[#allocation14_spill] sm:$0xff] %v8325_v5 }
 0x33d   : > { %v8327_v29 = vpop.trf.xlu1 }
 0x33e   : > { %11203 = vst [vmem:[#allocation16_spill] sm:$0xff] %v8327_v29 }
 0x341   : > { %v8329_v59 = vpop.trf.xlu1 }
 0x342   : > { %11204 = vst [vmem:[#allocation19_spill] sm:$0xff] %v8329_v59 }
 0x345   : > { %v8331_v10 = vpop.trf.xlu1 }
 0x346   : > { %11205 = vst [vmem:[#allocation20_spill] sm:$0xff] %v8331_v10 }
 0x349   : > { %v8333_v57 = vpop.trf.xlu1 }
 0x34a   : > { %11206 = vst [vmem:[#allocation21_spill] sm:$0xff] %v8333_v57 }
 0x34d   : > { %v8335_v24 = vpop.trf.xlu1 }
 0x34e   : > { %11207 = vst [vmem:[#allocation22_spill] sm:$0xff] %v8335_v24 }
 0x351   : > { %v8337_v28 = vpop.trf.xlu1 }
 0x352   : > { %11208 = vst [vmem:[#allocation23_spill] sm:$0xff] %v8337_v28 }
 0x36e   : > { %v261_v35 = vpop.permute.xlu1 %260 }
 0x36f   : > { %v8339_v37 = vadd.f32 %v360_v30, %v261_v35  ;;  %v8341_v38 = vadd.f32 %v362_v33, %v261_v35  ;;  %v932_v30 = vrot.slane %v8211_v18, 4  ;;  %v8378_v35 = vpop.trf.xlu0 }
 0x370   : > { %11214 = vst [vmem:[#allocation60_spill] sm:$0xff] %v8378_v35 }
 0x371   : > { %11209 = vst [vmem:[#allocation55_spill] sm:$0xff] %v8339_v37  ;;  %11210 = vst [vmem:[#allocation56_spill] sm:$0xff] %v8341_v38  ;;  %4226 = vxpose.xlu1.b32.start.end [1/1] (short) %v8341_v38, 128  ;;  %4194 = vxpose.xlu0.b32.start.end [1/1] (short) %v8339_v37, 128  ;;  %v933_v28 = vadd.f32 %v932_v30, %v8211_v18 }
 0x373   : > { %v8387_v57 = vpop.trf.xlu0  ;;  %v934_v10 = vrot.slane %v933_v28, 2 }
 0x374   : > { %11215 = vst [vmem:[#allocation61_spill] sm:$0xff] %v8387_v57 }
 0x375   : > { %v935_v29 = vadd.f32 %v934_v10, %v933_v28  ;;  %v1003_v10 = vadd.f32 %v1002_v23, %v8219_v2 }
 0x377   : > { %v8395_v0 = vpop.trf.xlu0  ;;  %v936_v31 = vrot.slane %v935_v29, 1  ;;  %v1004_v46 = vrot.slane %v1003_v10, 2 }
 0x378   : > { %11216 = vst [vmem:[#allocation62_spill] sm:$0xff] %v8395_v0 }
 0x379   : > { %v937_v53 = vadd.f32 %v936_v31, %v935_v29  ;;  %v11219_v29 = vld [vmem:[#allocation24_spill] sm:$0xff]  ;;  %v1005_v55 = vadd.f32 %v1004_v46, %v1003_v10 }
 0x37a   : > { %v368_v16 = vadd.f32 %v11195_v60, %v11219_v29 }
 0x37b   : > { %v8404_v57 = vpop.trf.xlu0  ;;  %7167 = vrcp.f32 %v937_v53  ;;  %v1006_v22 = vrot.slane %v1005_v55, 1 }
 0x37c   : > { %11217 = vst [vmem:[#allocation63_spill] sm:$0xff] %v8404_v57 }
 0x37f   : > { %v8413_v0 = vpop.trf.xlu0 }
 0x380   : > { %11218 = vst [vmem:[#allocation64_spill] sm:$0xff] %v8413_v0 }
 0x383   : > { %v8432_v6 = vpop.trf.xlu0 }
 0x384   : > { %11220 = vst [vmem:[#allocation24_spill] sm:$0xff] %v8432_v6 }
 0x396   : > { %v8345_v11 = vpop.f32.mrf.mxu0 }
 0x398   : > { %v8347_v49 = vpop.f32.mrf.mxu0 }
 0x39a   : > { %v8349_v62 = vpop.f32.mrf.mxu0 }
 0x39c   : > { %v8351_v25 = vpop.f32.mrf.mxu0 }
 0x39e   : > { %v8353_v8 = vpop.f32.mrf.mxu0 }
 0x3a0   : > { %v8355_v39 = vpop.f32.mrf.mxu0 }
 0x3a2   : > { %v8357_v58 = vpop.f32.mrf.mxu0 }
 0x3a3   : > { %v1323_v2 = vmax.f32 %v8349_v62, %v8357_v58 }
 0x3a4   : > { %v8361_v51 = vpop.f32.mrf.mxu0 }
 0x3a5   : > { %v1322_v57 = vmax.f32 %v8351_v25, %v8361_v51 }
 0x3a6   : > { %v8363_v52 = vpop.f32.mrf.mxu0 }
 0x3a7   : > { %v1325_v53 = vmax.f32 %v8353_v8, %v8363_v52 }
 0x3a8   : > { %v8367_v13 = vpop.f32.mrf.mxu0 }
 0x3a9   : > { %v1324_v23 = vmax.f32 %v8355_v39, %v8367_v13 }
 0x3aa   : > { %v8369_v7 = vpop.f32.mrf.mxu0 }
 0x3ab   : > { %v1327_v32 = vmax.f32 %v1323_v2, %v8369_v7  ;;  %v365_v2 = vadd.f32 %v7734_v19, %v7732_v17 }
 0x3ac   : > { %v8373_v4 = vpop.f32.mrf.mxu0 }
 0x3ad   : > { %v1326_v0 = vmax.f32 %v1322_v57, %v8373_v4 }
 0x3ae   : > { %v8376_v33 = vpop.f32.mrf.mxu0 }
 0x3af   : > { %v1329_v46 = vmax.f32 %v1325_v53, %v8376_v33  ;;  %v8450_v53 = vpop.eup %7167 }
 0x3b0   : > { %v8380_v9 = vpop.f32.mrf.mxu0 }
 0x3b1   : > { %v1328_v10 = vmax.f32 %v1324_v23, %v8380_v9 }
 0x3b2   : > { %v8383_v24 = vpop.f32.mrf.mxu0 }
 0x3b3   : > { %v1331_v56 = vmax.f32 %v1327_v32, %v8383_v24 }
 0x3b4   : > { %v8385_v44 = vpop.f32.mrf.mxu0 }
 0x3b5   : > { %v1330_v60 = vmax.f32 %v1326_v0, %v8385_v44 }
 0x3b6   : > { %v8389_v54 = vpop.f32.mrf.mxu0 }
 0x3b7   : > { %v1333_v57 = vmax.f32 %v1329_v46, %v8389_v54  ;;  %v8456_v46 = vpop.trf.xlu0 }
 0x3b8   : > { %v8391_v59 = vpop.f32.mrf.mxu0  ;;  %11221 = vst [vmem:[#allocation65_spill] sm:$0xff] %v8456_v46 }
 0x3b9   : > { %v1332_v6 = vmax.f32 %v1328_v10, %v8391_v59 }
 0x3ba   : > { %v8393_v5 = vpop.f32.mrf.mxu0 }
 0x3bb   : > { %v1335_v0 = vmax.f32 %v1331_v56, %v8393_v5  ;;  %v8478_v46 = vpop.trf.xlu0 }
 0x3bc   : > { %v8397_v35 = vpop.f32.mrf.mxu0  ;;  %11222 = vst [vmem:[#allocation66_spill] sm:$0xff] %v8478_v46 }
 0x3bd   : > { %v1334_v45 = vmax.f32 %v1330_v60, %v8397_v35  ;;  %v1007_v60 = vadd.f32 %v1006_v22, %v1005_v55 }
 0x3be   : > { %v8399_v18 = vpop.f32.mrf.mxu0 }
 0x3bf   : > { %v1337_v23 = vmax.f32 %v1333_v57, %v8399_v18 }
 0x3c0   : > { %v8401_v30 = vpop.f32.mrf.mxu0 }
 0x3c1   : > { %v1336_v63 = vmax.f32 %v1332_v6, %v8401_v30  ;;  %v371_v6 = vadd.f32 %v8035_v27, %v8031_v34 }
 0x3c2   : > { %v8406_v12 = vpop.f32.mrf.mxu0 }
 0x3c3   : > { %v1339_v3 = vmax.f32 %v1335_v0, %v8406_v12 }
 0x3c4   : > { %v8408_v41 = vpop.f32.mrf.mxu0 }
 0x3c5   : > { %v1338_v32 = vmax.f32 %v1334_v45, %v8408_v41  ;;  %v1008_v45 = vmul.f32 %v8450_v53, %v1007_v60 }
 0x3c6   : > { %v8411_v28 = vpop.f32.mrf.mxu0 }
 0x3c7   : > { %v1341_v19 = vmax.f32 %v1337_v23, %v8411_v28 }
 0x3c8   : > { %v8415_v14 = vpop.f32.mrf.mxu0 }
 0x3c9   : > { %v1340_v21 = vmax.f32 %v1336_v63, %v8415_v14 }
 0x3ca   : > { %v8417_v47 = vpop.f32.mrf.mxu0 }
 0x3cb   : > { %v1343_v57 = vmax.f32 %v1339_v3, %v8417_v47  ;;  %v374_v3 = vadd.f32 %v8341_v38, %v8339_v37 }
 0x3cc   : > { %v8421_v31 = vpop.f32.mrf.mxu0 }
 0x3cd   : > { %v1342_v56 = vmax.f32 %v1338_v32, %v8421_v31 }
 0x3ce   : > { %v8434_v40 = vpop.f32.mrf.mxu0 }
 0x3d0   : > { %v8440_v26 = vpop.f32.mrf.mxu0 }
 0x3d1   : > { %v1344_v22 = vmax.f32 %v1340_v21, %v8440_v26  ;;  %v1009_v21 = vmul.f32 %v8450_v53, %v1008_v45 }
 0x3d4   : > { %369 = vadd.xlane.f32.xlu1 %v368_v16  ;;  %v8446_v16 = vpop.f32.mrf.mxu0 }
 0x3d5   : > { %v1347_v63 = vmax.f32 %v1343_v57, %v8446_v16  ;;  %v8484_v57 = vpop.trf.xlu0 }
 0x3d6   : > { %v8458_v10 = vpop.f32.mrf.mxu0  ;;  %11223 = vst [vmem:[#allocation67_spill] sm:$0xff] %v8484_v57 }
 0x3d7   : > { %v1346_v55 = vmax.f32 %v1342_v56, %v8458_v10 }
 0x3d8   : > { %v8464_v20 = vpop.f32.mrf.mxu0 }
 0x3d9   : > { %v1350_v60 = vmax.f32 %v1346_v55, %v1347_v63  ;;  %v8486_v46 = vpop.trf.xlu0 }
 0x3da   : > { %366 = vadd.xlane.f32.xlu0 %v365_v2  ;;  %v1345_v2 = vmax.f32 %v1341_v19, %v8434_v40  ;;  %v8473_v0 = vpop.f32.mrf.mxu0  ;;  %11224 = vst [vmem:[#allocation68_spill] sm:$0xff] %v8486_v46 }
 0x3db   : > { %v1348_v32 = vmax.f32 %v1344_v22, %v8473_v0 }
 0x3dc   : > { %v1349_v23 = vmax.f32 %v1345_v2, %v8464_v20 }
 0x3dd   : > { %v8490_v55 = vpop.trf.xlu0 }
 0x3de   : > { %372 = vadd.xlane.f32.xlu0 %v371_v6  ;;  %v1351_v19 = vmax.f32 %v1348_v32, %v1349_v23  ;;  %v1011_v6 = vsel %vm1010_vm2, %v1009_v21, 0.0  ;;  %11225 = vst [vmem:[#allocation69_spill] sm:$0xff] %v8490_v55 }
 0x3e0   : > { %v1352_v56 = vmax.f32 %v1350_v60, %v1351_v19 }
 0x3e1   : > { %v8500_v32 = vpop.trf.xlu0 }
 0x3e2   : > { %375 = vadd.xlane.f32.xlu0 %v374_v3  ;;  %v1353_v34 = vrot.slane %v1352_v56, 4  ;;  %11226 = vst [vmem:[#allocation70_spill] sm:$0xff] %v8500_v32 }
 0x3e4   : > { %v1354_v2 = vmax.f32 %v1352_v56, %v1353_v34 }
 0x3e6   : > { %1012 = vadd.xlane.f32.xlu0 %v1011_v6  ;;  %v1355_v22 = vrot.slane %v1354_v2, 2 }
 0x3e8   : > { %v1356_v27 = vmax.f32 %v1354_v2, %v1355_v22 }
 0x3ea   : > { %v1357_v42 = vrot.slane %v1356_v27, 1 }
 0x3ec   : > { %v8488_v37 = vmax.f32 %v1356_v27, %v1357_v42 }
 0x3ee   : > { %v1359_v45 = vsub.f32 %v8351_v25, %v8488_v37  ;;  %v1360_v63 = vsub.f32 %v8349_v62, %v8488_v37  ;;  %v1361_v23 = vsub.f32 %v8355_v39, %v8488_v37  ;;  %v1362_v34 = vsub.f32 %v8353_v8, %v8488_v37  ;;  %v8508_v8 = vpop.trf.xlu0 }
 0x3ef   : > { %v1363_v27 = vsub.f32 %v8361_v51, %v8488_v37  ;;  %v1364_v25 = vsub.f32 %v8357_v58, %v8488_v37  ;;  %v1365_v62 = vsub.f32 %v8367_v13, %v8488_v37  ;;  %11227 = vst [vmem:[#allocation71_spill] sm:$0xff] %v8508_v8  ;;  %v1366_v21 = vsub.f32 %v8363_v52, %v8488_v37 }
 0x3f0   : > { %v1391_v42 = vmul.f32 1.442695, %v1359_v45  ;;  %v1393_v3 = vmul.f32 1.442695, %v1360_v63  ;;  %v1395_v60 = vmul.f32 1.442695, %v1361_v23  ;;  %v1367_v56 = vsub.f32 %v8373_v4, %v8488_v37 }
 0x3f1   : > { %v1397_v19 = vmul.f32 1.442695, %v1362_v34  ;;  %v1399_v39 = vmul.f32 1.442695, %v1363_v27  ;;  %v1401_v51 = vmul.f32 1.442695, %v1364_v25  ;;  %v1368_v6 = vsub.f32 %v8369_v7, %v8488_v37 }
 0x3f2   : > { %7169 = vpow2.f32 %v1391_v42  ;;  %v1403_v58 = vmul.f32 1.442695, %v1365_v62  ;;  %v1405_v13 = vmul.f32 1.442695, %v1366_v21  ;;  %v8516_v2 = vpop.trf.xlu0  ;;  %v1369_v22 = vsub.f32 %v8380_v9, %v8488_v37 }
 0x3f3   : > { %7171 = vpow2.f32 %v1393_v3  ;;  %11228 = vst [vmem:[#allocation72_spill] sm:$0xff] %v8516_v2  ;;  %v1407_v45 = vmul.f32 1.442695, %v1367_v56  ;;  %v1370_v52 = vsub.f32 %v8376_v33, %v8488_v37  ;;  %v1409_v63 = vmul.f32 1.442695, %v1368_v6 }
 0x3f4   : > { %7173 = vpow2.f32 %v1395_v60  ;;  %v1371_v4 = vsub.f32 %v8385_v44, %v8488_v37  ;;  %v1411_v7 = vmul.f32 1.442695, %v1369_v22  ;;  %v1372_v27 = vsub.f32 %v8383_v24, %v8488_v37 }
 0x3f5   : > { %7175 = vpow2.f32 %v1397_v19  ;;  %v1413_v3 = vmul.f32 1.442695, %v1370_v52  ;;  %v1373_v24 = vsub.f32 %v8391_v59, %v8488_v37  ;;  %v1374_v56 = vsub.f32 %v8389_v54, %v8488_v37 }
 0x3f6   : > { %7177 = vpow2.f32 %v1399_v39  ;;  %v8532_v42 = vpop.trf.xlu0  ;;  %v1415_v19 = vmul.f32 1.442695, %v1371_v4  ;;  %v1376_v52 = vsub.f32 %v8393_v5, %v8488_v37  ;;  %v1390_v5 = vsub.f32 %v8464_v20, %v8488_v37 }
 0x3f7   : > { %7179 = vpow2.f32 %v1401_v51  ;;  %11229 = vst [vmem:[#allocation73_spill] sm:$0xff] %v8532_v42 }
 0x3f8   : > { %7181 = vpow2.f32 %v1403_v58  ;;  %v1417_v58 = vmul.f32 1.442695, %v1372_v27 }
 0x3f9   : > { %7183 = vpow2.f32 %v1405_v13 }
 0x3fa   : > { %7185 = vpow2.f32 %v1407_v45  ;;  %v1375_v45 = vsub.f32 %v8397_v35, %v8488_v37  ;;  %v8560_v4 = vpop.trf.xlu0  ;;  %v1378_v35 = vsub.f32 %v8399_v18, %v8488_v37  ;;  %v1389_v18 = vsub.f32 %v8473_v0, %v8488_v37 }
 0x3fb   : > { %7187 = vpow2.f32 %v1409_v63  ;;  %v1419_v63 = vmul.f32 1.442695, %v1373_v24  ;;  %11230 = vst [vmem:[#allocation74_spill] sm:$0xff] %v8560_v4 }
 0x3fc   : > { %7189 = vpow2.f32 %v1411_v7  ;;  %v1423_v20 = vmul.f32 1.442695, %v1375_v45 }
 0x3fd   : > { %7191 = vpow2.f32 %v1413_v3  ;;  %v1377_v3 = vsub.f32 %v8401_v30, %v8488_v37  ;;  %v1380_v30 = vsub.f32 %v8406_v12, %v8488_v37  ;;  %v1425_v12 = vmul.f32 1.442695, %v1376_v52 }
 0x3fe   : > { %7193 = vpow2.f32 %v1415_v19  ;;  %v1451_v52 = vmul.f32 1.442695, %v1389_v18 }
 0x3ff   : > { %v8524_v23 = vpop.eup %7169  ;;  %7195 = vpow2.f32 %v1417_v58 }
 0x400   : > { %v8526_v34 = vpop.eup %7171  ;;  %v1493_v9 = vmul.f32 %v8524_v23, %v8524_v23  ;;  %7197 = vpow2.f32 %v1419_v63 }
 0x401   : > { %v8534_v33 = vpop.eup %7173  ;;  %v1455_v44 = vadd.f32 %v8526_v34, %v8524_v23  ;;  %v1494_v60 = vmul.f32 %v8526_v34, %v8526_v34 }
 0x402   : > { %v8540_v25 = vpop.eup %7175  ;;  %v1495_v39 = vmul.f32 %v8534_v33, %v8534_v33 }
 0x403   : > { %v1456_v62 = vadd.f32 %v8534_v33, %v1455_v44  ;;  %v1525_v21 = vadd.f32 %v1494_v60, %v1493_v9  ;;  %v8547_v51 = vpop.eup %7177  ;;  %v1496_v59 = vmul.f32 %v8540_v25, %v8540_v25  ;;  %v1421_v44 = vmul.f32 1.442695, %v1374_v56 }
 0x404   : > { %v8554_v22 = vpop.eup %7179  ;;  %v1497_v7 = vmul.f32 %v8547_v51, %v8547_v51 }
 0x405   : > { %v1457_v6 = vadd.f32 %v8540_v25, %v1456_v62  ;;  %v1526_v13 = vadd.f32 %v1525_v21, %v1495_v39  ;;  %v8565_v9 = vpop.eup %7181  ;;  %v1498_v24 = vmul.f32 %v8554_v22, %v8554_v22  ;;  %v1379_v39 = vsub.f32 %v8408_v41, %v8488_v37 }
 0x406   : > { %v8576_v62 = vpop.eup %7183  ;;  %v1499_v56 = vmul.f32 %v8565_v9, %v8565_v9  ;;  %v1388_v41 = vsub.f32 %v8446_v16, %v8488_v37  ;;  %7199 = vpow2.f32 %v1421_v44  ;;  %v1427_v16 = vmul.f32 1.442695, %v1377_v3 }
 0x407   : > { %v1458_v54 = vadd.f32 %v8547_v51, %v1457_v6  ;;  %v1527_v27 = vadd.f32 %v1526_v13, %v1496_v59  ;;  %v8587_v6 = vpop.eup %7185  ;;  %v1381_v59 = vsub.f32 %v8415_v14, %v8488_v37  ;;  %v1453_v13 = vmul.f32 1.442695, %v1390_v5 }
 0x408   : > { %v1500_v45 = vmul.f32 %v8576_v62, %v8576_v62  ;;  %v1387_v14 = vsub.f32 %v8458_v10, %v8488_v37  ;;  %7201 = vpow2.f32 %v1423_v20  ;;  %v1501_v44 = vmul.f32 %v8587_v6, %v8587_v6 }
 0x409   : > { %v1459_v60 = vadd.f32 %v8554_v22, %v1458_v54  ;;  %v1528_v19 = vadd.f32 %v1527_v27, %v1497_v7  ;;  %v8593_v54 = vpop.trf.xlu0  ;;  %v8598_v7 = vpop.eup %7187  ;;  %v1382_v27 = vsub.f32 %v8411_v28, %v8488_v37  ;;  %7203 = vpow2.f32 %v1425_v12 }
 0x40a   : > { %11231 = vst [vmem:[#allocation75_spill] sm:$0xff] %v8593_v54  ;;  %v1449_v28 = vmul.f32 1.442695, %v1388_v41  ;;  %7205 = vpow2.f32 %v1453_v13  ;;  %v1502_v3 = vmul.f32 %v8598_v7, %v8598_v7  ;;  %v1384_v13 = vsub.f32 %v8417_v47, %v8488_v37 }
 0x40b   : > { %v1460_v21 = vadd.f32 %v8565_v9, %v1459_v60  ;;  %v1529_v58 = vadd.f32 %v1528_v19, %v1498_v24  ;;  %v8607_v24 = vpop.eup %7189  ;;  %v1386_v19 = vsub.f32 %v8434_v40, %v8488_v37  ;;  %7207 = vpow2.f32 %v1427_v16 }
 0x40c   : > { %v8614_v20 = vpop.eup %7191  ;;  %7209 = vpow2.f32 %v1451_v52 }
 0x40d   : > { %v1461_v0 = vadd.f32 %v8576_v62, %v1460_v21  ;;  %v1530_v63 = vadd.f32 %v1529_v58, %v1499_v56  ;;  %v1429_v21 = vmul.f32 1.442695, %v1378_v35  ;;  %v1385_v56 = vsub.f32 %v8440_v26, %v8488_v37  ;;  %v8623_v12 = vpop.eup %7193 }
 0x40e   : > { %v1431_v58 = vmul.f32 1.442695, %v1379_v39  ;;  %v1503_v35 = vmul.f32 %v8607_v24, %v8607_v24  ;;  %v1445_v26 = vmul.f32 1.442695, %v1386_v19  ;;  %v7196_v52 = vpop.eup %7195 }
 0x40f   : > { %v1462_v5 = vadd.f32 %v8587_v6, %v1461_v0  ;;  %v1531_v60 = vadd.f32 %v1530_v63, %v1500_v45  ;;  %v1447_v0 = vmul.f32 1.442695, %v1387_v14  ;;  %v8618_v45 = vpop.trf.xlu0  ;;  %7211 = vpow2.f32 %v1429_v21  ;;  %v7198_v21 = vpop.eup %7197 }
 0x410   : > { %11232 = vst [vmem:[#allocation76_spill] sm:$0xff] %v8618_v45  ;;  %v1433_v63 = vmul.f32 1.442695, %v1380_v30  ;;  %7213 = vpow2.f32 %v1449_v28  ;;  %v1504_v14 = vmul.f32 %v8614_v20, %v8614_v20  ;;  %v1505_v30 = vmul.f32 %v8623_v12, %v8623_v12 }
 0x411   : > { %v1463_v10 = vadd.f32 %v8598_v7, %v1462_v5  ;;  %v1532_v18 = vadd.f32 %v1531_v60, %v1501_v44  ;;  %v1383_v5 = vsub.f32 %v8421_v31, %v8488_v37  ;;  %7215 = vpow2.f32 %v1431_v58 }
 0x412   : > { %v1435_v44 = vmul.f32 1.442695, %v1381_v59  ;;  %v1443_v60 = vmul.f32 1.442695, %v1385_v56  ;;  %7217 = vpow2.f32 %v1447_v0  ;;  %v1437_v28 = vmul.f32 1.442695, %v1382_v27 }
 0x413   : > { %v1464_v40 = vadd.f32 %v8607_v24, %v1463_v10  ;;  %v1533_v41 = vadd.f32 %v1532_v18, %v1502_v3  ;;  %7219 = vpow2.f32 %v1433_v63  ;;  %v1441_v10 = vmul.f32 1.442695, %v1384_v13  ;;  %v8635_v3 = vpop.trf.xlu0  ;;  %v7200_v31 = vpop.eup %7199 }
 0x414   : > { %11233 = vst [vmem:[#allocation77_spill] sm:$0xff] %v8635_v3  ;;  %7221 = vpow2.f32 %v1445_v26  ;;  %v1439_v59 = vmul.f32 1.442695, %v1383_v5  ;;  %v1507_v58 = vmul.f32 %v7198_v21, %v7198_v21  ;;  %v1508_v13 = vmul.f32 %v7200_v31, %v7200_v31 }
 0x415   : > { %v1465_v39 = vadd.f32 %v8614_v20, %v1464_v40  ;;  %v1534_v16 = vadd.f32 %v1533_v41, %v1503_v35  ;;  %v1506_v40 = vmul.f32 %v7196_v52, %v7196_v52  ;;  %7223 = vpow2.f32 %v1435_v44  ;;  %v8637_v35 = vpop.eup %7201 }
 0x416   : > { %7225 = vpow2.f32 %v1443_v60  ;;  %v8639_v41 = vpop.eup %7203  ;;  %v1509_v5 = vmul.f32 %v8637_v35, %v8637_v35 }
 0x417   : > { %v1466_v47 = vadd.f32 %v8623_v12, %v1465_v39  ;;  %v1535_v19 = vadd.f32 %v1534_v16, %v1504_v14  ;;  %7227 = vpow2.f32 %v1437_v28  ;;  %v8641_v26 = vpop.eup %7205  ;;  %v8643_v39 = vpop.trf.xlu0 }
 0x418   : > { %7229 = vpow2.f32 %v1441_v10  ;;  %11234 = vst [vmem:[#allocation78_spill] sm:$0xff] %v8643_v39  ;;  %v8645_v14 = vpop.eup %7207  ;;  %6232 = vmatprep.subr.mxu1 %v8641_v26 }
 0x419   : > { %v1467_v18 = vadd.f32 %v7196_v52, %v1466_v47  ;;  %v1536_v37 = vadd.f32 %v1535_v19, %v1505_v30  ;;  %7231 = vpow2.f32 %v1439_v59  ;;  %v8651_v60 = vpop.eup %7209  ;;  %6233 = vmatpush3.msra.mxu1 %v7200_v31  ;;  %v1510_v19 = vmul.f32 %v8639_v41, %v8639_v41 }
 0x41a   : > { %6234 = vmatprep.subr.mxu1 %v8651_v60 }
 0x41b   : > { %v1468_v56 = vadd.f32 %v7198_v21, %v1467_v18  ;;  %v1537_v0 = vadd.f32 %v1536_v37, %v1506_v40  ;;  %6235 = vmatpush3.msra.mxu1 %v7198_v21  ;;  %v1511_v37 = vmul.f32 %v8645_v14, %v8645_v14 }
 0x41c   : > { %v8653_v47 = vpop.eup %7211 }
 0x41d   : > { %v1469_v27 = vadd.f32 %v7200_v31, %v1468_v56  ;;  %v1538_v63 = vadd.f32 %v1537_v0, %v1507_v58  ;;  %v8659_v10 = vpop.eup %7213  ;;  %v8665_v56 = vpop.trf.xlu0 }
 0x41e   : > { %v7216_v18 = vpop.eup %7215  ;;  %6236 = vmatprep.subr.mxu1 %v8659_v10  ;;  %11235 = vst [vmem:[#allocation79_spill] sm:$0xff] %v8665_v56 }
 0x41f   : > { %v1470_v16 = vadd.f32 %v8637_v35, %v1469_v27  ;;  %v1539_v44 = vadd.f32 %v1538_v63, %v1508_v13  ;;  %v7218_v59 = vpop.eup %7217  ;;  %6237 = vmatpush3.msra.mxu1 %v7196_v52  ;;  %v1512_v27 = vmul.f32 %v8653_v47, %v8653_v47 }
 0x420   : > { %v7220_v58 = vpop.eup %7219  ;;  %6238 = vmatprep.subr.mxu1 %v7218_v59 }
 0x421   : > { %v1471_v30 = vadd.f32 %v8639_v41, %v1470_v16  ;;  %v1540_v28 = vadd.f32 %v1539_v44, %v1509_v5  ;;  %v7222_v13 = vpop.eup %7221  ;;  %6239 = vmatpush3.msra.mxu1 %v8623_v12  ;;  %v1513_v5 = vmul.f32 %v7216_v18, %v7216_v18 }
 0x422   : > { %v7224_v63 = vpop.eup %7223  ;;  %6240 = vmatprep.subr.mxu1 %v7222_v13 }
 0x423   : > { %v1472_v40 = vadd.f32 %v8645_v14, %v1471_v30  ;;  %v1541_v31 = vadd.f32 %v1540_v28, %v1510_v19  ;;  %v7226_v30 = vpop.eup %7225  ;;  %6241 = vmatpush3.msra.mxu1 %v8614_v20  ;;  %v1514_v28 = vmul.f32 %v7220_v58, %v7220_v58  ;;  %v1515_v12 = vmul.f32 %v7224_v63, %v7224_v63 }
 0x424   : > { %v7228_v52 = vpop.eup %7227  ;;  %6242 = vmatprep.subr.mxu1 %v7226_v30 }
 0x425   : > { %v1473_v0 = vadd.f32 %v8653_v47, %v1472_v40  ;;  %v1542_v21 = vadd.f32 %v1541_v31, %v1511_v37  ;;  %v7230_v56 = vpop.eup %7229  ;;  %6243 = vmatpush3.msra.mxu1 %v8607_v24  ;;  %v8673_v37 = vpop.trf.xlu0  ;;  %v1516_v20 = vmul.f32 %v7228_v52, %v7228_v52 }
 0x426   : > { %11236 = vst [vmem:[#allocation80_spill] sm:$0xff] %v8673_v37  ;;  %6244 = vmatprep.subr.mxu1 %v7230_v56  ;;  %v7232_v39 = vpop.eup %7231 }
 0x427   : > { %v1474_v16 = vadd.f32 %v7216_v18, %v1473_v0  ;;  %v1543_v44 = vadd.f32 %v1542_v21, %v1512_v27  ;;  %6245 = vmatpush3.msra.mxu1 %v8598_v7 }
 0x428   : > { %6246 = vmatprep.subr.mxu1 %v7232_v39 }
 0x429   : > { %v1475_v19 = vadd.f32 %v7220_v58, %v1474_v16  ;;  %v1544_v40 = vadd.f32 %v1543_v44, %v1513_v5  ;;  %6247 = vmatpush3.msra.mxu1 %v8587_v6  ;;  %v1517_v5 = vmul.f32 %v7232_v39, %v7232_v39  ;;  %v8678_v24 = vpop.trf.xlu0 }
 0x42a   : > { %6248 = vmatprep.subr.mxu1 %v7228_v52  ;;  %11237 = vst [vmem:[#allocation81_spill] sm:$0xff] %v8678_v24 }
 0x42b   : > { %v1476_v31 = vadd.f32 %v7224_v63, %v1475_v19  ;;  %v1545_v0 = vadd.f32 %v1544_v40, %v1514_v28  ;;  %6249 = vmatpush3.msra.mxu1 %v8576_v62  ;;  %v1518_v28 = vmul.f32 %v7230_v56, %v7230_v56 }
 0x42c   : > { %6250 = vmatprep.subr.mxu1 %v7224_v63 }
 0x42d   : > { %v1477_v27 = vadd.f32 %v7228_v52, %v1476_v31  ;;  %v1546_v21 = vadd.f32 %v1545_v0, %v1515_v12  ;;  %6251 = vmatpush3.msra.mxu1 %v8565_v9  ;;  %v1519_v31 = vmul.f32 %v7226_v30, %v7226_v30  ;;  %v8683_v62 = vpop.trf.xlu0 }
 0x42e   : > { %6252 = vmatprep.subr.mxu1 %v7220_v58  ;;  %11238 = vst [vmem:[#allocation82_spill] sm:$0xff] %v8683_v62 }
 0x42f   : > { %v1478_v16 = vadd.f32 %v7232_v39, %v1477_v27  ;;  %v1547_v44 = vadd.f32 %v1546_v21, %v1516_v20  ;;  %6253 = vmatpush3.msra.mxu1 %v8554_v22  ;;  %v1520_v39 = vmul.f32 %v7222_v13, %v7222_v13  ;;  %v1522_v22 = vmul.f32 %v8659_v10, %v8659_v10  ;;  %v11243_v20 = vld [vmem:[#allocation28_spill] sm:$0xff]  ;;  %v11244_v21 = vld [vmem:[#allocation29_spill] sm:$0xff] }
 0x430   : > { %6254 = vmatprep.subr.mxu1 %v7216_v18 }
 0x431   : > { %v1479_v19 = vadd.f32 %v7230_v56, %v1478_v16  ;;  %v1548_v40 = vadd.f32 %v1547_v44, %v1517_v5  ;;  %6255 = vmatpush3.msra.mxu1 %v8547_v51  ;;  %v1521_v56 = vmul.f32 %v7218_v59, %v7218_v59  ;;  %v11245_v5 = vld [vmem:[#allocation30_spill] sm:$0xff] }
 0x432   : > { %6256 = vmatprep.subr.mxu1 %v8653_v47  ;;  %v1523_v47 = vmul.f32 %v8651_v60, %v8651_v60 }
 0x433   : > { %v1480_v7 = vadd.f32 %v7226_v30, %v1479_v19  ;;  %v1549_v12 = vadd.f32 %v1548_v40, %v1518_v28  ;;  %6257 = vmatpush3.msra.mxu1 %v8540_v25  ;;  %v8697_v25 = vpop.trf.xlu0  ;;  %v11247_v28 = vld [vmem:[#allocation31_spill] sm:$0xff] }
 0x434   : > { %6258 = vmatprep.subr.mxu1 %v8645_v14  ;;  %11239 = vst [vmem:[#allocation83_spill] sm:$0xff] %v8697_v25 }
 0x435   : > { %v1481_v6 = vadd.f32 %v7222_v13, %v1480_v7  ;;  %v1550_v52 = vadd.f32 %v1549_v12, %v1519_v31  ;;  %6259 = vmatpush3.msra.mxu1 %v8534_v33  ;;  %v1524_v33 = vmul.f32 %v8641_v26, %v8641_v26  ;;  %v11248_v7 = vld [vmem:[#allocation32_spill] sm:$0xff]  ;;  %v11250_v12 = vld [vmem:[#allocation33_spill] sm:$0xff] }
 0x436   : > { %6260 = vmatprep.subr.mxu1 %v8639_v41 }
 0x437   : > { %v1482_v0 = vadd.f32 %v7218_v59, %v1481_v6  ;;  %v1551_v63 = vadd.f32 %v1550_v52, %v1520_v39  ;;  %6261 = vmatpush3.msra.mxu1 %v8526_v34  ;;  %v11240_v34 = vld [vmem:[#allocation26_spill] sm:$0xff]  ;;  %v8708_v30 = vpop.trf.xlu0  ;;  %v11252_v52 = vld [vmem:[#allocation35_spill] sm:$0xff] }
 0x438   : > { %6262 = vmatprep.subr.mxu1 %v8637_v35  ;;  %11241 = vst [vmem:[#allocation26_spill] sm:$0xff] %v8708_v30  ;;  %v11242_v35 = vld [vmem:[#allocation27_spill] sm:$0xff]  ;;  %v11251_v39 = vld [vmem:[#allocation34_spill] sm:$0xff] }
 0x439   : > { %v1483_v9 = vadd.f32 %v8659_v10, %v1482_v0  ;;  %v1552_v18 = vadd.f32 %v1551_v63, %v1521_v56  ;;  %v1653_v10 = vmul.f32 0.35355338, %v11219_v29  ;;  %6263 = vmatpush3.msra.mxu1 %v8524_v23  ;;  %v11253_v56 = vld [vmem:[#allocation36_spill] sm:$0xff] }
 0x43a   : > { %1641 = vmatmul.mubr.f32.vlgmr.msra.gmra.mxu1 %v7732_v17 }
 0x43b   : > { %v1484_v51 = vadd.f32 %v8651_v60, %v1483_v9  ;;  %v1553_v59 = vadd.f32 %v1552_v18, %v1522_v22  ;;  %6775 = vmatprep.subr.mxu1 %v1653_v10  ;;  %6777 = vmatprep.mubr.msk.f32.mxu1 %vm446_vm1, %v11240_v34  ;;  %v8718_v44 = vpop.trf.xlu0  ;;  %v6198_v9 = vadd.f32 %v8347_v49, %v8345_v11 }
 0x43c   : > { %6776 = vmatpush3.msra.mxu1 %v1653_v10  ;;  %11246 = vst [vmem:[#allocation27_spill] sm:$0xff] %v8718_v44 }
 0x43d   : > { %v1485_v14 = vadd.f32 %v8641_v26, %v1484_v51  ;;  %v1554_v58 = vadd.f32 %v1553_v59, %v1523_v47  ;;  %v8746_v59 = vmul.f32 %v8450_v53, %v6198_v9 }
 0x43e   : > { %6778 = vmatmul.mubr.msk.f32.vlgmr.msra.gmra.mxu1 %vm446_vm1, %v11242_v35 }
 0x43f   : > { %v1486_v41 = vrot.slane %v1485_v14, 4  ;;  %v1555_v60 = vadd.f32 %v1554_v58, %v1524_v33  ;;  %6780 = vmatprep.mubr.msk.f32.mxu1 %vm446_vm1, %v11243_v20  ;;  %v8724_v31 = vpop.trf.xlu0  ;;  %11255 = vst [vmem:[#allocation30_spill] sm:$0xff] %v8746_v59  ;;  %v11259_v58 = vld [vmem:[#allocation46_spill] sm:$0xff] }
 0x440   : > { %11249 = vst [vmem:[#allocation28_spill] sm:$0xff] %v8724_v31 }
 0x441   : > { %v1487_v13 = vadd.f32 %v1486_v41, %v1485_v14  ;;  %v1556_v26 = vrot.slane %v1555_v60, 4 }
 0x442   : > { %6781 = vmatmul.mubr.msk.f32.gmra.mxu1 %vm446_vm1, %v11244_v21 }
 0x443   : > { %v1488_v27 = vrot.slane %v1487_v13, 2  ;;  %v1557_v16 = vadd.f32 %v1556_v26, %v1555_v60  ;;  %6783 = vmatprep.mubr.msk.f32.mxu1 %vm446_vm1, %v11245_v5  ;;  %v8734_v63 = vpop.trf.xlu0  ;;  %v11260_v60 = vld [vmem:[#allocation47_spill] sm:$0xff] }
 0x444   : > { %11254 = vst [vmem:[#allocation29_spill] sm:$0xff] %v8734_v63 }
 0x445   : > { %v1489_v23 = vadd.f32 %v1488_v27, %v1487_v13  ;;  %v1558_v40 = vrot.slane %v1557_v16, 2  ;;  %v11261_v27 = vld [vmem:[#allocation48_spill] sm:$0xff] }
 0x446   : > { %6784 = vmatmul.mubr.msk.f32.gmra.mxu1 %vm446_vm1, %v11247_v28 }
 0x447   : > { %v1490_v17 = vrot.slane %v1489_v23, 1  ;;  %6786 = vmatprep.mubr.msk.f32.mxu1 %vm446_vm1, %v11248_v7  ;;  %v1559_v6 = vadd.f32 %v1558_v40, %v1557_v16  ;;  %v11263_v16 = vld [vmem:[#allocation50_spill] sm:$0xff]  ;;  %v11264_v40 = vld [vmem:[#allocation51_spill] sm:$0xff] }
 0x449   : > { %v1491_v19 = vadd.f32 %v1490_v17, %v1489_v23  ;;  %v1560_v0 = vrot.slane %v1559_v6, 1  ;;  %v11262_v23 = vld [vmem:[#allocation49_spill] sm:$0xff] }
 0x44a   : > { %6787 = vmatmul.mubr.msk.f32.gmra.mxu1 %vm446_vm1, %v11250_v12 }
 0x44b   : > { %7233 = vrcp.f32 %v1491_v19  ;;  %6789 = vmatprep.mubr.msk.f32.mxu1 %vm446_vm1, %v11251_v39  ;;  %v1561_v22 = vadd.f32 %v1560_v0, %v1559_v6  ;;  %v11265_v0 = vld [vmem:[#allocation52_spill] sm:$0xff] }
 0x44e   : > { %6790 = vmatmul.mubr.msk.f32.gmra.mxu1 %vm446_vm1, %v11252_v52 }
 0x44f   : > { %6792 = vmatprep.mubr.msk.f32.mxu1 %vm446_vm1, %v11253_v56 }
 0x452   : > { %6793 = vmatmul.mubr.msk.f32.gmra.mxu1 %vm446_vm1, %v7999_v48 }
 0x453   : > { %6795 = vmatprep.mubr.msk.f32.mxu1 %vm446_vm1, %v8001_v50 }
 0x456   : > { %6796 = vmatmul.mubr.msk.f32.gmra.mxu1 %vm446_vm1, %v8003_v43 }
 0x457   : > { %6798 = vmatprep.mubr.msk.f32.mxu1 %vm446_vm1, %v8007_v36 }
 0x458   : > { %v8740_v18 = vpop.eup %7233 }
 0x459   : > { %v1562_v51 = vmul.f32 %v8740_v18, %v1561_v22  ;;  %v11266_v22 = vld [vmem:[#allocation53_spill] sm:$0xff] }
 0x45a   : > { %6799 = vmatmul.mubr.msk.f32.gmra.mxu1 %vm446_vm1, %v8021_v61 }
 0x45b   : > { %v1563_v11 = vmul.f32 %v8740_v18, %v1562_v51  ;;  %6801 = vmatprep.mubr.msk.f32.mxu1 %vm446_vm1, %v8146_v15  ;;  %v11267_v51 = vld [vmem:[#allocation54_spill] sm:$0xff] }
 0x45d   : > { %v1564_v14 = vsel %vm1010_vm2, %v1563_v11, 0.0  ;;  %v11269_v11 = vld [vmem:[#allocation13_spill] sm:$0xff] }
 0x45e   : > { %1565 = vadd.xlane.f32.xlu0 %v1564_v14  ;;  %6802 = vmatmul.mubr.msk.f32.gmra.mxu1 %vm446_vm1, %v8154_v1  ;;  %v11270_v14 = vld [vmem:[#allocation15_spill] sm:$0xff] }
 0x45f   : > { %6804 = vmatprep.mubr.msk.f32.mxu1 %vm446_vm1, %v11259_v58 }
 0x462   : > { %6805 = vmatmul.mubr.msk.f32.gmra.mxu1 %vm446_vm1, %v11260_v60 }
 0x463   : > { %v367_v47 = vpop.xlane.xlu0 %366  ;;  %6807 = vmatprep.mubr.msk.f32.mxu1 %vm446_vm1, %v11261_v27 }
 0x464   : > { %v8751_v49 = vmul.f32 0.00390625, %v367_v47  ;;  %v11268_v47 = vld [vmem:[#allocation12_spill] sm:$0xff] }
 0x466   : > { %11256 = vst [vmem:[#allocation31_spill] sm:$0xff] %v8751_v49  ;;  %6808 = vmatmul.mubr.msk.f32.gmra.mxu1 %vm446_vm1, %v11262_v23 }
 0x467   : > { %v8758_v33 = vpop.xlane.xlu0 %372  ;;  %6810 = vmatprep.mubr.msk.f32.mxu1 %vm446_vm1, %v11263_v16 }
 0x468   : > { %11257 = vst [vmem:[#allocation32_spill] sm:$0xff] %v8758_v33 }
 0x46a   : > { %6811 = vmatmul.mubr.msk.f32.gmra.mxu1 %vm446_vm1, %v11264_v40 }
 0x46b   : > { %v8764_v53 = vpop.xlane.xlu0 %375  ;;  %6813 = vmatprep.mubr.msk.f32.mxu1 %vm446_vm1, %v11265_v0 }
 0x46c   : > { %11258 = vst [vmem:[#allocation33_spill] sm:$0xff] %v8764_v53 }
 0x46e   : > { %6814 = vmatmul.mubr.msk.f32.gmra.mxu1 %vm446_vm1, %v11266_v22 }
 0x46f   : > { %v1013_v41 = vpop.xlane.xlu0 %1012  ;;  %6816 = vmatprep.mubr.msk.f32.mxu1 %vm446_vm1, %v11267_v51 }
 0x470   : > { %v1014_v13 = vrot.slane %v1013_v41, 4 }
 0x472   : > { %v1015_v26 = vadd.f32 %v1014_v13, %v1013_v41  ;;  %6817 = vmatmul.mubr.msk.f32.gmra.mxu1 %vm446_vm1, %v11268_v47  ;;  %v11271_v41 = vld [vmem:[#allocation17_spill] sm:$0xff]  ;;  %v11272_v13 = vld [vmem:[#allocation18_spill] sm:$0xff] }
 0x473   : > { %6819 = vmatprep.mubr.msk.f32.mxu1 %vm446_vm1, %v11269_v11 }
 0x474   : > { %v1016_v17 = vrot.slane %v1015_v26, 2 }
 0x476   : > { %v1017_v19 = vadd.f32 %v1016_v17, %v1015_v26  ;;  %6820 = vmatmul.mubr.msk.f32.gmra.mxu1 %vm446_vm1, %v11270_v14  ;;  %v11273_v26 = vld [vmem:[#allocation25_spill] sm:$0xff] }
 0x477   : > { %6822 = vmatprep.mubr.msk.f32.mxu1 %vm446_vm1, %v11271_v41 }
 0x478   : > { %v1018_v6 = vrot.slane %v1017_v19, 1 }
 0x47a   : > { %v1019_v9 = vadd.f32 %v1018_v6, %v1017_v19  ;;  %6823 = vmatmul.mubr.msk.f32.gmra.mxu1 %vm446_vm1, %v11272_v13 }
 0x47b   : > { %2910 = vmatprep.mubr.f32.mxu1 %v11273_v26 }
 0x47c   : > { %7075 = vpush %v1019_v9 }
 0x4ad   : > { %s7076_s21 = spop %7075 }
 0x4e7   : > { %v1566_v17 = vpop.xlane.xlu0 %1565 }
 0x4e8   : > { %v1567_v19 = vrot.slane %v1566_v17, 4 }
 0x4ea   : > { %v1568_v6 = vadd.f32 %v1567_v19, %v1566_v17 }
 0x4ec   : > { %v1569_v9 = vrot.slane %v1568_v6, 2 }
 0x4ee   : > { %v1570_v10 = vadd.f32 %v1569_v9, %v1568_v6 }
 0x4f0   : > { %v1571_v59 = vrot.slane %v1570_v10, 1 }
 0x4f2   : > { %v1572_v53 = vadd.f32 %v1571_v59, %v1570_v10 }
 0x4f4   : > { %7077 = vpush %v1572_v53 }
 0x4fa   : > { %v6264_v63 = vpop.f32.mrf.mxu1 }
 0x4fc   : > { %v6265_v31 = vpop.f32.mrf.mxu1 }
 0x4fd   : > { %v8797_v44 = vadd.f32 %v6265_v31, %v6264_v63 }
 0x4fe   : > { %v8799_v30 = vpop.f32.mrf.mxu1 }
 0x500   : > { %v8801_v25 = vpop.f32.mrf.mxu1 }
 0x502   : > { %v8803_v62 = vpop.f32.mrf.mxu1 }
 0x504   : > { %v8805_v24 = vpop.f32.mrf.mxu1 }
 0x506   : > { %v8807_v37 = vpop.f32.mrf.mxu1 }
 0x507   : > { %v2040_v13 = vmax.f32 %v8799_v30, %v8807_v37 }
 0x508   : > { %v8809_v17 = vpop.f32.mrf.mxu1 }
 0x509   : > { %v2039_v46 = vmax.f32 %v8801_v25, %v8809_v17 }
 0x50a   : > { %v8811_v19 = vpop.f32.mrf.mxu1 }
 0x50b   : > { %v2042_v41 = vmax.f32 %v8803_v62, %v8811_v19 }
 0x50c   : > { %v8813_v59 = vpop.f32.mrf.mxu1 }
 0x50d   : > { %v2041_v14 = vmax.f32 %v8805_v24, %v8813_v59 }
 0x50e   : > { %v8815_v10 = vpop.f32.mrf.mxu1 }
 0x50f   : > { %v2044_v51 = vmax.f32 %v2040_v13, %v8815_v10 }
 0x510   : > { %v8817_v31 = vpop.f32.mrf.mxu1 }
 0x511   : > { %v2043_v11 = vmax.f32 %v2039_v46, %v8817_v31 }
 0x512   : > { %v8819_v63 = vpop.f32.mrf.mxu1 }
 0x513   : > { %v2046_v22 = vmax.f32 %v2042_v41, %v8819_v63 }
 0x514   : > { %v8821_v53 = vpop.f32.mrf.mxu1 }
 0x515   : > { %v2045_v0 = vmax.f32 %v2041_v14, %v8821_v53 }
 0x516   : > { %v8823_v6 = vpop.f32.mrf.mxu1 }
 0x517   : > { %v2048_v23 = vmax.f32 %v2044_v51, %v8823_v6 }
 0x518   : > { %v8825_v9 = vpop.f32.mrf.mxu1 }
 0x519   : > { %v2047_v40 = vmax.f32 %v2043_v11, %v8825_v9 }
 0x51a   : > { %v8827_v3 = vpop.f32.mrf.mxu1 }
 0x51b   : > { %v2050_v27 = vmax.f32 %v2046_v22, %v8827_v3 }
 0x51c   : > { %v8829_v45 = vpop.f32.mrf.mxu1 }
 0x51d   : > { %v2049_v60 = vmax.f32 %v2045_v0, %v8829_v45 }
 0x51e   : > { %v8831_v54 = vpop.f32.mrf.mxu1 }
 0x51f   : > { %v2052_v13 = vmax.f32 %v2048_v23, %v8831_v54 }
 0x520   : > { %v8833_v4 = vpop.f32.mrf.mxu1 }
 0x521   : > { %v2051_v46 = vmax.f32 %v2047_v40, %v8833_v4 }
 0x522   : > { %v8835_v42 = vpop.f32.mrf.mxu1 }
 0x523   : > { %v2054_v41 = vmax.f32 %v2050_v27, %v8835_v42 }
 0x524   : > { %v8837_v2 = vpop.f32.mrf.mxu1 }
 0x525   : > { %v2053_v14 = vmax.f32 %v2049_v60, %v8837_v2  ;;  %s7078_s23 = spop %7077 }
 0x526   : > { %v8839_v33 = vpop.f32.mrf.mxu1 }
 0x527   : > { %v2056_v51 = vmax.f32 %v2052_v13, %v8839_v33 }
 0x528   : > { %v8841_v38 = vpop.f32.mrf.mxu1 }
 0x529   : > { %v2055_v11 = vmax.f32 %v2051_v46, %v8841_v38 }
 0x52a   : > { %v8843_v8 = vpop.f32.mrf.mxu1 }
 0x52b   : > { %v2058_v22 = vmax.f32 %v2054_v41, %v8843_v8 }
 0x52c   : > { %v8845_v32 = vpop.f32.mrf.mxu1 }
 0x52d   : > { %v2057_v0 = vmax.f32 %v2053_v14, %v8845_v32 }
 0x52e   : > { %v8847_v55 = vpop.f32.mrf.mxu1 }
 0x52f   : > { %v2060_v23 = vmax.f32 %v2056_v51, %v8847_v55 }
 0x530   : > { %v8851_v57 = vpop.f32.mrf.mxu1 }
 0x531   : > { %v2059_v40 = vmax.f32 %v2055_v11, %v8851_v57 }
 0x532   : > { %v8860_v47 = vpop.f32.mrf.mxu1 }
 0x533   : > { %v2062_v27 = vmax.f32 %v2058_v22, %v8860_v47 }
 0x534   : > { %v8866_v16 = vpop.f32.mrf.mxu1 }
 0x535   : > { %v2061_v60 = vmax.f32 %v2057_v0, %v8866_v16 }
 0x536   : > { %v8872_v58 = vpop.f32.mrf.mxu1 }
 0x537   : > { %v2064_v13 = vmax.f32 %v2060_v23, %v8872_v58 }
 0x538   : > { %v8878_v1 = vpop.f32.mrf.mxu1 }
 0x539   : > { %v2063_v46 = vmax.f32 %v2059_v40, %v8878_v1 }
 0x53a   : > { %v8884_v15 = vpop.f32.mrf.mxu1 }
 0x53b   : > { %v2066_v41 = vmax.f32 %v2062_v27, %v8884_v15  ;;  %v2067_v36 = vmax.f32 %v2063_v46, %v2064_v13 }
 0x53c   : > { %v8890_v61 = vpop.f32.mrf.mxu1 }
 0x53d   : > { %v2065_v14 = vmax.f32 %v2061_v60, %v8890_v61 }
 0x53f   : > { %v2068_v11 = vmax.f32 %v2065_v14, %v2066_v41 }
 0x541   : > { %v2069_v43 = vmax.f32 %v2067_v36, %v2068_v11 }
 0x543   : > { %v2070_v50 = vrot.slane %v2069_v43, 4 }
 0x545   : > { %v2071_v48 = vmax.f32 %v2069_v43, %v2070_v50 }
 0x547   : > { %v2072_v51 = vrot.slane %v2071_v48, 2 }
 0x549   : > { %v2073_v56 = vmax.f32 %v2071_v48, %v2072_v51 }
 0x54b   : > { %v2074_v22 = vrot.slane %v2073_v56, 1 }
 0x54d   : > { %v8895_v52 = vmax.f32 %v2073_v56, %v2074_v22 }
 0x54f   : > { %v2076_v0 = vsub.f32 %v8801_v25, %v8895_v52  ;;  %v2077_v40 = vsub.f32 %v8799_v30, %v8895_v52  ;;  %v2078_v23 = vsub.f32 %v8805_v24, %v8895_v52  ;;  %v2079_v27 = vsub.f32 %v8803_v62, %v8895_v52 }
 0x550   : > { %v2080_v43 = vsub.f32 %v8809_v17, %v8895_v52  ;;  %v2081_v56 = vsub.f32 %v8807_v37, %v8895_v52  ;;  %v2082_v25 = vsub.f32 %v8813_v59, %v8895_v52  ;;  %v2083_v24 = vsub.f32 %v8811_v19, %v8895_v52 }
 0x551   : > { %v2108_v50 = vmul.f32 1.442695, %v2076_v0  ;;  %v2110_v48 = vmul.f32 1.442695, %v2077_v40  ;;  %v2112_v36 = vmul.f32 1.442695, %v2078_v23  ;;  %v8915_v17 = vmul.f32 %v8740_v18, %v8797_v44 }
 0x552   : > { %v2114_v60 = vmul.f32 1.442695, %v2079_v27  ;;  %v2116_v30 = vmul.f32 1.442695, %v2080_v43  ;;  %v2118_v62 = vmul.f32 1.442695, %v2081_v56  ;;  %v2084_v37 = vsub.f32 %v8817_v31, %v8895_v52 }
 0x553   : > { %7235 = vpow2.f32 %v2108_v50  ;;  %11274 = vst [vmem:[#allocation34_spill] sm:$0xff] %v8915_v17  ;;  %v2120_v46 = vmul.f32 1.442695, %v2082_v25  ;;  %v2085_v59 = vsub.f32 %v8815_v10, %v8895_v52  ;;  %v2122_v13 = vmul.f32 1.442695, %v2083_v24 }
 0x554   : > { %7237 = vpow2.f32 %v2110_v48  ;;  %v2086_v19 = vsub.f32 %v8821_v53, %v8895_v52  ;;  %v2124_v14 = vmul.f32 1.442695, %v2084_v37  ;;  %v2087_v44 = vsub.f32 %v8819_v63, %v8895_v52 }
 0x555   : > { %7239 = vpow2.f32 %v2112_v36  ;;  %v2126_v18 = vmul.f32 1.442695, %v2085_v59  ;;  %v2088_v31 = vsub.f32 %v8825_v9, %v8895_v52  ;;  %v2089_v22 = vsub.f32 %v8823_v6, %v8895_v52 }
 0x556   : > { %7241 = vpow2.f32 %v2114_v60  ;;  %v2128_v10 = vmul.f32 1.442695, %v2086_v19  ;;  %v2130_v63 = vmul.f32 1.442695, %v2087_v44  ;;  %v2090_v27 = vsub.f32 %v8829_v45, %v8895_v52 }
 0x557   : > { %7243 = vpow2.f32 %v2116_v30  ;;  %v2132_v43 = vmul.f32 1.442695, %v2088_v31  ;;  %v2091_v56 = vsub.f32 %v8827_v3, %v8895_v52  ;;  %v2134_v60 = vmul.f32 1.442695, %v2089_v22 }
 0x558   : > { %7245 = vpow2.f32 %v2118_v62  ;;  %v2092_v62 = vsub.f32 %v8833_v4, %v8895_v52  ;;  %v2093_v37 = vsub.f32 %v8831_v54, %v8895_v52  ;;  %v2095_v44 = vsub.f32 %v8835_v42, %v8895_v52 }
 0x559   : > { %7247 = vpow2.f32 %v2120_v46  ;;  %v2136_v46 = vmul.f32 1.442695, %v2090_v27  ;;  %v2107_v4 = vsub.f32 %v8884_v15, %v8895_v52  ;;  %v2138_v54 = vmul.f32 1.442695, %v2091_v56 }
 0x55a   : > { %7249 = vpow2.f32 %v2122_v13  ;;  %v2106_v42 = vsub.f32 %v8890_v61, %v8895_v52  ;;  %v2140_v15 = vmul.f32 1.442695, %v2092_v62 }
 0x55b   : > { %7251 = vpow2.f32 %v2124_v14  ;;  %v2094_v14 = vsub.f32 %v8837_v2, %v8895_v52  ;;  %v2097_v2 = vsub.f32 %v8839_v33, %v8895_v52  ;;  %v2142_v33 = vmul.f32 1.442695, %v2093_v37 }
 0x55c   : > { %7253 = vpow2.f32 %v2126_v18 }
 0x55d   : > { %7255 = vpow2.f32 %v2128_v10 }
 0x55e   : > { %7257 = vpow2.f32 %v2130_v63 }
 0x55f   : > { %7259 = vpow2.f32 %v2132_v43  ;;  %v2098_v43 = vsub.f32 %v8845_v32, %v8895_v52  ;;  %v2104_v32 = vsub.f32 %v8878_v1, %v8895_v52 }
 0x560   : > { %v8929_v11 = vpop.eup %7235  ;;  %7261 = vpow2.f32 %v2134_v60  ;;  %v2099_v60 = vsub.f32 %v8843_v8, %v8895_v52 }
 0x561   : > { %v8931_v51 = vpop.eup %7237  ;;  %v2210_v53 = vmul.f32 %v8929_v11, %v8929_v11  ;;  %7263 = vpow2.f32 %v2136_v46  ;;  %v2103_v46 = vsub.f32 %v8860_v47, %v8895_v52 }
 0x562   : > { %v8937_v0 = vpop.eup %7239  ;;  %v2172_v40 = vadd.f32 %v8931_v51, %v8929_v11  ;;  %v2211_v9 = vmul.f32 %v8931_v51, %v8931_v51  ;;  %7265 = vpow2.f32 %v2138_v54 }
 0x563   : > { %v8943_v23 = vpop.eup %7241  ;;  %v2212_v50 = vmul.f32 %v8937_v0, %v8937_v0  ;;  %7267 = vpow2.f32 %v2140_v15  ;;  %v2150_v15 = vmul.f32 1.442695, %v2097_v2 }
 0x564   : > { %v2173_v6 = vadd.f32 %v8937_v0, %v2172_v40  ;;  %v2242_v48 = vadd.f32 %v2211_v9, %v2210_v53  ;;  %v8950_v36 = vpop.eup %7243  ;;  %v2213_v45 = vmul.f32 %v8943_v23, %v8943_v23  ;;  %v2096_v53 = vsub.f32 %v8841_v38, %v8895_v52 }
 0x565   : > { %v8957_v24 = vpop.eup %7245  ;;  %v2214_v59 = vmul.f32 %v8950_v36, %v8950_v36  ;;  %v2105_v38 = vsub.f32 %v8872_v58, %v8895_v52  ;;  %7269 = vpow2.f32 %v2142_v33  ;;  %v2152_v33 = vmul.f32 1.442695, %v2098_v43 }
 0x566   : > { %v2174_v25 = vadd.f32 %v8943_v23, %v2173_v6  ;;  %v2243_v30 = vadd.f32 %v2242_v48, %v2212_v50  ;;  %v8966_v19 = vpop.eup %7247  ;;  %v2215_v31 = vmul.f32 %v8957_v24, %v8957_v24  ;;  %v2170_v6 = vmul.f32 1.442695, %v2107_v4 }
 0x567   : > { %v8977_v22 = vpop.eup %7249  ;;  %v2216_v40 = vmul.f32 %v8966_v19, %v8966_v19  ;;  %v2166_v8 = vmul.f32 1.442695, %v2105_v38  ;;  %v2102_v4 = vsub.f32 %v8866_v16, %v8895_v52  ;;  %v2148_v54 = vmul.f32 1.442695, %v2096_v53 }
 0x568   : > { %v2175_v3 = vadd.f32 %v8950_v36, %v2174_v25  ;;  %v2244_v13 = vadd.f32 %v2243_v30, %v2213_v45  ;;  %v8988_v27 = vpop.eup %7251  ;;  %v2217_v50 = vmul.f32 %v8977_v22, %v8977_v22  ;;  %v2144_v25 = vmul.f32 1.442695, %v2094_v14 }
 0x569   : > { %v8997_v56 = vpop.eup %7253  ;;  %v2168_v45 = vmul.f32 1.442695, %v2106_v42  ;;  %v2218_v30 = vmul.f32 %v8988_v27, %v8988_v27  ;;  %7271 = vpow2.f32 %v2170_v6  ;;  %v2101_v42 = vsub.f32 %v8847_v55, %v8895_v52 }
 0x56a   : > { %v2176_v18 = vadd.f32 %v8957_v24, %v2175_v3  ;;  %v2245_v10 = vadd.f32 %v2244_v13, %v2214_v59  ;;  %v9006_v37 = vpop.eup %7255  ;;  %v2146_v3 = vmul.f32 1.442695, %v2095_v44  ;;  %v2219_v59 = vmul.f32 %v8997_v56, %v8997_v56 }
 0x56b   : > { %v9013_v14 = vpop.eup %7257  ;;  %7273 = vpow2.f32 %v2144_v25  ;;  %v2220_v44 = vmul.f32 %v9006_v37, %v9006_v37  ;;  %v2100_v38 = vsub.f32 %v8851_v57, %v8895_v52  ;;  %v2160_v6 = vmul.f32 1.442695, %v2102_v4 }
 0x56c   : > { %v2177_v63 = vadd.f32 %v8966_v19, %v2176_v18  ;;  %v2246_v9 = vadd.f32 %v2245_v10, %v2215_v31  ;;  %v2164_v18 = vmul.f32 1.442695, %v2104_v32  ;;  %7275 = vpow2.f32 %v2168_v45  ;;  %v9020_v10 = vpop.eup %7259 }
 0x56d   : > { %7277 = vpow2.f32 %v2146_v3  ;;  %v2221_v53 = vmul.f32 %v9013_v14, %v9013_v14  ;;  %v2222_v2 = vmul.f32 %v9020_v10, %v9020_v10  ;;  %v2158_v32 = vmul.f32 1.442695, %v2101_v42 }
 0x56e   : > { %v2178_v61 = vadd.f32 %v8977_v22, %v2177_v63  ;;  %v2247_v48 = vadd.f32 %v2246_v9, %v2216_v40  ;;  %v2162_v63 = vmul.f32 1.442695, %v2103_v46  ;;  %7279 = vpow2.f32 %v2166_v8  ;;  %v7262_v9 = vpop.eup %7261 }
 0x56f   : > { %7281 = vpow2.f32 %v2148_v54  ;;  %v2223_v45 = vmul.f32 %v7262_v9, %v7262_v9  ;;  %v2156_v57 = vmul.f32 1.442695, %v2100_v38 }
 0x570   : > { %v2179_v58 = vadd.f32 %v8988_v27, %v2178_v61  ;;  %v2248_v62 = vadd.f32 %v2247_v48, %v2217_v50  ;;  %7283 = vpow2.f32 %v2164_v18  ;;  %v7264_v50 = vpop.eup %7263  ;;  %v2154_v48 = vmul.f32 1.442695, %v2099_v60 }
 0x571   : > { %7285 = vpow2.f32 %v2150_v15  ;;  %v2224_v43 = vmul.f32 %v7264_v50, %v7264_v50 }
 0x572   : > { %v2180_v1 = vadd.f32 %v8997_v56, %v2179_v58  ;;  %v2249_v13 = vadd.f32 %v2248_v62, %v2218_v30  ;;  %7287 = vpow2.f32 %v2162_v63  ;;  %v7266_v30 = vpop.eup %7265 }
 0x573   : > { %7289 = vpow2.f32 %v2152_v33  ;;  %v9032_v46 = vpop.eup %7267  ;;  %v2225_v60 = vmul.f32 %v7266_v30, %v7266_v30 }
 0x574   : > { %v2181_v47 = vadd.f32 %v9006_v37, %v2180_v1  ;;  %v2250_v31 = vadd.f32 %v2249_v13, %v2219_v59  ;;  %7291 = vpow2.f32 %v2160_v6  ;;  %v9034_v3 = vpop.eup %7269  ;;  %v2226_v54 = vmul.f32 %v9032_v46, %v9032_v46 }
 0x575   : > { %7293 = vpow2.f32 %v2154_v48  ;;  %v2227_v42 = vmul.f32 %v9034_v3, %v9034_v3 }
 0x576   : > { %v2182_v16 = vadd.f32 %v9013_v14, %v2181_v47  ;;  %v2251_v40 = vadd.f32 %v2250_v31, %v2220_v44  ;;  %7295 = vpow2.f32 %v2158_v32  ;;  %v9036_v59 = vpop.eup %7271 }
 0x577   : > { %7297 = vpow2.f32 %v2156_v57  ;;  %6300 = vmatprep.subr.mxu0 %v9036_v59 }
 0x578   : > { %v2183_v55 = vadd.f32 %v9020_v10, %v2182_v16  ;;  %v2252_v61 = vadd.f32 %v2251_v40, %v2221_v53  ;;  %v9038_v13 = vpop.eup %7273  ;;  %6301 = vmatpush3.msra.mxu0 %v7266_v30 }
 0x579   : > { %v9044_v47 = vpop.eup %7275  ;;  %v2228_v40 = vmul.f32 %v9038_v13, %v9038_v13 }
 0x57a   : > { %v2184_v25 = vadd.f32 %v7262_v9, %v2183_v55  ;;  %v2253_v58 = vadd.f32 %v2252_v61, %v2222_v2  ;;  %v9046_v44 = vpop.eup %7277  ;;  %6302 = vmatprep.subr.mxu0 %v9044_v47 }
 0x57b   : > { %v9052_v63 = vpop.eup %7279  ;;  %6303 = vmatpush3.msra.mxu0 %v7264_v50  ;;  %v2229_v2 = vmul.f32 %v9046_v44, %v9046_v44 }
 0x57c   : > { %v2185_v52 = vadd.f32 %v7264_v50, %v2184_v25  ;;  %v2254_v62 = vadd.f32 %v2253_v58, %v2223_v45  ;;  %v7282_v16 = vpop.eup %7281  ;;  %6304 = vmatprep.subr.mxu0 %v9052_v63 }
 0x57d   : > { %v7284_v33 = vpop.eup %7283  ;;  %6305 = vmatpush3.msra.mxu0 %v7262_v9  ;;  %v2230_v25 = vmul.f32 %v7282_v16, %v7282_v16 }
 0x57e   : > { %v2186_v8 = vadd.f32 %v7266_v30, %v2185_v52  ;;  %v2255_v1 = vadd.f32 %v2254_v62, %v2224_v43  ;;  %v7286_v6 = vpop.eup %7285  ;;  %6306 = vmatprep.subr.mxu0 %v7284_v33 }
 0x57f   : > { %v7288_v50 = vpop.eup %7287  ;;  %6307 = vmatpush3.msra.mxu0 %v9020_v10  ;;  %v2231_v57 = vmul.f32 %v7286_v6, %v7286_v6 }
 0x580   : > { %v2187_v4 = vadd.f32 %v9032_v46, %v2186_v8  ;;  %v2256_v18 = vadd.f32 %v2255_v1, %v2225_v60  ;;  %v7290_v48 = vpop.eup %7289  ;;  %6308 = vmatprep.subr.mxu0 %v7288_v50 }
 0x581   : > { %v7292_v58 = vpop.eup %7291  ;;  %6309 = vmatpush3.msra.mxu0 %v9013_v14  ;;  %v2232_v8 = vmul.f32 %v7290_v48, %v7290_v48 }
 0x582   : > { %v2188_v31 = vadd.f32 %v9034_v3, %v2187_v4  ;;  %v2257_v15 = vadd.f32 %v2256_v18, %v2226_v54  ;;  %v7294_v9 = vpop.eup %7293  ;;  %6310 = vmatprep.subr.mxu0 %v7292_v58 }
 0x583   : > { %v7296_v43 = vpop.eup %7295  ;;  %6311 = vmatpush3.msra.mxu0 %v9006_v37  ;;  %v2233_v4 = vmul.f32 %v7294_v9, %v7294_v9 }
 0x584   : > { %v2189_v53 = vadd.f32 %v9038_v13, %v2188_v31  ;;  %v2258_v38 = vadd.f32 %v2257_v15, %v2227_v42  ;;  %6312 = vmatprep.subr.mxu0 %v7296_v43  ;;  %v7298_v60 = vpop.eup %7297  ;;  %v2235_v42 = vmul.f32 %v7296_v43, %v7296_v43 }
 0x585   : > { %6313 = vmatpush3.msra.mxu0 %v8997_v56  ;;  %v2234_v18 = vmul.f32 %v7298_v60, %v7298_v60  ;;  %v2236_v56 = vmul.f32 %v7292_v58, %v7292_v58 }
 0x586   : > { %v2190_v55 = vadd.f32 %v9046_v44, %v2189_v53  ;;  %v2259_v61 = vadd.f32 %v2258_v38, %v2228_v40  ;;  %6314 = vmatprep.subr.mxu0 %v7298_v60 }
 0x587   : > { %6315 = vmatpush3.msra.mxu0 %v8988_v27  ;;  %v2237_v27 = vmul.f32 %v7288_v50, %v7288_v50 }
 0x588   : > { %v2191_v32 = vadd.f32 %v7282_v16, %v2190_v55  ;;  %v2260_v45 = vadd.f32 %v2259_v61, %v2229_v2  ;;  %6316 = vmatprep.subr.mxu0 %v7294_v9 }
 0x589   : > { %6317 = vmatpush3.msra.mxu0 %v8977_v22  ;;  %v2238_v22 = vmul.f32 %v7284_v33, %v7284_v33 }
 0x58a   : > { %v2192_v30 = vadd.f32 %v7286_v6, %v2191_v32  ;;  %v2261_v52 = vadd.f32 %v2260_v45, %v2230_v25  ;;  %6318 = vmatprep.subr.mxu0 %v7290_v48  ;;  %v11280_v25 = vld [vmem:[#allocation39_spill] sm:$0xff]  ;;  %v11281_v45 = vld [vmem:[#allocation40_spill] sm:$0xff] }
 0x58b   : > { %6319 = vmatpush3.msra.mxu0 %v8966_v19 }
 0x58c   : > { %v2193_v62 = vadd.f32 %v7290_v48, %v2192_v30  ;;  %v2262_v10 = vadd.f32 %v2261_v52, %v2231_v57  ;;  %6320 = vmatprep.subr.mxu0 %v7286_v6  ;;  %v11283_v30 = vld [vmem:[#allocation44_spill] sm:$0xff]  ;;  %v11284_v57 = vld [vmem:[#allocation45_spill] sm:$0xff]  ;;  %v11285_v52 = vld [vmem:[#allocation46_spill] sm:$0xff] }
 0x58d   : > { %6321 = vmatpush3.msra.mxu0 %v8957_v24  ;;  %v2239_v24 = vmul.f32 %v9052_v63, %v9052_v63 }
 0x58e   : > { %v2194_v1 = vadd.f32 %v7294_v9, %v2193_v62  ;;  %v2263_v54 = vadd.f32 %v2262_v10, %v2232_v8  ;;  %6322 = vmatprep.subr.mxu0 %v7282_v16  ;;  %v11282_v9 = vld [vmem:[#allocation41_spill] sm:$0xff]  ;;  %v11287_v62 = vld [vmem:[#allocation48_spill] sm:$0xff]  ;;  %v11289_v10 = vld [vmem:[#allocation50_spill] sm:$0xff] }
 0x58f   : > { %6323 = vmatpush3.msra.mxu0 %v8950_v36  ;;  %v2240_v36 = vmul.f32 %v9044_v47, %v9044_v47  ;;  %v11288_v8 = vld [vmem:[#allocation49_spill] sm:$0xff] }
 0x590   : > { %v2195_v14 = vadd.f32 %v7298_v60, %v2194_v1  ;;  %v2264_v31 = vadd.f32 %v2263_v54, %v2233_v4  ;;  %6324 = vmatprep.subr.mxu0 %v9046_v44  ;;  %v11290_v60 = vld [vmem:[#allocation51_spill] sm:$0xff]  ;;  %v11291_v1 = vld [vmem:[#allocation52_spill] sm:$0xff]  ;;  %v11292_v4 = vld [vmem:[#allocation53_spill] sm:$0xff] }
 0x591   : > { %6325 = vmatpush3.msra.mxu0 %v8943_v23  ;;  %v11293_v54 = vld [vmem:[#allocation54_spill] sm:$0xff] }
 0x592   : > { %v2196_v37 = vadd.f32 %v7296_v43, %v2195_v14  ;;  %v2265_v15 = vadd.f32 %v2264_v31, %v2234_v18  ;;  %6326 = vmatprep.subr.mxu0 %v9038_v13  ;;  %v2366_v13 = vmul.f32 0.35355338, %v11273_v26  ;;  %v11286_v43 = vld [vmem:[#allocation47_spill] sm:$0xff]  ;;  %v11294_v14 = vld [vmem:[#allocation12_spill] sm:$0xff]  ;;  %v11295_v18 = vld [vmem:[#allocation13_spill] sm:$0xff] }
 0x593   : > { %6327 = vmatpush3.msra.mxu0 %v8937_v0  ;;  %v11296_v31 = vld [vmem:[#allocation15_spill] sm:$0xff] }
 0x594   : > { %v2197_v53 = vadd.f32 %v7292_v58, %v2196_v37  ;;  %v2266_v40 = vadd.f32 %v2265_v15, %v2235_v42  ;;  %6328 = vmatprep.subr.mxu0 %v9034_v3  ;;  %v11297_v37 = vld [vmem:[#allocation17_spill] sm:$0xff]  ;;  %v11298_v42 = vld [vmem:[#allocation18_spill] sm:$0xff]  ;;  %v11299_v15 = vld [vmem:[#allocation43_spill] sm:$0xff] }
 0x595   : > { %6329 = vmatpush3.msra.mxu0 %v8931_v51 }
 0x596   : > { %v2198_v38 = vadd.f32 %v7288_v50, %v2197_v53  ;;  %v2267_v55 = vadd.f32 %v2266_v40, %v2236_v56  ;;  %6330 = vmatprep.subr.mxu0 %v9032_v46 }
 0x597   : > { %6331 = vmatpush3.msra.mxu0 %v8929_v11 }
 0x598   : > { %v2199_v2 = vadd.f32 %v7284_v33, %v2198_v38  ;;  %v2268_v61 = vadd.f32 %v2267_v55, %v2237_v27  ;;  %2358 = vmatmul.mubr.f32.vlgmr.msra.gmra.mxu0 %v11219_v29  ;;  %6825 = vmatprep.subr.mxu0 %v2366_v13 }
 0x599   : > { %6826 = vmatpush3.msra.mxu0 %v2366_v13  ;;  %6827 = vmatprep.mubr.msk.f32.mxu0 %vm446_vm1, %v11240_v34 }
 0x59a   : > { %v2200_v19 = vadd.f32 %v9052_v63, %v2199_v2  ;;  %v2269_v6 = vadd.f32 %v2268_v61, %v2238_v22  ;;  %v2241_v63 = vmul.f32 %v9036_v59, %v9036_v59 }
 0x59c   : > { %v2201_v16 = vadd.f32 %v9044_v47, %v2200_v19  ;;  %v2270_v44 = vadd.f32 %v2269_v6, %v2239_v24  ;;  %6828 = vmatmul.mubr.msk.f32.vlgmr.msra.gmra.mxu0 %vm446_vm1, %v11242_v35 }
 0x59d   : > { %6830 = vmatprep.mubr.msk.f32.mxu0 %vm446_vm1, %v11243_v20  ;;  %v11275_v20 = vld [vmem:[#allocation35_spill] sm:$0xff] }
 0x59e   : > { %v2202_v23 = vadd.f32 %v9036_v59, %v2201_v16  ;;  %v2271_v0 = vadd.f32 %v2270_v44, %v2240_v36 }
 0x5a0   : > { %v2203_v33 = vrot.slane %v2202_v23, 4  ;;  %v2272_v3 = vadd.f32 %v2271_v0, %v2241_v63  ;;  %6831 = vmatmul.mubr.msk.f32.gmra.mxu0 %vm446_vm1, %v11244_v21 }
 0x5a1   : > { %6833 = vmatprep.mubr.msk.f32.mxu0 %vm446_vm1, %v11245_v5  ;;  %v11276_v5 = vld [vmem:[#allocation36_spill] sm:$0xff] }
 0x5a2   : > { %v2204_v51 = vadd.f32 %v2203_v33, %v2202_v23  ;;  %v2273_v46 = vrot.slane %v2272_v3, 4 }
 0x5a4   : > { %v2205_v26 = vrot.slane %v2204_v51, 2  ;;  %v2274_v47 = vadd.f32 %v2273_v46, %v2272_v3  ;;  %6834 = vmatmul.mubr.msk.f32.gmra.mxu0 %vm446_vm1, %v11247_v28  ;;  %v11277_v28 = vld [vmem:[#allocation37_spill] sm:$0xff] }
 0x5a5   : > { %6836 = vmatprep.mubr.msk.f32.mxu0 %vm446_vm1, %v11248_v7  ;;  %v11279_v7 = vld [vmem:[#allocation38_spill] sm:$0xff] }
 0x5a6   : > { %v2206_v59 = vadd.f32 %v2205_v26, %v2204_v51  ;;  %v2275_v34 = vrot.slane %v2274_v47, 2 }
 0x5a8   : > { %v2207_v11 = vrot.slane %v2206_v59, 1  ;;  %6837 = vmatmul.mubr.msk.f32.gmra.mxu0 %vm446_vm1, %v11250_v12  ;;  %v2276_v35 = vadd.f32 %v2275_v34, %v2274_v47 }
 0x5a9   : > { %6839 = vmatprep.mubr.msk.f32.mxu0 %vm446_vm1, %v11251_v39 }
 0x5aa   : > { %v2208_v50 = vadd.f32 %v2207_v11, %v2206_v59  ;;  %v2277_v21 = vrot.slane %v2276_v35, 1 }
 0x5ac   : > { %7299 = vrcp.f32 %v2208_v50  ;;  %6840 = vmatmul.mubr.msk.f32.gmra.mxu0 %vm446_vm1, %v11275_v20  ;;  %v2278_v48 = vadd.f32 %v2277_v21, %v2276_v35 }
 0x5ad   : > { %6842 = vmatprep.mubr.msk.f32.mxu0 %vm446_vm1, %v11276_v5 }
 0x5b0   : > { %6843 = vmatmul.mubr.msk.f32.gmra.mxu0 %vm446_vm1, %v11277_v28 }
 0x5b1   : > { %6845 = vmatprep.mubr.msk.f32.mxu0 %vm446_vm1, %v11279_v7 }
 0x5b4   : > { %6846 = vmatmul.mubr.msk.f32.gmra.mxu0 %vm446_vm1, %v11280_v25 }
 0x5b5   : > { %6848 = vmatprep.mubr.msk.f32.mxu0 %vm446_vm1, %v11281_v45 }
 0x5b8   : > { %6849 = vmatmul.mubr.msk.f32.gmra.mxu0 %vm446_vm1, %v11282_v9 }
 0x5b9   : > { %v9113_v32 = vpop.eup %7299  ;;  %6851 = vmatprep.mubr.msk.f32.mxu0 %vm446_vm1, %v11283_v30 }
 0x5ba   : > { %11278 = vst [vmem:[#allocation25_spill] sm:$0xff] %v9113_v32  ;;  %v2279_v12 = vmul.f32 %v9113_v32, %v2278_v48 }
 0x5bc   : > { %v2280_v39 = vmul.f32 %v9113_v32, %v2279_v12  ;;  %6852 = vmatmul.mubr.msk.f32.gmra.mxu0 %vm446_vm1, %v11284_v57 }
 0x5bd   : > { %6854 = vmatprep.mubr.msk.f32.mxu0 %vm446_vm1, %v11285_v52 }
 0x5be   : > { %v2281_v58 = vsel %vm1010_vm2, %v2280_v39, 0.0 }
 0x5bf   : > { %2282 = vadd.xlane.f32.xlu0 %v2281_v58 }
 0x5c0   : > { %6855 = vmatmul.mubr.msk.f32.gmra.mxu0 %vm446_vm1, %v11286_v43 }
 0x5c1   : > { %6857 = vmatprep.mubr.msk.f32.mxu0 %vm446_vm1, %v11287_v62 }
 0x5c4   : > { %6858 = vmatmul.mubr.msk.f32.gmra.mxu0 %vm446_vm1, %v11288_v8 }
 0x5c5   : > { %6860 = vmatprep.mubr.msk.f32.mxu0 %vm446_vm1, %v11289_v10 }
 0x5c8   : > { %6861 = vmatmul.mubr.msk.f32.gmra.mxu0 %vm446_vm1, %v11290_v60 }
 0x5c9   : > { %6863 = vmatprep.mubr.msk.f32.mxu0 %vm446_vm1, %v11291_v1 }
 0x5cc   : > { %6864 = vmatmul.mubr.msk.f32.gmra.mxu0 %vm446_vm1, %v11292_v4 }
 0x5cd   : > { %6866 = vmatprep.mubr.msk.f32.mxu0 %vm446_vm1, %v11293_v54 }
 0x5d0   : > { %6867 = vmatmul.mubr.msk.f32.gmra.mxu0 %vm446_vm1, %v11294_v14 }
 0x5d1   : > { %6869 = vmatprep.mubr.msk.f32.mxu0 %vm446_vm1, %v11295_v18 }
 0x5d4   : > { %6870 = vmatmul.mubr.msk.f32.gmra.mxu0 %vm446_vm1, %v11296_v31 }
 0x5d5   : > { %6872 = vmatprep.mubr.msk.f32.mxu0 %vm446_vm1, %v11297_v37 }
 0x5d8   : > { %6873 = vmatmul.mubr.msk.f32.gmra.mxu0 %vm446_vm1, %v11298_v42 }
 0x5d9   : > { %3627 = vmatprep.mubr.f32.mxu0 %v11299_v15 }
 0x648   : > { %v2283_v53 = vpop.xlane.xlu0 %2282 }
 0x649   : > { %v2284_v56 = vrot.slane %v2283_v53, 4 }
 0x64b   : > { %v2285_v40 = vadd.f32 %v2284_v56, %v2283_v53 }
 0x64d   : > { %v2286_v38 = vrot.slane %v2285_v40, 2 }
 0x64f   : > { %v2287_v27 = vadd.f32 %v2286_v38, %v2285_v40 }
 0x651   : > { %v2288_v55 = vrot.slane %v2287_v27, 1 }
 0x653   : > { %v2289_v2 = vadd.f32 %v2288_v55, %v2287_v27 }
 0x655   : > { %7079 = vpush %v2289_v2 }
 0x658   : > { %v6332_v22 = vpop.f32.mrf.mxu0 }
 0x65a   : > { %v6333_v61 = vpop.f32.mrf.mxu0 }
 0x65b   : > { %v9159_v19 = vadd.f32 %v6333_v61, %v6332_v22 }
 0x65c   : > { %v9161_v24 = vpop.f32.mrf.mxu0 }
 0x65d   : > { %11300 = vst [vmem:[#allocation35_spill] sm:$0xff] %v9159_v19 }
 0x65e   : > { %v9163_v6 = vpop.f32.mrf.mxu0 }
 0x660   : > { %v9165_v16 = vpop.f32.mrf.mxu0 }
 0x662   : > { %v9167_v36 = vpop.f32.mrf.mxu0 }
 0x664   : > { %v9169_v44 = vpop.f32.mrf.mxu0 }
 0x665   : > { %v2593_v25 = vmax.f32 %v9161_v24, %v9169_v44 }
 0x666   : > { %v9171_v23 = vpop.f32.mrf.mxu0 }
 0x667   : > { %v2592_v7 = vmax.f32 %v9163_v6, %v9171_v23 }
 0x668   : > { %v9173_v13 = vpop.f32.mrf.mxu0 }
 0x669   : > { %v2595_v39 = vmax.f32 %v9165_v16, %v9173_v13 }
 0x66a   : > { %v9175_v63 = vpop.f32.mrf.mxu0 }
 0x66b   : > { %v2594_v45 = vmax.f32 %v9167_v36, %v9175_v63 }
 0x66c   : > { %v9177_v0 = vpop.f32.mrf.mxu0 }
 0x66d   : > { %v2597_v30 = vmax.f32 %v2593_v25, %v9177_v0 }
 0x66e   : > { %v9179_v33 = vpop.f32.mrf.mxu0 }
 0x66f   : > { %v2596_v58 = vmax.f32 %v2592_v7, %v9179_v33 }
 0x670   : > { %v9181_v3 = vpop.f32.mrf.mxu0 }
 0x671   : > { %v2599_v57 = vmax.f32 %v2595_v39, %v9181_v3 }
 0x672   : > { %v9183_v51 = vpop.f32.mrf.mxu0 }
 0x673   : > { %v2598_v52 = vmax.f32 %v2594_v45, %v9183_v51 }
 0x674   : > { %v9185_v26 = vpop.f32.mrf.mxu0 }
 0x675   : > { %v2601_v8 = vmax.f32 %v2597_v30, %v9185_v26 }
 0x676   : > { %v9187_v46 = vpop.f32.mrf.mxu0 }
 0x677   : > { %v2600_v43 = vmax.f32 %v2596_v58, %v9187_v46 }
 0x678   : > { %v9189_v59 = vpop.f32.mrf.mxu0 }
 0x679   : > { %v2603_v10 = vmax.f32 %v2599_v57, %v9189_v59 }
 0x67a   : > { %v9191_v11 = vpop.f32.mrf.mxu0 }
 0x67b   : > { %v2602_v60 = vmax.f32 %v2598_v52, %v9191_v11 }
 0x67c   : > { %v9193_v47 = vpop.f32.mrf.mxu0 }
 0x67d   : > { %v2605_v54 = vmax.f32 %v2601_v8, %v9193_v47 }
 0x67e   : > { %v9195_v50 = vpop.f32.mrf.mxu0 }
 0x67f   : > { %v2604_v1 = vmax.f32 %v2600_v43, %v9195_v50 }
 0x680   : > { %v9197_v34 = vpop.f32.mrf.mxu0 }
 0x681   : > { %v2607_v14 = vmax.f32 %v2603_v10, %v9197_v34 }
 0x682   : > { %v9199_v35 = vpop.f32.mrf.mxu0 }
 0x683   : > { %v2606_v18 = vmax.f32 %v2602_v60, %v9199_v35 }
 0x684   : > { %v9201_v20 = vpop.f32.mrf.mxu0 }
 0x685   : > { %v2609_v42 = vmax.f32 %v2605_v54, %v9201_v20 }
 0x686   : > { %v9203_v21 = vpop.f32.mrf.mxu0  ;;  %s7080_s24 = spop %7079 }
 0x687   : > { %v2608_v31 = vmax.f32 %v2604_v1, %v9203_v21 }
 0x688   : > { %v9205_v5 = vpop.f32.mrf.mxu0 }
 0x689   : > { %v2611_v53 = vmax.f32 %v2607_v14, %v9205_v5 }
 0x68a   : > { %v9207_v28 = vpop.f32.mrf.mxu0 }
 0x68b   : > { %v2610_v56 = vmax.f32 %v2606_v18, %v9207_v28 }
 0x68c   : > { %v9209_v48 = vpop.f32.mrf.mxu0 }
 0x68d   : > { %v2613_v27 = vmax.f32 %v2609_v42, %v9209_v48 }
 0x68e   : > { %v9213_v12 = vpop.f32.mrf.mxu0 }
 0x68f   : > { %v2612_v40 = vmax.f32 %v2608_v31, %v9213_v12 }
 0x690   : > { %v9222_v9 = vpop.f32.mrf.mxu0 }
 0x691   : > { %v2615_v55 = vmax.f32 %v2611_v53, %v9222_v9 }
 0x692   : > { %v9228_v62 = vpop.f32.mrf.mxu0 }
 0x693   : > { %v2614_v2 = vmax.f32 %v2610_v56, %v9228_v62 }
 0x694   : > { %v9234_v4 = vpop.f32.mrf.mxu0 }
 0x695   : > { %v2617_v7 = vmax.f32 %v2613_v27, %v9234_v4 }
 0x696   : > { %v9240_v37 = vpop.f32.mrf.mxu0 }
 0x697   : > { %v2616_v22 = vmax.f32 %v2612_v40, %v9240_v37 }
 0x698   : > { %v9246_v38 = vpop.f32.mrf.mxu0 }
 0x699   : > { %v2619_v25 = vmax.f32 %v2615_v55, %v9246_v38  ;;  %v2620_v45 = vmax.f32 %v2616_v22, %v2617_v7 }
 0x69a   : > { %v9252_v61 = vpop.f32.mrf.mxu0 }
 0x69b   : > { %v2618_v39 = vmax.f32 %v2614_v2, %v9252_v61 }
 0x69d   : > { %v2621_v58 = vmax.f32 %v2618_v39, %v2619_v25 }
 0x69f   : > { %v2622_v30 = vmax.f32 %v2620_v45, %v2621_v58 }
 0x6a1   : > { %v2623_v57 = vrot.slane %v2622_v30, 4 }
 0x6a3   : > { %v2624_v52 = vmax.f32 %v2622_v30, %v2623_v57 }
 0x6a5   : > { %v2625_v43 = vrot.slane %v2624_v52, 2 }
 0x6a7   : > { %v2626_v8 = vmax.f32 %v2624_v52, %v2625_v43 }
 0x6a9   : > { %v2627_v10 = vrot.slane %v2626_v8, 1 }
 0x6ab   : > { %v9257_v60 = vmax.f32 %v2626_v8, %v2627_v10 }
 0x6ad   : > { %v2629_v1 = vsub.f32 %v9163_v6, %v9257_v60  ;;  %v2630_v54 = vsub.f32 %v9161_v24, %v9257_v60  ;;  %v2631_v14 = vsub.f32 %v9167_v36, %v9257_v60  ;;  %v2632_v18 = vsub.f32 %v9165_v16, %v9257_v60 }
 0x6ae   : > { %v2633_v31 = vsub.f32 %v9171_v23, %v9257_v60  ;;  %v2634_v40 = vsub.f32 %v9169_v44, %v9257_v60  ;;  %v2635_v24 = vsub.f32 %v9175_v63, %v9257_v60  ;;  %v2636_v16 = vsub.f32 %v9173_v13, %v9257_v60 }
 0x6af   : > { %v2661_v42 = vmul.f32 1.442695, %v2629_v1  ;;  %v2663_v53 = vmul.f32 1.442695, %v2630_v54  ;;  %v2665_v56 = vmul.f32 1.442695, %v2631_v14  ;;  %v2637_v23 = vsub.f32 %v9179_v33, %v9257_v60 }
 0x6b0   : > { %v2667_v27 = vmul.f32 1.442695, %v2632_v18  ;;  %v2669_v6 = vmul.f32 1.442695, %v2633_v31  ;;  %v2671_v36 = vmul.f32 1.442695, %v2634_v40  ;;  %v2638_v44 = vsub.f32 %v9177_v0, %v9257_v60 }
 0x6b1   : > { %7301 = vpow2.f32 %v2661_v42  ;;  %v2673_v55 = vmul.f32 1.442695, %v2635_v24  ;;  %v2675_v2 = vmul.f32 1.442695, %v2636_v16  ;;  %v2639_v63 = vsub.f32 %v9183_v51, %v9257_v60 }
 0x6b2   : > { %7303 = vpow2.f32 %v2663_v53  ;;  %v2677_v22 = vmul.f32 1.442695, %v2637_v23  ;;  %v2640_v13 = vsub.f32 %v9181_v3, %v9257_v60  ;;  %v2679_v7 = vmul.f32 1.442695, %v2638_v44 }
 0x6b3   : > { %7305 = vpow2.f32 %v2665_v56  ;;  %v2641_v33 = vsub.f32 %v9187_v46, %v9257_v60  ;;  %v2681_v39 = vmul.f32 1.442695, %v2639_v63  ;;  %v2642_v45 = vsub.f32 %v9185_v26, %v9257_v60 }
 0x6b4   : > { %7307 = vpow2.f32 %v2667_v27  ;;  %v2683_v3 = vmul.f32 1.442695, %v2640_v13  ;;  %v2643_v52 = vsub.f32 %v9191_v11, %v9257_v60  ;;  %v2644_v54 = vsub.f32 %v9189_v59, %v9257_v60 }
 0x6b5   : > { %7309 = vpow2.f32 %v2669_v6  ;;  %v2685_v43 = vmul.f32 1.442695, %v2641_v33  ;;  %v2687_v14 = vmul.f32 1.442695, %v2642_v45  ;;  %v2645_v53 = vsub.f32 %v9195_v50, %v9257_v60 }
 0x6b6   : > { %7311 = vpow2.f32 %v2671_v36  ;;  %v2646_v56 = vsub.f32 %v9193_v47, %v9257_v60  ;;  %v2689_v40 = vmul.f32 1.442695, %v2643_v52  ;;  %v2647_v16 = vsub.f32 %v9199_v35, %v9257_v60 }
 0x6b7   : > { %7313 = vpow2.f32 %v2673_v55  ;;  %v2648_v36 = vsub.f32 %v9197_v34, %v9257_v60  ;;  %v2660_v50 = vsub.f32 %v9246_v38, %v9257_v60  ;;  %v2691_v47 = vmul.f32 1.442695, %v2644_v54 }
 0x6b8   : > { %7315 = vpow2.f32 %v2675_v2  ;;  %v2649_v63 = vsub.f32 %v9203_v21, %v9257_v60  ;;  %v2650_v35 = vsub.f32 %v9201_v20, %v9257_v60  ;;  %v2659_v34 = vsub.f32 %v9252_v61, %v9257_v60 }
 0x6b9   : > { %7317 = vpow2.f32 %v2677_v22  ;;  %v2693_v38 = vmul.f32 1.442695, %v2645_v53  ;;  %v2658_v21 = vsub.f32 %v9234_v4, %v9257_v60  ;;  %v2695_v20 = vmul.f32 1.442695, %v2646_v56 }
 0x6ba   : > { %7319 = vpow2.f32 %v2679_v7  ;;  %v2723_v45 = vmul.f32 1.442695, %v2660_v50  ;;  %v2697_v52 = vmul.f32 1.442695, %v2647_v16  ;;  %v2656_v54 = vsub.f32 %v9222_v9, %v9257_v60 }
 0x6bb   : > { %7321 = vpow2.f32 %v2681_v39  ;;  %v2651_v39 = vsub.f32 %v9207_v28, %v9257_v60  ;;  %v2657_v28 = vsub.f32 %v9240_v37, %v9257_v60  ;;  %v2655_v53 = vsub.f32 %v9228_v62, %v9257_v60 }
 0x6bc   : > { %7323 = vpow2.f32 %v2683_v3  ;;  %v2701_v56 = vmul.f32 1.442695, %v2649_v63  ;;  %v2654_v16 = vsub.f32 %v9209_v48, %v9257_v60  ;;  %v2715_v50 = vmul.f32 1.442695, %v2656_v54 }
 0x6bd   : > { %7325 = vpow2.f32 %v2685_v43  ;;  %v2721_v43 = vmul.f32 1.442695, %v2659_v34  ;;  %v2705_v63 = vmul.f32 1.442695, %v2651_v39  ;;  %v2713_v34 = vmul.f32 1.442695, %v2655_v53 }
 0x6be   : > { %v9285_v25 = vpop.eup %7301  ;;  %7327 = vpow2.f32 %v2687_v14  ;;  %v2699_v14 = vmul.f32 1.442695, %v2648_v36  ;;  %v2703_v36 = vmul.f32 1.442695, %v2650_v35 }
 0x6bf   : > { %v9287_v0 = vpop.eup %7303  ;;  %v2763_v51 = vmul.f32 %v9285_v25, %v9285_v25  ;;  %7329 = vpow2.f32 %v2689_v40  ;;  %v2717_v40 = vmul.f32 1.442695, %v2657_v28 }
 0x6c0   : > { %v9293_v58 = vpop.eup %7305  ;;  %v2725_v30 = vadd.f32 %v9287_v0, %v9285_v25  ;;  %v2764_v46 = vmul.f32 %v9287_v0, %v9287_v0  ;;  %7331 = vpow2.f32 %v2691_v47 }
 0x6c1   : > { %v9299_v57 = vpop.eup %7307  ;;  %v2765_v8 = vmul.f32 %v9293_v58, %v9293_v58  ;;  %7333 = vpow2.f32 %v2693_v38 }
 0x6c2   : > { %v2726_v26 = vadd.f32 %v9293_v58, %v2725_v30  ;;  %v2795_v10 = vadd.f32 %v2764_v46, %v2763_v51  ;;  %v9306_v1 = vpop.eup %7309  ;;  %v2766_v11 = vmul.f32 %v9299_v57, %v9299_v57  ;;  %v2652_v46 = vsub.f32 %v9205_v5, %v9257_v60 }
 0x6c3   : > { %v9313_v42 = vpop.eup %7311  ;;  %v2767_v27 = vmul.f32 %v9306_v1, %v9306_v1  ;;  %7335 = vpow2.f32 %v2695_v20  ;;  %v2719_v5 = vmul.f32 1.442695, %v2658_v21 }
 0x6c4   : > { %v2727_v18 = vadd.f32 %v9299_v57, %v2726_v26  ;;  %v2796_v31 = vadd.f32 %v2795_v10, %v2765_v8  ;;  %v9322_v6 = vpop.eup %7313  ;;  %v2768_v55 = vmul.f32 %v9313_v42, %v9313_v42  ;;  %7337 = vpow2.f32 %v2723_v45 }
 0x6c5   : > { %v9333_v2 = vpop.eup %7315  ;;  %v2769_v13 = vmul.f32 %v9322_v6, %v9322_v6  ;;  %7339 = vpow2.f32 %v2697_v52 }
 0x6c6   : > { %v2728_v59 = vadd.f32 %v9306_v1, %v2727_v18  ;;  %v2797_v24 = vadd.f32 %v2796_v31, %v2766_v11  ;;  %v9344_v33 = vpop.eup %7317  ;;  %v2770_v51 = vmul.f32 %v9333_v2, %v9333_v2  ;;  %7341 = vpow2.f32 %v2721_v43 }
 0x6c7   : > { %v9353_v30 = vpop.eup %7319  ;;  %v2771_v26 = vmul.f32 %v9344_v33, %v9344_v33  ;;  %7343 = vpow2.f32 %v2699_v14 }
 0x6c8   : > { %v2729_v23 = vadd.f32 %v9313_v42, %v2728_v59  ;;  %v2798_v44 = vadd.f32 %v2797_v24, %v2767_v27  ;;  %v9362_v10 = vpop.eup %7321  ;;  %v2772_v18 = vmul.f32 %v9353_v30, %v9353_v30  ;;  %7345 = vpow2.f32 %v2719_v5 }
 0x6c9   : > { %v9369_v31 = vpop.eup %7323  ;;  %v2773_v59 = vmul.f32 %v9362_v10, %v9362_v10  ;;  %7347 = vpow2.f32 %v2701_v56 }
 0x6ca   : > { %v2730_v22 = vadd.f32 %v9322_v6, %v2729_v23  ;;  %v2799_v7 = vadd.f32 %v2798_v44, %v2768_v55  ;;  %v9376_v24 = vpop.eup %7325  ;;  %v2774_v47 = vmul.f32 %v9369_v31, %v9369_v31  ;;  %v2653_v44 = vsub.f32 %v9213_v12, %v9257_v60 }
 0x6cb   : > { %v7328_v55 = vpop.eup %7327  ;;  %7349 = vpow2.f32 %v2717_v40  ;;  %v2775_v35 = vmul.f32 %v9376_v24, %v9376_v24 }
 0x6cc   : > { %v2731_v61 = vadd.f32 %v9333_v2, %v2730_v22  ;;  %v2800_v3 = vadd.f32 %v2799_v7, %v2769_v13  ;;  %v7330_v22 = vpop.eup %7329  ;;  %7351 = vpow2.f32 %v2703_v36  ;;  %v2707_v13 = vmul.f32 1.442695, %v2652_v46 }
 0x6cd   : > { %v2711_v7 = vmul.f32 1.442695, %v2654_v16  ;;  %7353 = vpow2.f32 %v2715_v50  ;;  %v2776_v20 = vmul.f32 %v7328_v55, %v7328_v55  ;;  %v2709_v12 = vmul.f32 1.442695, %v2653_v44 }
 0x6ce   : > { %v2732_v4 = vadd.f32 %v9344_v33, %v2731_v61  ;;  %v2801_v8 = vadd.f32 %v2800_v3, %v2770_v51  ;;  %v7332_v61 = vpop.eup %7331  ;;  %7355 = vpow2.f32 %v2705_v63  ;;  %v2777_v39 = vmul.f32 %v7330_v22, %v7330_v22 }
 0x6cf   : > { %7357 = vpow2.f32 %v2713_v34  ;;  %v9388_v3 = vpop.eup %7333  ;;  %v2778_v46 = vmul.f32 %v7332_v61, %v7332_v61 }
 0x6d0   : > { %v2733_v37 = vadd.f32 %v9353_v30, %v2732_v4  ;;  %v2802_v11 = vadd.f32 %v2801_v8, %v2771_v26  ;;  %7359 = vpow2.f32 %v2707_v13  ;;  %v9390_v28 = vpop.eup %7335  ;;  %v2779_v54 = vmul.f32 %v9388_v3, %v9388_v3 }
 0x6d1   : > { %7361 = vpow2.f32 %v2711_v7  ;;  %v9392_v4 = vpop.eup %7337 }
 0x6d2   : > { %v2734_v9 = vadd.f32 %v9362_v10, %v2733_v37  ;;  %v2803_v27 = vadd.f32 %v2802_v11, %v2772_v18  ;;  %v9394_v26 = vpop.eup %7339  ;;  %7363 = vpow2.f32 %v2709_v12  ;;  %6368 = vmatprep.subr.mxu1 %v9392_v4  ;;  %v2780_v11 = vmul.f32 %v9390_v28, %v9390_v28 }
 0x6d3   : > { %v9400_v5 = vpop.eup %7341  ;;  %6369 = vmatpush3.msra.mxu1 %v7332_v61 }
 0x6d4   : > { %v2735_v62 = vadd.f32 %v9369_v31, %v2734_v9  ;;  %v2804_v23 = vadd.f32 %v2803_v27, %v2773_v59  ;;  %v9402_v37 = vpop.eup %7343  ;;  %6370 = vmatprep.subr.mxu1 %v9400_v5  ;;  %v2781_v59 = vmul.f32 %v9394_v26, %v9394_v26 }
 0x6d5   : > { %v9408_v56 = vpop.eup %7345  ;;  %6371 = vmatpush3.msra.mxu1 %v7330_v22 }
 0x6d6   : > { %v2736_v48 = vadd.f32 %v9376_v24, %v2735_v62  ;;  %v2805_v38 = vadd.f32 %v2804_v23, %v2774_v47  ;;  %v7348_v40 = vpop.eup %7347  ;;  %6372 = vmatprep.subr.mxu1 %v9408_v56  ;;  %v2782_v62 = vmul.f32 %v9402_v37, %v9402_v37 }
 0x6d7   : > { %6373 = vmatpush3.msra.mxu1 %v7328_v55  ;;  %v2783_v34 = vmul.f32 %v7348_v40, %v7348_v40 }
 0x6d8   : > { %v2737_v21 = vadd.f32 %v7328_v55, %v2736_v48  ;;  %v2806_v45 = vadd.f32 %v2805_v38, %v2775_v35  ;;  %v7350_v16 = vpop.eup %7349 }
 0x6d9   : > { %v7352_v36 = vpop.eup %7351  ;;  %6374 = vmatprep.subr.mxu1 %v7350_v16 }
 0x6da   : > { %v2738_v60 = vadd.f32 %v7330_v22, %v2737_v21  ;;  %v2807_v51 = vadd.f32 %v2806_v45, %v2776_v20  ;;  %v7354_v23 = vpop.eup %7353  ;;  %6375 = vmatpush3.msra.mxu1 %v9376_v24  ;;  %v2784_v22 = vmul.f32 %v7352_v36, %v7352_v36 }
 0x6db   : > { %v7356_v44 = vpop.eup %7355  ;;  %6376 = vmatprep.subr.mxu1 %v7354_v23 }
 0x6dc   : > { %v2739_v52 = vadd.f32 %v7332_v61, %v2738_v60  ;;  %v2808_v43 = vadd.f32 %v2807_v51, %v2777_v39  ;;  %v7358_v35 = vpop.eup %7357  ;;  %6377 = vmatpush3.msra.mxu1 %v9369_v31  ;;  %v2785_v20 = vmul.f32 %v7356_v44, %v7356_v44 }
 0x6dd   : > { %v7360_v55 = vpop.eup %7359  ;;  %6378 = vmatprep.subr.mxu1 %v7358_v35 }
 0x6de   : > { %v2740_v8 = vadd.f32 %v9388_v3, %v2739_v52  ;;  %v2809_v14 = vadd.f32 %v2808_v43, %v2778_v46  ;;  %v7362_v7 = vpop.eup %7361  ;;  %6379 = vmatpush3.msra.mxu1 %v9362_v10  ;;  %v2786_v12 = vmul.f32 %v7360_v55, %v7360_v55 }
 0x6df   : > { %6380 = vmatprep.subr.mxu1 %v7362_v7  ;;  %v7364_v45 = vpop.eup %7363  ;;  %v2788_v52 = vmul.f32 %v7362_v7, %v7362_v7 }
 0x6e0   : > { %v2741_v18 = vadd.f32 %v9390_v28, %v2740_v8  ;;  %v2810_v53 = vadd.f32 %v2809_v14, %v2779_v54  ;;  %6381 = vmatpush3.msra.mxu1 %v9353_v30  ;;  %v2787_v39 = vmul.f32 %v7364_v45, %v7364_v45  ;;  %v2789_v30 = vmul.f32 %v7358_v35, %v7358_v35 }
 0x6e1   : > { %6382 = vmatprep.subr.mxu1 %v7364_v45 }
 0x6e2   : > { %v2742_v9 = vadd.f32 %v9394_v26, %v2741_v18  ;;  %v2811_v27 = vadd.f32 %v2810_v53, %v2780_v11  ;;  %6383 = vmatpush3.msra.mxu1 %v9344_v33  ;;  %v2790_v33 = vmul.f32 %v7354_v23, %v7354_v23 }
 0x6e3   : > { %6384 = vmatprep.subr.mxu1 %v7360_v55 }
 0x6e4   : > { %v2743_v50 = vadd.f32 %v9402_v37, %v2742_v9  ;;  %v2812_v47 = vadd.f32 %v2811_v27, %v2781_v59  ;;  %6385 = vmatpush3.msra.mxu1 %v9333_v2  ;;  %v2791_v2 = vmul.f32 %v7350_v16, %v7350_v16  ;;  %v11303_v27 = vld [vmem:[#allocation4_spill] sm:$0xff] }
 0x6e5   : > { %6386 = vmatprep.subr.mxu1 %v7356_v44 }
 0x6e6   : > { %v2744_v63 = vadd.f32 %v7348_v40, %v2743_v50  ;;  %v2813_v48 = vadd.f32 %v2812_v47, %v2782_v62  ;;  %6387 = vmatpush3.msra.mxu1 %v9322_v6  ;;  %v11306_v62 = vld [vmem:[#allocation7_spill] sm:$0xff] }
 0x6e7   : > { %6388 = vmatprep.subr.mxu1 %v7352_v36 }
 0x6e8   : > { %v2745_v38 = vadd.f32 %v7352_v36, %v2744_v63  ;;  %v2814_v13 = vadd.f32 %v2813_v48, %v2783_v34  ;;  %6389 = vmatpush3.msra.mxu1 %v9313_v42  ;;  %v2792_v42 = vmul.f32 %v9408_v56, %v9408_v56  ;;  %v11304_v36 = vld [vmem:[#allocation5_spill] sm:$0xff]  ;;  %v11309_v34 = vld [vmem:[#allocation10_spill] sm:$0xff] }
 0x6e9   : > { %6390 = vmatprep.subr.mxu1 %v7348_v40  ;;  %v11308_v63 = vld [vmem:[#allocation9_spill] sm:$0xff] }
 0x6ea   : > { %v2746_v21 = vadd.f32 %v7356_v44, %v2745_v38  ;;  %v2815_v24 = vadd.f32 %v2814_v13, %v2784_v22  ;;  %6391 = vmatpush3.msra.mxu1 %v9306_v1  ;;  %v2793_v1 = vmul.f32 %v9400_v5, %v9400_v5  ;;  %v11312_v22 = vld [vmem:[#allocation16_spill] sm:$0xff]  ;;  %v11313_v13 = vld [vmem:[#allocation19_spill] sm:$0xff] }
 0x6eb   : > { %6392 = vmatprep.subr.mxu1 %v9402_v37 }
 0x6ec   : > { %v2747_v61 = vadd.f32 %v7360_v55, %v2746_v21  ;;  %v2816_v60 = vadd.f32 %v2815_v24, %v2785_v20  ;;  %6393 = vmatpush3.msra.mxu1 %v9299_v57  ;;  %v11311_v55 = vld [vmem:[#allocation14_spill] sm:$0xff]  ;;  %v11315_v20 = vld [vmem:[#allocation20_spill] sm:$0xff] }
 0x6ed   : > { %6394 = vmatprep.subr.mxu1 %v9394_v26  ;;  %v11301_v26 = vld [vmem:[#allocation42_spill] sm:$0xff] }
 0x6ee   : > { %v2748_v31 = vadd.f32 %v7364_v45, %v2747_v61  ;;  %v2817_v51 = vadd.f32 %v2816_v60, %v2786_v12  ;;  %6395 = vmatpush3.msra.mxu1 %v9293_v58  ;;  %v2923_v9 = vmul.f32 0.35355338, %v11301_v26  ;;  %v11316_v45 = vld [vmem:[#allocation21_spill] sm:$0xff]  ;;  %v11317_v12 = vld [vmem:[#allocation22_spill] sm:$0xff] }
 0x6ef   : > { %6396 = vmatprep.subr.mxu1 %v9390_v28 }
 0x6f0   : > { %v2749_v10 = vadd.f32 %v7362_v7, %v2748_v31  ;;  %v2818_v46 = vadd.f32 %v2817_v51, %v2787_v39  ;;  %6397 = vmatpush3.msra.mxu1 %v9287_v0  ;;  %v11318_v31 = vld [vmem:[#allocation23_spill] sm:$0xff]  ;;  %v11319_v39 = vld [vmem:[#allocation57_spill] sm:$0xff]  ;;  %v11320_v51 = vld [vmem:[#allocation58_spill] sm:$0xff] }
 0x6f1   : > { %6398 = vmatprep.subr.mxu1 %v9388_v3 }
 0x6f2   : > { %v2750_v43 = vadd.f32 %v7358_v35, %v2749_v10  ;;  %v2819_v8 = vadd.f32 %v2818_v46, %v2788_v52  ;;  %6399 = vmatpush3.msra.mxu1 %v9285_v25  ;;  %v11305_v25 = vld [vmem:[#allocation6_spill] sm:$0xff]  ;;  %v11310_v35 = vld [vmem:[#allocation11_spill] sm:$0xff]  ;;  %v11322_v52 = vld [vmem:[#allocation60_spill] sm:$0xff] }
 0x6f3   : > { %2911 = vmatmul.mubr.f32.vlgmr.msra.gmra.mxu1 %v11219_v29  ;;  %6875 = vmatprep.subr.mxu1 %v2923_v9  ;;  %v11321_v10 = vld [vmem:[#allocation59_spill] sm:$0xff]  ;;  %v11323_v46 = vld [vmem:[#allocation61_spill] sm:$0xff] }
 0x6f4   : > { %v2751_v54 = vadd.f32 %v7354_v23, %v2750_v43  ;;  %v2820_v14 = vadd.f32 %v2819_v8, %v2789_v30  ;;  %6876 = vmatpush3.msra.mxu1 %v2923_v9  ;;  %v11307_v23 = vld [vmem:[#allocation8_spill] sm:$0xff]  ;;  %v11324_v43 = vld [vmem:[#allocation62_spill] sm:$0xff]  ;;  %v11325_v30 = vld [vmem:[#allocation63_spill] sm:$0xff] }
 0x6f5   : > { %v11326_v8 = vld [vmem:[#allocation64_spill] sm:$0xff] }
 0x6f6   : > { %v2752_v18 = vadd.f32 %v7350_v16, %v2751_v54  ;;  %v2821_v11 = vadd.f32 %v2820_v14, %v2790_v33  ;;  %v11327_v54 = vld [vmem:[#allocation24_spill] sm:$0xff]  ;;  %v11328_v33 = vld [vmem:[#allocation65_spill] sm:$0xff]  ;;  %v11329_v14 = vld [vmem:[#allocation66_spill] sm:$0xff] }
 0x6f8   : > { %v2753_v6 = vadd.f32 %v9408_v56, %v2752_v18  ;;  %v2822_v53 = vadd.f32 %v2821_v11, %v2791_v2  ;;  %v2794_v56 = vmul.f32 %v9392_v4, %v9392_v4  ;;  %v11330_v18 = vld [vmem:[#allocation67_spill] sm:$0xff]  ;;  %v11331_v2 = vld [vmem:[#allocation68_spill] sm:$0xff]  ;;  %v11332_v11 = vld [vmem:[#allocation69_spill] sm:$0xff] }
 0x6fa   : > { %v2754_v40 = vadd.f32 %v9400_v5, %v2753_v6  ;;  %v2823_v37 = vadd.f32 %v2822_v53, %v2792_v42  ;;  %v11302_v5 = vld [vmem:[#allocation3_spill] sm:$0xff]  ;;  %v11333_v6 = vld [vmem:[#allocation70_spill] sm:$0xff] }
 0x6fb   : > { %6877 = vmatprep.mubr.msk.f32.mxu1 %vm446_vm1, %v11302_v5  ;;  %v11334_v42 = vld [vmem:[#allocation71_spill] sm:$0xff] }
 0x6fc   : > { %v2755_v57 = vadd.f32 %v9392_v4, %v2754_v40  ;;  %v2824_v58 = vadd.f32 %v2823_v37, %v2793_v1  ;;  %6878 = vmatmul.mubr.msk.f32.vlgmr.msra.gmra.mxu1 %vm446_vm1, %v11303_v27 }
 0x6fd   : > { %6880 = vmatprep.mubr.msk.f32.mxu1 %vm446_vm1, %v11304_v36 }
 0x6fe   : > { %v2756_v59 = vrot.slane %v2755_v57, 4  ;;  %v2825_v28 = vadd.f32 %v2824_v58, %v2794_v56 }
 0x700   : > { %v2757_v0 = vadd.f32 %v2756_v59, %v2755_v57  ;;  %v2826_v16 = vrot.slane %v2825_v28, 4  ;;  %6881 = vmatmul.mubr.msk.f32.gmra.mxu1 %vm446_vm1, %v11305_v25 }
 0x701   : > { %6883 = vmatprep.mubr.msk.f32.mxu1 %vm446_vm1, %v11306_v62 }
 0x702   : > { %v2758_v3 = vrot.slane %v2757_v0, 2  ;;  %v2827_v50 = vadd.f32 %v2826_v16, %v2825_v28 }
 0x704   : > { %v2759_v4 = vadd.f32 %v2758_v3, %v2757_v0  ;;  %6884 = vmatmul.mubr.msk.f32.gmra.mxu1 %vm446_vm1, %v11307_v23  ;;  %v2828_v44 = vrot.slane %v2827_v50, 2 }
 0x705   : > { %6886 = vmatprep.mubr.msk.f32.mxu1 %vm446_vm1, %v11308_v63 }
 0x706   : > { %v2760_v29 = vrot.slane %v2759_v4, 1  ;;  %v2829_v48 = vadd.f32 %v2828_v44, %v2827_v50 }
 0x708   : > { %v2761_v47 = vadd.f32 %v2760_v29, %v2759_v4  ;;  %6887 = vmatmul.mubr.msk.f32.gmra.mxu1 %vm446_vm1, %v11309_v34  ;;  %v2830_v38 = vrot.slane %v2829_v48, 1 }
 0x709   : > { %6889 = vmatprep.mubr.msk.f32.mxu1 %vm446_vm1, %v11310_v35 }
 0x70a   : > { %7365 = vrcp.f32 %v2761_v47  ;;  %v2831_v7 = vadd.f32 %v2830_v38, %v2829_v48 }
 0x70c   : > { %6890 = vmatmul.mubr.msk.f32.gmra.mxu1 %vm446_vm1, %v11311_v55 }
 0x70d   : > { %6892 = vmatprep.mubr.msk.f32.mxu1 %vm446_vm1, %v11312_v22 }
 0x710   : > { %6893 = vmatmul.mubr.msk.f32.gmra.mxu1 %vm446_vm1, %v11313_v13 }
 0x711   : > { %6895 = vmatprep.mubr.msk.f32.mxu1 %vm446_vm1, %v11315_v20 }
 0x714   : > { %6896 = vmatmul.mubr.msk.f32.gmra.mxu1 %vm446_vm1, %v11316_v45 }
 0x715   : > { %6898 = vmatprep.mubr.msk.f32.mxu1 %vm446_vm1, %v11317_v12 }
 0x717   : > { %v9469_v21 = vpop.eup %7365 }
 0x718   : > { %11314 = vst [vmem:[#allocation36_spill] sm:$0xff] %v9469_v21  ;;  %v2832_v24 = vmul.f32 %v9469_v21, %v2831_v7  ;;  %6899 = vmatmul.mubr.msk.f32.gmra.mxu1 %vm446_vm1, %v11318_v31 }
 0x719   : > { %6901 = vmatprep.mubr.msk.f32.mxu1 %vm446_vm1, %v11319_v39 }
 0x71a   : > { %v2833_v61 = vmul.f32 %v9469_v21, %v2832_v24 }
 0x71c   : > { %v2834_v60 = vsel %vm1010_vm2, %v2833_v61, 0.0  ;;  %6902 = vmatmul.mubr.msk.f32.gmra.mxu1 %vm446_vm1, %v11320_v51 }
 0x71d   : > { %2835 = vadd.xlane.f32.xlu0 %v2834_v60  ;;  %6904 = vmatprep.mubr.msk.f32.mxu1 %vm446_vm1, %v11321_v10 }
 0x720   : > { %6905 = vmatmul.mubr.msk.f32.gmra.mxu1 %vm446_vm1, %v11322_v52 }
 0x721   : > { %6907 = vmatprep.mubr.msk.f32.mxu1 %vm446_vm1, %v11323_v46 }
 0x724   : > { %6908 = vmatmul.mubr.msk.f32.gmra.mxu1 %vm446_vm1, %v11324_v43 }
 0x725   : > { %6910 = vmatprep.mubr.msk.f32.mxu1 %vm446_vm1, %v11325_v30 }
 0x728   : > { %6911 = vmatmul.mubr.msk.f32.gmra.mxu1 %vm446_vm1, %v11326_v8 }
 0x729   : > { %6913 = vmatprep.mubr.msk.f32.mxu1 %vm446_vm1, %v11327_v54 }
 0x72c   : > { %6914 = vmatmul.mubr.msk.f32.gmra.mxu1 %vm446_vm1, %v11328_v33 }
 0x72d   : > { %6916 = vmatprep.mubr.msk.f32.mxu1 %vm446_vm1, %v11329_v14 }
 0x730   : > { %6917 = vmatmul.mubr.msk.f32.gmra.mxu1 %vm446_vm1, %v11330_v18 }
 0x731   : > { %6919 = vmatprep.mubr.msk.f32.mxu1 %vm446_vm1, %v11331_v2 }
 0x734   : > { %6920 = vmatmul.mubr.msk.f32.gmra.mxu1 %vm446_vm1, %v11332_v11 }
 0x735   : > { %6922 = vmatprep.mubr.msk.f32.mxu1 %vm446_vm1, %v11333_v6 }
 0x738   : > { %6923 = vmatmul.mubr.msk.f32.gmra.mxu1 %vm446_vm1, %v11334_v42 }
 0x739   : > { %4180 = vmatprep.mubr.f32.mxu1 %v11299_v15 }
 0x7a6   : > { %v2836_v53 = vpop.xlane.xlu0 %2835 }
 0x7a7   : > { %v2837_v40 = vrot.slane %v2836_v53, 4 }
 0x7a9   : > { %v2838_v1 = vadd.f32 %v2837_v40, %v2836_v53 }
 0x7ab   : > { %v2839_v37 = vrot.slane %v2838_v1, 2 }
 0x7ad   : > { %v2840_v57 = vadd.f32 %v2839_v37, %v2838_v1 }
 0x7af   : > { %v2841_v9 = vrot.slane %v2840_v57, 1 }
 0x7b1   : > { %v2842_v56 = vadd.f32 %v2841_v9, %v2840_v57 }
 0x7b3   : > { %7081 = vpush %v2842_v56  ;;  %v6400_v58 = vpop.f32.mrf.mxu1 }
 0x7b5   : > { %v6401_v59 = vpop.f32.mrf.mxu1 }
 0x7b6   : > { %v9515_v28 = vadd.f32 %v6401_v59, %v6400_v58 }
 0x7b8   : > { %11335 = vst [vmem:[#allocation37_spill] sm:$0xff] %v9515_v28 }
 0x7bc   : > { %v9517_v0 = vpop.f32.mrf.mxu1 }
 0x7be   : > { %v9519_v3 = vpop.f32.mrf.mxu1 }
 0x7c0   : > { %v9521_v16 = vpop.f32.mrf.mxu1 }
 0x7c2   : > { %v9523_v4 = vpop.f32.mrf.mxu1 }
 0x7c4   : > { %v9525_v29 = vpop.f32.mrf.mxu1 }
 0x7c5   : > { %v3310_v19 = vmax.f32 %v9517_v0, %v9525_v29 }
 0x7c6   : > { %v9527_v50 = vpop.f32.mrf.mxu1 }
 0x7c7   : > { %v3309_v17 = vmax.f32 %v9519_v3, %v9527_v50 }
 0x7c8   : > { %v9529_v47 = vpop.f32.mrf.mxu1 }
 0x7c9   : > { %v3312_v21 = vmax.f32 %v9521_v16, %v9529_v47 }
 0x7ca   : > { %v9531_v44 = vpop.f32.mrf.mxu1 }
 0x7cb   : > { %v3311_v28 = vmax.f32 %v9523_v4, %v9531_v44 }
 0x7cc   : > { %v9533_v48 = vpop.f32.mrf.mxu1 }
 0x7cd   : > { %v3314_v11 = vmax.f32 %v3310_v19, %v9533_v48 }
 0x7ce   : > { %v9535_v38 = vpop.f32.mrf.mxu1 }
 0x7cf   : > { %v3313_v42 = vmax.f32 %v3309_v17, %v9535_v38 }
 0x7d0   : > { %v9537_v7 = vpop.f32.mrf.mxu1 }
 0x7d1   : > { %v3316_v2 = vmax.f32 %v3312_v21, %v9537_v7 }
 0x7d2   : > { %v9539_v24 = vpop.f32.mrf.mxu1 }
 0x7d3   : > { %v3315_v18 = vmax.f32 %v3311_v28, %v9539_v24 }
 0x7d4   : > { %v9541_v61 = vpop.f32.mrf.mxu1 }
 0x7d5   : > { %v3318_v54 = vmax.f32 %v3314_v11, %v9541_v61 }
 0x7d6   : > { %v9543_v60 = vpop.f32.mrf.mxu1 }
 0x7d7   : > { %v3317_v14 = vmax.f32 %v3313_v42, %v9543_v60 }
 0x7d8   : > { %v9545_v53 = vpop.f32.mrf.mxu1 }
 0x7d9   : > { %v3320_v8 = vmax.f32 %v3316_v2, %v9545_v53 }
 0x7da   : > { %v9547_v40 = vpop.f32.mrf.mxu1 }
 0x7db   : > { %v3319_v30 = vmax.f32 %v3315_v18, %v9547_v40 }
 0x7dc   : > { %v9549_v1 = vpop.f32.mrf.mxu1 }
 0x7dd   : > { %v3322_v19 = vmax.f32 %v3318_v54, %v9549_v1 }
 0x7de   : > { %v9551_v37 = vpop.f32.mrf.mxu1 }
 0x7df   : > { %v3321_v17 = vmax.f32 %v3317_v14, %v9551_v37 }
 0x7e0   : > { %v9553_v57 = vpop.f32.mrf.mxu1 }
 0x7e1   : > { %v3324_v21 = vmax.f32 %v3320_v8, %v9553_v57 }
 0x7e2   : > { %v9555_v9 = vpop.f32.mrf.mxu1 }
 0x7e3   : > { %v3323_v28 = vmax.f32 %v3319_v30, %v9555_v9 }
 0x7e4   : > { %v9557_v56 = vpop.f32.mrf.mxu1  ;;  %s7082_s26 = spop %7081 }
 0x7e5   : > { %v3326_v11 = vmax.f32 %v3322_v19, %v9557_v56 }
 0x7e6   : > { %v9559_v58 = vpop.f32.mrf.mxu1 }
 0x7e7   : > { %v3325_v42 = vmax.f32 %v3321_v17, %v9559_v58 }
 0x7e8   : > { %v9561_v59 = vpop.f32.mrf.mxu1 }
 0x7e9   : > { %v3328_v2 = vmax.f32 %v3324_v21, %v9561_v59 }
 0x7ea   : > { %v9563_v41 = vpop.f32.mrf.mxu1 }
 0x7eb   : > { %v3327_v18 = vmax.f32 %v3323_v28, %v9563_v41 }
 0x7ec   : > { %v9565_v49 = vpop.f32.mrf.mxu1 }
 0x7ed   : > { %v3330_v54 = vmax.f32 %v3326_v11, %v9565_v49 }
 0x7ee   : > { %v9569_v32 = vpop.f32.mrf.mxu1 }
 0x7ef   : > { %v3329_v14 = vmax.f32 %v3325_v42, %v9569_v32 }
 0x7f0   : > { %v9578_v6 = vpop.f32.mrf.mxu1 }
 0x7f1   : > { %v3332_v8 = vmax.f32 %v3328_v2, %v9578_v6 }
 0x7f2   : > { %v9584_v33 = vpop.f32.mrf.mxu1 }
 0x7f3   : > { %v3331_v30 = vmax.f32 %v3327_v18, %v9584_v33 }
 0x7f4   : > { %v9590_v43 = vpop.f32.mrf.mxu1 }
 0x7f5   : > { %v3334_v19 = vmax.f32 %v3330_v54, %v9590_v43 }
 0x7f6   : > { %v9596_v46 = vpop.f32.mrf.mxu1 }
 0x7f7   : > { %v3333_v17 = vmax.f32 %v3329_v14, %v9596_v46 }
 0x7f8   : > { %v9602_v52 = vpop.f32.mrf.mxu1 }
 0x7f9   : > { %v3336_v21 = vmax.f32 %v3332_v8, %v9602_v52  ;;  %v3337_v51 = vmax.f32 %v3333_v17, %v3334_v19 }
 0x7fa   : > { %v9608_v10 = vpop.f32.mrf.mxu1 }
 0x7fb   : > { %v3335_v28 = vmax.f32 %v3331_v30, %v9608_v10 }
 0x7fd   : > { %v3338_v42 = vmax.f32 %v3335_v28, %v3336_v21 }
 0x7ff   : > { %v3339_v39 = vmax.f32 %v3337_v51, %v3338_v42 }
 0x801   : > { %v3340_v31 = vrot.slane %v3339_v39, 4 }
 0x803   : > { %v3341_v12 = vmax.f32 %v3339_v39, %v3340_v31 }
 0x805   : > { %v3342_v11 = vrot.slane %v3341_v12, 2 }
 0x807   : > { %v3343_v45 = vmax.f32 %v3341_v12, %v3342_v11 }
 0x809   : > { %v3344_v2 = vrot.slane %v3343_v45, 1 }
 0x80b   : > { %v9613_v20 = vmax.f32 %v3343_v45, %v3344_v2 }
 0x80d   : > { %v3346_v18 = vsub.f32 %v9519_v3, %v9613_v20  ;;  %v3347_v14 = vsub.f32 %v9517_v0, %v9613_v20  ;;  %v3348_v54 = vsub.f32 %v9523_v4, %v9613_v20  ;;  %v3349_v8 = vsub.f32 %v9521_v16, %v9613_v20 }
 0x80e   : > { %v3350_v31 = vsub.f32 %v9527_v50, %v9613_v20  ;;  %v3351_v45 = vsub.f32 %v9525_v29, %v9613_v20  ;;  %v3352_v0 = vsub.f32 %v9531_v44, %v9613_v20  ;;  %v3353_v16 = vsub.f32 %v9529_v47, %v9613_v20 }
 0x80f   : > { %v3378_v39 = vmul.f32 1.442695, %v3346_v18  ;;  %v3380_v12 = vmul.f32 1.442695, %v3347_v14  ;;  %v3382_v51 = vmul.f32 1.442695, %v3348_v54  ;;  %v3354_v50 = vsub.f32 %v9535_v38, %v9613_v20 }
 0x810   : > { %v3384_v30 = vmul.f32 1.442695, %v3349_v8  ;;  %v3386_v3 = vmul.f32 1.442695, %v3350_v31  ;;  %v3388_v4 = vmul.f32 1.442695, %v3351_v45  ;;  %v3355_v29 = vsub.f32 %v9533_v48, %v9613_v20 }
 0x811   : > { %7367 = vpow2.f32 %v3378_v39  ;;  %v3390_v17 = vmul.f32 1.442695, %v3352_v0  ;;  %v3392_v19 = vmul.f32 1.442695, %v3353_v16  ;;  %v3356_v44 = vsub.f32 %v9539_v24, %v9613_v20 }
 0x812   : > { %7369 = vpow2.f32 %v3380_v12  ;;  %v3394_v21 = vmul.f32 1.442695, %v3354_v50  ;;  %v3357_v47 = vsub.f32 %v9537_v7, %v9613_v20  ;;  %v3396_v28 = vmul.f32 1.442695, %v3355_v29 }
 0x813   : > { %7371 = vpow2.f32 %v3382_v51  ;;  %v3358_v38 = vsub.f32 %v9543_v60, %v9613_v20  ;;  %v3398_v11 = vmul.f32 1.442695, %v3356_v44  ;;  %v3359_v2 = vsub.f32 %v9541_v61, %v9613_v20 }
 0x814   : > { %7373 = vpow2.f32 %v3384_v30  ;;  %v3400_v7 = vmul.f32 1.442695, %v3357_v47  ;;  %v3360_v8 = vsub.f32 %v9547_v40, %v9613_v20  ;;  %v3361_v45 = vsub.f32 %v9545_v53, %v9613_v20 }
 0x815   : > { %7375 = vpow2.f32 %v3386_v3  ;;  %v3402_v31 = vmul.f32 1.442695, %v3358_v38  ;;  %v3404_v30 = vmul.f32 1.442695, %v3359_v2  ;;  %v3363_v50 = vsub.f32 %v9549_v1, %v9613_v20 }
 0x816   : > { %7377 = vpow2.f32 %v3388_v4  ;;  %v3362_v4 = vsub.f32 %v9551_v37, %v9613_v20  ;;  %v3365_v47 = vsub.f32 %v9553_v57, %v9613_v20  ;;  %v3377_v37 = vsub.f32 %v9602_v52, %v9613_v20 }
 0x817   : > { %7379 = vpow2.f32 %v3390_v17  ;;  %v3406_v17 = vmul.f32 1.442695, %v3360_v8  ;;  %v3408_v1 = vmul.f32 1.442695, %v3361_v45  ;;  %v3376_v57 = vsub.f32 %v9608_v10, %v9613_v20 }
 0x818   : > { %7381 = vpow2.f32 %v3392_v19  ;;  %v3410_v52 = vmul.f32 1.442695, %v3362_v4 }
 0x819   : > { %7383 = vpow2.f32 %v3394_v21  ;;  %v3364_v21 = vsub.f32 %v9555_v9, %v9613_v20  ;;  %v3367_v9 = vsub.f32 %v9557_v56, %v9613_v20  ;;  %v3412_v56 = vmul.f32 1.442695, %v3363_v50 }
 0x81a   : > { %7385 = vpow2.f32 %v3396_v28 }
 0x81b   : > { %7387 = vpow2.f32 %v3398_v11 }
 0x81c   : > { %7389 = vpow2.f32 %v3400_v7 }
 0x81d   : > { %7391 = vpow2.f32 %v3402_v31  ;;  %v3368_v31 = vsub.f32 %v9563_v41, %v9613_v20  ;;  %v3374_v41 = vsub.f32 %v9596_v46, %v9613_v20 }
 0x81e   : > { %v9641_v42 = vpop.eup %7367  ;;  %7393 = vpow2.f32 %v3404_v30  ;;  %v3369_v30 = vsub.f32 %v9561_v59, %v9613_v20 }
 0x81f   : > { %v9643_v48 = vpop.eup %7369  ;;  %v3480_v24 = vmul.f32 %v9641_v42, %v9641_v42  ;;  %7395 = vpow2.f32 %v3406_v17  ;;  %v3373_v17 = vsub.f32 %v9578_v6, %v9613_v20 }
 0x820   : > { %v9649_v18 = vpop.eup %7371  ;;  %v3442_v14 = vadd.f32 %v9643_v48, %v9641_v42  ;;  %v3481_v60 = vmul.f32 %v9643_v48, %v9643_v48  ;;  %7397 = vpow2.f32 %v3408_v1 }
 0x821   : > { %v9655_v54 = vpop.eup %7373  ;;  %v3482_v39 = vmul.f32 %v9649_v18, %v9649_v18  ;;  %7399 = vpow2.f32 %v3410_v52  ;;  %v3420_v52 = vmul.f32 1.442695, %v3367_v9 }
 0x822   : > { %v3443_v61 = vadd.f32 %v9649_v18, %v3442_v14  ;;  %v3512_v12 = vadd.f32 %v3481_v60, %v3480_v24  ;;  %v9662_v51 = vpop.eup %7375  ;;  %v3483_v40 = vmul.f32 %v9655_v54, %v9655_v54  ;;  %v3366_v24 = vsub.f32 %v9559_v58, %v9613_v20 }
 0x823   : > { %v9669_v16 = vpop.eup %7377  ;;  %v3484_v29 = vmul.f32 %v9662_v51, %v9662_v51  ;;  %v3375_v58 = vsub.f32 %v9590_v43, %v9613_v20  ;;  %7401 = vpow2.f32 %v3412_v56  ;;  %v3422_v56 = vmul.f32 1.442695, %v3368_v31 }
 0x824   : > { %v3444_v0 = vadd.f32 %v9655_v54, %v3443_v61  ;;  %v3513_v3 = vadd.f32 %v3512_v12, %v3482_v39  ;;  %v9678_v44 = vpop.eup %7379  ;;  %v3485_v38 = vmul.f32 %v9669_v16, %v9669_v16  ;;  %v3440_v61 = vmul.f32 1.442695, %v3377_v37 }
 0x825   : > { %v9689_v2 = vpop.eup %7381  ;;  %v3486_v14 = vmul.f32 %v9678_v44, %v9678_v44  ;;  %v3436_v59 = vmul.f32 1.442695, %v3375_v58  ;;  %v3372_v37 = vsub.f32 %v9584_v33, %v9613_v20  ;;  %v3418_v1 = vmul.f32 1.442695, %v3366_v24 }
 0x826   : > { %v3445_v53 = vadd.f32 %v9662_v51, %v3444_v0  ;;  %v3514_v19 = vadd.f32 %v3513_v3, %v3483_v40  ;;  %v9700_v8 = vpop.eup %7383  ;;  %v3487_v39 = vmul.f32 %v9689_v2, %v9689_v2  ;;  %v3414_v0 = vmul.f32 1.442695, %v3364_v21 }
 0x827   : > { %v9709_v45 = vpop.eup %7385  ;;  %v3438_v40 = vmul.f32 1.442695, %v3376_v57  ;;  %v3488_v3 = vmul.f32 %v9700_v8, %v9700_v8  ;;  %7403 = vpow2.f32 %v3440_v61  ;;  %v3371_v57 = vsub.f32 %v9565_v49, %v9613_v20 }
 0x828   : > { %v3446_v28 = vadd.f32 %v9669_v16, %v3445_v53  ;;  %v3515_v11 = vadd.f32 %v3514_v19, %v3484_v29  ;;  %v9718_v50 = vpop.eup %7387  ;;  %v3416_v53 = vmul.f32 1.442695, %v3365_v47  ;;  %v3489_v29 = vmul.f32 %v9709_v45, %v9709_v45 }
 0x829   : > { %v9725_v21 = vpop.eup %7389  ;;  %7405 = vpow2.f32 %v3414_v0  ;;  %v3490_v47 = vmul.f32 %v9718_v50, %v9718_v50  ;;  %v3370_v58 = vsub.f32 %v9569_v32, %v9613_v20  ;;  %v3430_v61 = vmul.f32 1.442695, %v3372_v37 }
 0x82a   : > { %v3447_v7 = vadd.f32 %v9678_v44, %v3446_v28  ;;  %v3516_v60 = vadd.f32 %v3515_v11, %v3485_v38  ;;  %v3434_v28 = vmul.f32 1.442695, %v3374_v41  ;;  %7407 = vpow2.f32 %v3438_v40  ;;  %v9732_v11 = vpop.eup %7391 }
 0x82b   : > { %7409 = vpow2.f32 %v3416_v53  ;;  %v3491_v24 = vmul.f32 %v9725_v21, %v9725_v21  ;;  %v3492_v9 = vmul.f32 %v9732_v11, %v9732_v11  ;;  %v3428_v41 = vmul.f32 1.442695, %v3371_v57 }
 0x82c   : > { %v3448_v10 = vadd.f32 %v9689_v2, %v3447_v7  ;;  %v3517_v12 = vadd.f32 %v3516_v60, %v3486_v14  ;;  %v3432_v7 = vmul.f32 1.442695, %v3373_v17  ;;  %7411 = vpow2.f32 %v3436_v59  ;;  %v7394_v60 = vpop.eup %7393 }
 0x82d   : > { %7413 = vpow2.f32 %v3418_v1  ;;  %v3493_v40 = vmul.f32 %v7394_v60, %v7394_v60  ;;  %v3426_v32 = vmul.f32 1.442695, %v3370_v58 }
 0x82e   : > { %v3449_v43 = vadd.f32 %v9700_v8, %v3448_v10  ;;  %v3518_v4 = vadd.f32 %v3517_v12, %v3487_v39  ;;  %7415 = vpow2.f32 %v3434_v28  ;;  %v7396_v39 = vpop.eup %7395  ;;  %v3424_v12 = vmul.f32 1.442695, %v3369_v30 }
 0x82f   : > { %7417 = vpow2.f32 %v3420_v52  ;;  %v3494_v31 = vmul.f32 %v7396_v39, %v7396_v39 }
 0x830   : > { %v3450_v46 = vadd.f32 %v9709_v45, %v3449_v43  ;;  %v3519_v19 = vadd.f32 %v3518_v4, %v3488_v3  ;;  %7419 = vpow2.f32 %v3432_v7  ;;  %v7398_v3 = vpop.eup %7397 }
 0x831   : > { %7421 = vpow2.f32 %v3422_v56  ;;  %v9744_v17 = vpop.eup %7399  ;;  %v3495_v30 = vmul.f32 %v7398_v3, %v7398_v3 }
 0x832   : > { %v3451_v6 = vadd.f32 %v9718_v50, %v3450_v46  ;;  %v3520_v38 = vadd.f32 %v3519_v19, %v3489_v29  ;;  %7423 = vpow2.f32 %v3430_v61  ;;  %v9746_v53 = vpop.eup %7401  ;;  %v3496_v1 = vmul.f32 %v9744_v17, %v9744_v17 }
 0x833   : > { %7425 = vpow2.f32 %v3424_v12  ;;  %v3497_v57 = vmul.f32 %v9746_v53, %v9746_v53 }
 0x834   : > { %v3452_v33 = vadd.f32 %v9725_v21, %v3451_v6  ;;  %v3521_v14 = vadd.f32 %v3520_v38, %v3490_v47  ;;  %7427 = vpow2.f32 %v3428_v41  ;;  %v9748_v29 = vpop.eup %7403 }
 0x835   : > { %7429 = vpow2.f32 %v3426_v32  ;;  %6436 = vmatprep.subr.mxu0 %v9748_v29 }
 0x836   : > { %v3453_v49 = vadd.f32 %v9732_v11, %v3452_v33  ;;  %v3522_v10 = vadd.f32 %v3521_v14, %v3491_v24  ;;  %v9750_v19 = vpop.eup %7405  ;;  %6437 = vmatpush3.msra.mxu0 %v7398_v3 }
 0x837   : > { %v9756_v6 = vpop.eup %7407  ;;  %v3498_v14 = vmul.f32 %v9750_v19, %v9750_v19 }
 0x838   : > { %v3454_v0 = vadd.f32 %v7394_v60, %v3453_v49  ;;  %v3523_v43 = vadd.f32 %v3522_v10, %v3492_v9  ;;  %v9758_v47 = vpop.eup %7409  ;;  %6438 = vmatprep.subr.mxu0 %v9756_v6 }
 0x839   : > { %v9764_v7 = vpop.eup %7411  ;;  %6439 = vmatpush3.msra.mxu0 %v7396_v39  ;;  %v3499_v9 = vmul.f32 %v9758_v47, %v9758_v47 }
 0x83a   : > { %v3455_v20 = vadd.f32 %v7396_v39, %v3454_v0  ;;  %v3524_v4 = vadd.f32 %v3523_v43, %v3493_v40  ;;  %v7414_v33 = vpop.eup %7413  ;;  %6440 = vmatprep.subr.mxu0 %v9764_v7 }
 0x83b   : > { %v7416_v56 = vpop.eup %7415  ;;  %6441 = vmatpush3.msra.mxu0 %v7394_v60  ;;  %v3500_v0 = vmul.f32 %v7414_v33, %v7414_v33 }
 0x83c   : > { %v3456_v59 = vadd.f32 %v7398_v3, %v3455_v20  ;;  %v3525_v46 = vadd.f32 %v3524_v4, %v3494_v31  ;;  %v7418_v61 = vpop.eup %7417  ;;  %6442 = vmatprep.subr.mxu0 %v7416_v56 }
 0x83d   : > { %v7420_v39 = vpop.eup %7419  ;;  %6443 = vmatpush3.msra.mxu0 %v9732_v11  ;;  %v3501_v32 = vmul.f32 %v7418_v61, %v7418_v61 }
 0x83e   : > { %v3457_v37 = vadd.f32 %v9744_v17, %v3456_v59  ;;  %v3526_v28 = vadd.f32 %v3525_v46, %v3495_v30  ;;  %v7422_v12 = vpop.eup %7421  ;;  %6444 = vmatprep.subr.mxu0 %v7420_v39 }
 0x83f   : > { %v7424_v43 = vpop.eup %7423  ;;  %6445 = vmatpush3.msra.mxu0 %v9725_v21  ;;  %v3502_v59 = vmul.f32 %v7422_v12, %v7422_v12 }
 0x840   : > { %v3458_v38 = vadd.f32 %v9746_v53, %v3457_v37  ;;  %v3527_v52 = vadd.f32 %v3526_v28, %v3496_v1  ;;  %v7426_v60 = vpop.eup %7425  ;;  %6446 = vmatprep.subr.mxu0 %v7424_v43 }
 0x841   : > { %v7428_v31 = vpop.eup %7427  ;;  %6447 = vmatpush3.msra.mxu0 %v9718_v50  ;;  %v3503_v37 = vmul.f32 %v7426_v60, %v7426_v60 }
 0x842   : > { %v3459_v24 = vadd.f32 %v9750_v19, %v3458_v38  ;;  %v3528_v58 = vadd.f32 %v3527_v52, %v3497_v57  ;;  %6448 = vmatprep.subr.mxu0 %v7428_v31  ;;  %v7430_v30 = vpop.eup %7429  ;;  %v3505_v57 = vmul.f32 %v7428_v31, %v7428_v31 }
 0x843   : > { %6449 = vmatpush3.msra.mxu0 %v9709_v45  ;;  %v3504_v28 = vmul.f32 %v7430_v30, %v7430_v30  ;;  %v3506_v45 = vmul.f32 %v7424_v43, %v7424_v43 }
 0x844   : > { %v3460_v49 = vadd.f32 %v9758_v47, %v3459_v24  ;;  %v3529_v10 = vadd.f32 %v3528_v58, %v3498_v14  ;;  %6450 = vmatprep.subr.mxu0 %v7430_v30 }
 0x845   : > { %6451 = vmatpush3.msra.mxu0 %v9700_v8  ;;  %v3507_v8 = vmul.f32 %v7420_v39, %v7420_v39 }
 0x846   : > { %v3461_v41 = vadd.f32 %v7414_v33, %v3460_v49  ;;  %v3530_v40 = vadd.f32 %v3529_v10, %v3499_v9  ;;  %6452 = vmatprep.subr.mxu0 %v7426_v60 }
 0x847   : > { %6453 = vmatpush3.msra.mxu0 %v9689_v2  ;;  %v3508_v2 = vmul.f32 %v7416_v56, %v7416_v56 }
 0x848   : > { %v3462_v3 = vadd.f32 %v7418_v61, %v3461_v41  ;;  %v3531_v20 = vadd.f32 %v3530_v40, %v3500_v0  ;;  %6454 = vmatprep.subr.mxu0 %v7422_v12  ;;  %v11341_v41 = vld [vmem:[#allocation58_spill] sm:$0xff]  ;;  %v11342_v0 = vld [vmem:[#allocation59_spill] sm:$0xff]  ;;  %v11343_v40 = vld [vmem:[#allocation60_spill] sm:$0xff] }
 0x849   : > { %6455 = vmatpush3.msra.mxu0 %v9678_v44 }
 0x84a   : > { %v3463_v4 = vadd.f32 %v7422_v12, %v3462_v3  ;;  %v3532_v11 = vadd.f32 %v3531_v20, %v3501_v32  ;;  %6456 = vmatprep.subr.mxu0 %v7418_v61  ;;  %v11338_v12 = vld [vmem:[#allocation22_spill] sm:$0xff]  ;;  %v11346_v3 = vld [vmem:[#allocation63_spill] sm:$0xff]  ;;  %v11347_v32 = vld [vmem:[#allocation64_spill] sm:$0xff] }
 0x84b   : > { %6457 = vmatpush3.msra.mxu0 %v9669_v16  ;;  %v3509_v16 = vmul.f32 %v9764_v7, %v9764_v7  ;;  %v11348_v20 = vld [vmem:[#allocation24_spill] sm:$0xff] }
 0x84c   : > { %v3464_v46 = vadd.f32 %v7426_v60, %v3463_v4  ;;  %v3533_v1 = vadd.f32 %v3532_v11, %v3502_v59  ;;  %6458 = vmatprep.subr.mxu0 %v7414_v33  ;;  %v11345_v60 = vld [vmem:[#allocation62_spill] sm:$0xff]  ;;  %v11351_v59 = vld [vmem:[#allocation67_spill] sm:$0xff]  ;;  %v11352_v11 = vld [vmem:[#allocation68_spill] sm:$0xff] }
 0x84d   : > { %6459 = vmatpush3.msra.mxu0 %v9662_v51  ;;  %v3510_v51 = vmul.f32 %v9756_v6, %v9756_v6  ;;  %v11350_v4 = vld [vmem:[#allocation66_spill] sm:$0xff] }
 0x84e   : > { %v3465_v21 = vadd.f32 %v7430_v30, %v3464_v46  ;;  %v3534_v38 = vadd.f32 %v3533_v1, %v3503_v37  ;;  %6460 = vmatprep.subr.mxu0 %v9758_v47  ;;  %v11353_v30 = vld [vmem:[#allocation69_spill] sm:$0xff]  ;;  %v11354_v46 = vld [vmem:[#allocation70_spill] sm:$0xff]  ;;  %v11355_v37 = vld [vmem:[#allocation71_spill] sm:$0xff] }
 0x84f   : > { %6461 = vmatpush3.msra.mxu0 %v9655_v54  ;;  %v11356_v1 = vld [vmem:[#allocation56_spill] sm:$0xff] }
 0x850   : > { %v3466_v50 = vadd.f32 %v7428_v31, %v3465_v21  ;;  %v3535_v52 = vadd.f32 %v3534_v38, %v3504_v28  ;;  %6462 = vmatprep.subr.mxu0 %v9750_v19  ;;  %v3636_v19 = vmul.f32 0.35355338, %v11299_v15  ;;  %v11349_v31 = vld [vmem:[#allocation65_spill] sm:$0xff] }
 0x851   : > { %6463 = vmatpush3.msra.mxu0 %v9649_v18 }
 0x852   : > { %v3467_v24 = vadd.f32 %v7424_v43, %v3466_v50  ;;  %v3536_v14 = vadd.f32 %v3535_v52, %v3505_v57  ;;  %6464 = vmatprep.subr.mxu0 %v9746_v53  ;;  %v11344_v43 = vld [vmem:[#allocation61_spill] sm:$0xff] }
 0x853   : > { %6465 = vmatpush3.msra.mxu0 %v9643_v48 }
 0x854   : > { %v3468_v58 = vadd.f32 %v7420_v39, %v3467_v24  ;;  %v3537_v49 = vadd.f32 %v3536_v14, %v3506_v45  ;;  %6466 = vmatprep.subr.mxu0 %v9744_v17 }
 0x855   : > { %6467 = vmatpush3.msra.mxu0 %v9641_v42 }
 0x856   : > { %v3469_v9 = vadd.f32 %v7416_v56, %v3468_v58  ;;  %v3538_v10 = vadd.f32 %v3537_v49, %v3507_v8  ;;  %3628 = vmatmul.mubr.f32.vlgmr.msra.gmra.mxu0 %v11301_v26  ;;  %6925 = vmatprep.subr.mxu0 %v3636_v19  ;;  %v11357_v49 = vld [vmem:[#allocation32_spill] sm:$0xff] }
 0x857   : > { %6926 = vmatpush3.msra.mxu0 %v3636_v19  ;;  %6927 = vmatprep.mubr.msk.f32.mxu0 %vm446_vm1, %v11302_v5 }
 0x858   : > { %v3470_v44 = vadd.f32 %v9764_v7, %v3469_v9  ;;  %v3539_v61 = vadd.f32 %v3538_v10, %v3508_v2  ;;  %v3511_v7 = vmul.f32 %v9748_v29, %v9748_v29  ;;  %v9870_v9 = vmul.f32 0.00390625, %v11357_v49 }
 0x85a   : > { %v3471_v33 = vadd.f32 %v9756_v6, %v3470_v44  ;;  %v3540_v47 = vadd.f32 %v3539_v61, %v3509_v16  ;;  %6928 = vmatmul.mubr.msk.f32.vlgmr.msra.gmra.mxu0 %vm446_vm1, %v11303_v27  ;;  %11358 = vst [vmem:[#allocation38_spill] sm:$0xff] %v9870_v9 }
 0x85b   : > { %6930 = vmatprep.mubr.msk.f32.mxu0 %vm446_vm1, %v11304_v36 }
 0x85c   : > { %v3472_v54 = vadd.f32 %v9748_v29, %v3471_v33  ;;  %v3541_v18 = vadd.f32 %v3540_v47, %v3510_v51 }
 0x85e   : > { %v3473_v56 = vrot.slane %v3472_v54, 4  ;;  %v3542_v53 = vadd.f32 %v3541_v18, %v3511_v7  ;;  %6931 = vmatmul.mubr.msk.f32.gmra.mxu0 %vm446_vm1, %v11305_v25 }
 0x85f   : > { %6933 = vmatprep.mubr.msk.f32.mxu0 %vm446_vm1, %v11306_v62 }
 0x860   : > { %v3474_v48 = vadd.f32 %v3473_v56, %v3472_v54  ;;  %v3543_v17 = vrot.slane %v3542_v53, 4 }
 0x862   : > { %v3475_v15 = vrot.slane %v3474_v48, 2  ;;  %v3544_v6 = vadd.f32 %v3543_v17, %v3542_v53  ;;  %6934 = vmatmul.mubr.msk.f32.gmra.mxu0 %vm446_vm1, %v11307_v23  ;;  %v11336_v23 = vld [vmem:[#allocation20_spill] sm:$0xff] }
 0x863   : > { %6936 = vmatprep.mubr.msk.f32.mxu0 %vm446_vm1, %v11308_v63 }
 0x864   : > { %v3476_v29 = vadd.f32 %v3475_v15, %v3474_v48  ;;  %v3545_v5 = vrot.slane %v3544_v6, 2 }
 0x866   : > { %v3477_v42 = vrot.slane %v3476_v29, 1  ;;  %6937 = vmatmul.mubr.msk.f32.gmra.mxu0 %vm446_vm1, %v11309_v34  ;;  %v3546_v27 = vadd.f32 %v3545_v5, %v3544_v6  ;;  %v11337_v34 = vld [vmem:[#allocation21_spill] sm:$0xff] }
 0x867   : > { %6939 = vmatprep.mubr.msk.f32.mxu0 %vm446_vm1, %v11310_v35 }
 0x868   : > { %v3478_v39 = vadd.f32 %v3477_v42, %v3476_v29  ;;  %v3547_v36 = vrot.slane %v3546_v27, 1 }
 0x86a   : > { %7431 = vrcp.f32 %v3478_v39  ;;  %6940 = vmatmul.mubr.msk.f32.gmra.mxu0 %vm446_vm1, %v11311_v55  ;;  %v3548_v25 = vadd.f32 %v3547_v36, %v3546_v27 }
 0x86b   : > { %6942 = vmatprep.mubr.msk.f32.mxu0 %vm446_vm1, %v11312_v22  ;;  %v11339_v22 = vld [vmem:[#allocation23_spill] sm:$0xff] }
 0x86e   : > { %6943 = vmatmul.mubr.msk.f32.gmra.mxu0 %vm446_vm1, %v11313_v13  ;;  %v11340_v13 = vld [vmem:[#allocation57_spill] sm:$0xff] }
 0x86f   : > { %6945 = vmatprep.mubr.msk.f32.mxu0 %vm446_vm1, %v11336_v23 }
 0x872   : > { %6946 = vmatmul.mubr.msk.f32.gmra.mxu0 %vm446_vm1, %v11337_v34 }
 0x873   : > { %6948 = vmatprep.mubr.msk.f32.mxu0 %vm446_vm1, %v11338_v12 }
 0x876   : > { %6949 = vmatmul.mubr.msk.f32.gmra.mxu0 %vm446_vm1, %v11339_v22 }
 0x877   : > { %v7432_v62 = vpop.eup %7431  ;;  %6951 = vmatprep.mubr.msk.f32.mxu0 %vm446_vm1, %v11340_v13 }
 0x878   : > { %v3549_v63 = vmul.f32 %v7432_v62, %v3548_v25 }
 0x87a   : > { %v3550_v35 = vmul.f32 %v7432_v62, %v3549_v63  ;;  %6952 = vmatmul.mubr.msk.f32.gmra.mxu0 %vm446_vm1, %v11341_v41 }
 0x87b   : > { %6954 = vmatprep.mubr.msk.f32.mxu0 %vm446_vm1, %v11342_v0 }
 0x87c   : > { %v3551_v55 = vsel %vm1010_vm2, %v3550_v35, 0.0 }
 0x87d   : > { %3552 = vadd.xlane.f32.xlu0 %v3551_v55 }
 0x87e   : > { %6955 = vmatmul.mubr.msk.f32.gmra.mxu0 %vm446_vm1, %v11343_v40 }
 0x87f   : > { %6957 = vmatprep.mubr.msk.f32.mxu0 %vm446_vm1, %v11344_v43 }
 0x882   : > { %6958 = vmatmul.mubr.msk.f32.gmra.mxu0 %vm446_vm1, %v11345_v60 }
 0x883   : > { %6960 = vmatprep.mubr.msk.f32.mxu0 %vm446_vm1, %v11346_v3 }
 0x886   : > { %6961 = vmatmul.mubr.msk.f32.gmra.mxu0 %vm446_vm1, %v11347_v32 }
 0x887   : > { %6963 = vmatprep.mubr.msk.f32.mxu0 %vm446_vm1, %v11348_v20 }
 0x88a   : > { %6964 = vmatmul.mubr.msk.f32.gmra.mxu0 %vm446_vm1, %v11349_v31 }
 0x88b   : > { %6966 = vmatprep.mubr.msk.f32.mxu0 %vm446_vm1, %v11350_v4 }
 0x88e   : > { %6967 = vmatmul.mubr.msk.f32.gmra.mxu0 %vm446_vm1, %v11351_v59 }
 0x88f   : > { %6969 = vmatprep.mubr.msk.f32.mxu0 %vm446_vm1, %v11352_v11 }
 0x892   : > { %6970 = vmatmul.mubr.msk.f32.gmra.mxu0 %vm446_vm1, %v11353_v30 }
 0x893   : > { %6972 = vmatprep.mubr.msk.f32.mxu0 %vm446_vm1, %v11354_v46 }
 0x896   : > { %6973 = vmatmul.mubr.msk.f32.gmra.mxu0 %vm446_vm1, %v11355_v37 }
 0x897   : > { %4897 = vmatprep.mubr.f32.mxu0 %v11356_v1 }
 0x906   : > { %v3553_v21 = vpop.xlane.xlu0 %3552 }
 0x907   : > { %v3554_v28 = vrot.slane %v3553_v21, 4 }
 0x909   : > { %v3555_v38 = vadd.f32 %v3554_v28, %v3553_v21 }
 0x90b   : > { %v3556_v50 = vrot.slane %v3555_v38, 2 }
 0x90d   : > { %v3557_v57 = vadd.f32 %v3556_v50, %v3555_v38 }
 0x90f   : > { %v3558_v52 = vrot.slane %v3557_v57, 1 }
 0x911   : > { %v3559_v24 = vadd.f32 %v3558_v52, %v3557_v57 }
 0x913   : > { %7083 = vpush %v3559_v24 }
 0x916   : > { %v6468_v45 = vpop.f32.mrf.mxu0 }
 0x918   : > { %v6469_v14 = vpop.f32.mrf.mxu0 }
 0x919   : > { %v6470_v58 = vadd.f32 %v6469_v14, %v6468_v45 }
 0x91a   : > { %v9867_v8 = vpop.f32.mrf.mxu0 }
 0x91b   : > { %v9872_v2 = vmul.f32 %v7432_v62, %v6470_v58 }
 0x91c   : > { %v9874_v10 = vpop.f32.mrf.mxu0 }
 0x91d   : > { %11359 = vst [vmem:[#allocation39_spill] sm:$0xff] %v9872_v2 }
 0x91e   : > { %v9878_v16 = vpop.f32.mrf.mxu0 }
 0x920   : > { %v9880_v61 = vpop.f32.mrf.mxu0 }
 0x922   : > { %v9882_v33 = vpop.f32.mrf.mxu0 }
 0x923   : > { %v3863_v34 = vmax.f32 %v9867_v8, %v9882_v33 }
 0x924   : > { %v9884_v51 = vpop.f32.mrf.mxu0 }
 0x925   : > { %v3862_v23 = vmax.f32 %v9874_v10, %v9884_v51 }
 0x926   : > { %v9886_v47 = vpop.f32.mrf.mxu0 }
 0x927   : > { %v3865_v35 = vmax.f32 %v9878_v16, %v9886_v47 }
 0x928   : > { %v9888_v54 = vpop.f32.mrf.mxu0 }
 0x929   : > { %v3864_v12 = vmax.f32 %v9880_v61, %v9888_v54 }
 0x92a   : > { %v9890_v19 = vpop.f32.mrf.mxu0 }
 0x92b   : > { %v3867_v13 = vmax.f32 %v3863_v34, %v9890_v19 }
 0x92c   : > { %v9892_v7 = vpop.f32.mrf.mxu0 }
 0x92d   : > { %v3866_v55 = vmax.f32 %v3862_v23, %v9892_v7 }
 0x92e   : > { %v9894_v18 = vpop.f32.mrf.mxu0 }
 0x92f   : > { %v3869_v41 = vmax.f32 %v3865_v35, %v9894_v18 }
 0x930   : > { %v9896_v56 = vpop.f32.mrf.mxu0 }
 0x931   : > { %v3868_v0 = vmax.f32 %v3864_v12, %v9896_v56 }
 0x932   : > { %v9898_v53 = vpop.f32.mrf.mxu0 }
 0x933   : > { %v3871_v60 = vmax.f32 %v3867_v13, %v9898_v53 }
 0x934   : > { %v9900_v48 = vpop.f32.mrf.mxu0 }
 0x935   : > { %v3870_v40 = vmax.f32 %v3866_v55, %v9900_v48 }
 0x936   : > { %v9902_v15 = vpop.f32.mrf.mxu0 }
 0x937   : > { %v3873_v3 = vmax.f32 %v3869_v41, %v9902_v15 }
 0x938   : > { %v9904_v17 = vpop.f32.mrf.mxu0 }
 0x939   : > { %v3872_v32 = vmax.f32 %v3868_v0, %v9904_v17 }
 0x93a   : > { %v9906_v29 = vpop.f32.mrf.mxu0 }
 0x93b   : > { %v3875_v4 = vmax.f32 %v3871_v60, %v9906_v29 }
 0x93c   : > { %v9908_v42 = vpop.f32.mrf.mxu0 }
 0x93d   : > { %v3874_v20 = vmax.f32 %v3870_v40, %v9908_v42 }
 0x93e   : > { %v9910_v6 = vpop.f32.mrf.mxu0 }
 0x93f   : > { %v3877_v59 = vmax.f32 %v3873_v3, %v9910_v6 }
 0x940   : > { %v9912_v39 = vpop.f32.mrf.mxu0 }
 0x941   : > { %v3876_v11 = vmax.f32 %v3872_v32, %v9912_v39 }
 0x942   : > { %v9914_v5 = vpop.f32.mrf.mxu0 }
 0x943   : > { %v3879_v37 = vmax.f32 %v3875_v4, %v9914_v5 }
 0x944   : > { %v9916_v27 = vpop.f32.mrf.mxu0  ;;  %s7084_s27 = spop %7083 }
 0x945   : > { %v3878_v30 = vmax.f32 %v3874_v20, %v9916_v27 }
 0x946   : > { %v9918_v36 = vpop.f32.mrf.mxu0 }
 0x947   : > { %v3881_v21 = vmax.f32 %v3877_v59, %v9918_v36 }
 0x948   : > { %v9920_v25 = vpop.f32.mrf.mxu0 }
 0x949   : > { %v3880_v28 = vmax.f32 %v3876_v11, %v9920_v25 }
 0x94a   : > { %v9922_v62 = vpop.f32.mrf.mxu0 }
 0x94b   : > { %v3883_v57 = vmax.f32 %v3879_v37, %v9922_v62 }
 0x94c   : > { %v9926_v63 = vpop.f32.mrf.mxu0 }
 0x94d   : > { %v3882_v38 = vmax.f32 %v3878_v30, %v9926_v63 }
 0x94e   : > { %v9935_v22 = vpop.f32.mrf.mxu0 }
 0x94f   : > { %v3885_v52 = vmax.f32 %v3881_v21, %v9935_v22 }
 0x950   : > { %v9941_v43 = vpop.f32.mrf.mxu0 }
 0x951   : > { %v3884_v24 = vmax.f32 %v3880_v28, %v9941_v43 }
 0x952   : > { %v9947_v31 = vpop.f32.mrf.mxu0 }
 0x953   : > { %v3887_v58 = vmax.f32 %v3883_v57, %v9947_v31 }
 0x954   : > { %v9953_v46 = vpop.f32.mrf.mxu0 }
 0x955   : > { %v3886_v45 = vmax.f32 %v3882_v38, %v9953_v46 }
 0x956   : > { %v9959_v50 = vpop.f32.mrf.mxu0 }
 0x957   : > { %v3889_v49 = vmax.f32 %v3885_v52, %v9959_v50  ;;  %v3890_v34 = vmax.f32 %v3886_v45, %v3887_v58 }
 0x958   : > { %v9965_v14 = vpop.f32.mrf.mxu0 }
 0x959   : > { %v3888_v23 = vmax.f32 %v3884_v24, %v9965_v14 }
 0x95b   : > { %v3891_v35 = vmax.f32 %v3888_v23, %v3889_v49 }
 0x95d   : > { %v3892_v12 = vmax.f32 %v3890_v34, %v3891_v35 }
 0x95f   : > { %v3893_v55 = vrot.slane %v3892_v12, 4 }
 0x961   : > { %v3894_v13 = vmax.f32 %v3892_v12, %v3893_v55 }
 0x963   : > { %v3895_v41 = vrot.slane %v3894_v13, 2 }
 0x965   : > { %v3896_v0 = vmax.f32 %v3894_v13, %v3895_v41 }
 0x967   : > { %v3897_v40 = vrot.slane %v3896_v0, 1 }
 0x969   : > { %v9970_v60 = vmax.f32 %v3896_v0, %v3897_v40 }
 0x96b   : > { %v3899_v3 = vsub.f32 %v9874_v10, %v9970_v60  ;;  %v3900_v32 = vsub.f32 %v9867_v8, %v9970_v60  ;;  %v3901_v20 = vsub.f32 %v9880_v61, %v9970_v60  ;;  %v3902_v4 = vsub.f32 %v9878_v16, %v9970_v60 }
 0x96c   : > { %v3903_v59 = vsub.f32 %v9884_v51, %v9970_v60  ;;  %v3904_v21 = vsub.f32 %v9882_v33, %v9970_v60  ;;  %v3905_v8 = vsub.f32 %v9888_v54, %v9970_v60  ;;  %v3906_v16 = vsub.f32 %v9886_v47, %v9970_v60 }
 0x96d   : > { %v3931_v11 = vmul.f32 1.442695, %v3899_v3  ;;  %v3933_v30 = vmul.f32 1.442695, %v3900_v32  ;;  %v3935_v37 = vmul.f32 1.442695, %v3901_v20  ;;  %v3907_v51 = vsub.f32 %v9892_v7, %v9970_v60 }
 0x96e   : > { %v3937_v28 = vmul.f32 1.442695, %v3902_v4  ;;  %v3939_v10 = vmul.f32 1.442695, %v3903_v59  ;;  %v3941_v61 = vmul.f32 1.442695, %v3904_v21  ;;  %v3908_v33 = vsub.f32 %v9890_v19, %v9970_v60 }
 0x96f   : > { %7433 = vpow2.f32 %v3931_v11  ;;  %v3943_v38 = vmul.f32 1.442695, %v3905_v8  ;;  %v3945_v57 = vmul.f32 1.442695, %v3906_v16  ;;  %v3909_v54 = vsub.f32 %v9896_v56, %v9970_v60 }
 0x970   : > { %7435 = vpow2.f32 %v3933_v30  ;;  %v3947_v52 = vmul.f32 1.442695, %v3907_v51  ;;  %v3910_v47 = vsub.f32 %v9894_v18, %v9970_v60  ;;  %v3949_v24 = vmul.f32 1.442695, %v3908_v33 }
 0x971   : > { %7437 = vpow2.f32 %v3935_v37  ;;  %v3911_v7 = vsub.f32 %v9900_v48, %v9970_v60  ;;  %v3951_v58 = vmul.f32 1.442695, %v3909_v54  ;;  %v3912_v49 = vsub.f32 %v9898_v53, %v9970_v60 }
 0x972   : > { %7439 = vpow2.f32 %v3937_v28  ;;  %v3953_v18 = vmul.f32 1.442695, %v3910_v47  ;;  %v3913_v12 = vsub.f32 %v9904_v17, %v9970_v60  ;;  %v3914_v40 = vsub.f32 %v9902_v15, %v9970_v60 }
 0x973   : > { %7441 = vpow2.f32 %v3939_v10  ;;  %v3955_v55 = vmul.f32 1.442695, %v3911_v7  ;;  %v3957_v3 = vmul.f32 1.442695, %v3912_v49  ;;  %v3915_v59 = vsub.f32 %v9908_v42, %v9970_v60 }
 0x974   : > { %7443 = vpow2.f32 %v3941_v61  ;;  %v3916_v11 = vsub.f32 %v9906_v29, %v9970_v60  ;;  %v3959_v30 = vmul.f32 1.442695, %v3913_v12  ;;  %v3917_v8 = vsub.f32 %v9912_v39, %v9970_v60 }
 0x975   : > { %7445 = vpow2.f32 %v3943_v38  ;;  %v3918_v10 = vsub.f32 %v9910_v6, %v9970_v60  ;;  %v3930_v42 = vsub.f32 %v9959_v50, %v9970_v60  ;;  %v3961_v29 = vmul.f32 1.442695, %v3914_v40 }
 0x976   : > { %7447 = vpow2.f32 %v3945_v57  ;;  %v3919_v33 = vsub.f32 %v9916_v27, %v9970_v60  ;;  %v3920_v39 = vsub.f32 %v9914_v5, %v9970_v60  ;;  %v3929_v6 = vsub.f32 %v9965_v14, %v9970_v60 }
 0x977   : > { %7449 = vpow2.f32 %v3947_v52  ;;  %v3963_v50 = vmul.f32 1.442695, %v3915_v59  ;;  %v3928_v27 = vsub.f32 %v9947_v31, %v9970_v60  ;;  %v3965_v5 = vmul.f32 1.442695, %v3916_v11 }
 0x978   : > { %7451 = vpow2.f32 %v3949_v24  ;;  %v3921_v24 = vsub.f32 %v9920_v25, %v9970_v60  ;;  %v3993_v7 = vmul.f32 1.442695, %v3930_v42  ;;  %v3927_v25 = vsub.f32 %v9953_v46, %v9970_v60 }
 0x979   : > { %7453 = vpow2.f32 %v3951_v58 }
 0x97a   : > { %7455 = vpow2.f32 %v3953_v18  ;;  %v3922_v18 = vsub.f32 %v9918_v36, %v9970_v60  ;;  %v3989_v36 = vmul.f32 1.442695, %v3928_v27  ;;  %v3987_v59 = vmul.f32 1.442695, %v3927_v25 }
 0x97b   : > { %7457 = vpow2.f32 %v3955_v55 }
 0x97c   : > { %v9998_v45 = vpop.eup %7433  ;;  %7459 = vpow2.f32 %v3957_v3 }
 0x97d   : > { %v10000_v19 = vpop.eup %7435  ;;  %v4033_v56 = vmul.f32 %v9998_v45, %v9998_v45  ;;  %7461 = vpow2.f32 %v3959_v30 }
 0x97e   : > { %v10006_v23 = vpop.eup %7437  ;;  %v3995_v34 = vadd.f32 %v10000_v19, %v9998_v45  ;;  %v4034_v48 = vmul.f32 %v10000_v19, %v10000_v19  ;;  %7463 = vpow2.f32 %v3961_v29 }
 0x97f   : > { %v10012_v35 = vpop.eup %7439  ;;  %v4035_v13 = vmul.f32 %v10006_v23, %v10006_v23  ;;  %7465 = vpow2.f32 %v3963_v50  ;;  %v3977_v50 = vmul.f32 1.442695, %v3922_v18 }
 0x980   : > { %v3996_v53 = vadd.f32 %v10006_v23, %v3995_v34  ;;  %v4065_v41 = vadd.f32 %v4034_v48, %v4033_v56  ;;  %v10019_v0 = vpop.eup %7441  ;;  %v4036_v17 = vmul.f32 %v10012_v35, %v10012_v35  ;;  %v3967_v34 = vmul.f32 1.442695, %v3917_v8 }
 0x981   : > { %v10026_v4 = vpop.eup %7443  ;;  %v4037_v37 = vmul.f32 %v10019_v0, %v10019_v0  ;;  %v3991_v48 = vmul.f32 1.442695, %v3929_v6  ;;  %7467 = vpow2.f32 %v3965_v5 }
 0x982   : > { %v3997_v32 = vadd.f32 %v10012_v35, %v3996_v53  ;;  %v4066_v20 = vadd.f32 %v4065_v41, %v4035_v13  ;;  %v10035_v28 = vpop.eup %7445  ;;  %v4038_v61 = vmul.f32 %v10026_v4, %v10026_v4  ;;  %v3926_v13 = vsub.f32 %v9935_v22, %v9970_v60 }
 0x983   : > { %v10046_v38 = vpop.eup %7447  ;;  %v4039_v54 = vmul.f32 %v10035_v28, %v10035_v28  ;;  %v3969_v41 = vmul.f32 1.442695, %v3918_v10  ;;  %7469 = vpow2.f32 %v3993_v7 }
 0x984   : > { %v3998_v15 = vadd.f32 %v10019_v0, %v3997_v32  ;;  %v4067_v21 = vadd.f32 %v4066_v20, %v4036_v17  ;;  %v10057_v47 = vpop.eup %7449  ;;  %v4040_v58 = vmul.f32 %v10046_v38, %v10046_v38  ;;  %v3925_v17 = vsub.f32 %v9941_v43, %v9970_v60 }
 0x985   : > { %v10066_v56 = vpop.eup %7451  ;;  %v4041_v12 = vmul.f32 %v10057_v47, %v10057_v47  ;;  %7471 = vpow2.f32 %v3967_v34  ;;  %v3971_v20 = vmul.f32 1.442695, %v3919_v33  ;;  %v3985_v8 = vmul.f32 1.442695, %v3926_v13 }
 0x986   : > { %v3999_v16 = vadd.f32 %v10026_v4, %v3998_v15  ;;  %v4068_v51 = vadd.f32 %v4067_v21, %v4037_v37  ;;  %v10075_v53 = vpop.eup %7453  ;;  %v4042_v40 = vmul.f32 %v10066_v56, %v10066_v56  ;;  %7473 = vpow2.f32 %v3991_v48 }
 0x987   : > { %v10082_v32 = vpop.eup %7455  ;;  %v4043_v11 = vmul.f32 %v10075_v53, %v10075_v53  ;;  %v3924_v37 = vsub.f32 %v9922_v62, %v9970_v60  ;;  %7475 = vpow2.f32 %v3969_v41  ;;  %v3973_v21 = vmul.f32 1.442695, %v3920_v39 }
 0x988   : > { %v4000_v57 = vadd.f32 %v10035_v28, %v3999_v16  ;;  %v4069_v52 = vadd.f32 %v4068_v51, %v4038_v61  ;;  %v10089_v15 = vpop.eup %7457  ;;  %7477 = vpow2.f32 %v3989_v36  ;;  %v4044_v10 = vmul.f32 %v10082_v32, %v10082_v32 }
 0x989   : > { %v7460_v29 = vpop.eup %7459  ;;  %v3923_v16 = vsub.f32 %v9926_v63, %v9970_v60  ;;  %7479 = vpow2.f32 %v3971_v20  ;;  %v3975_v61 = vmul.f32 1.442695, %v3921_v24  ;;  %v3983_v51 = vmul.f32 1.442695, %v3925_v17 }
 0x98a   : > { %v4001_v14 = vadd.f32 %v10046_v38, %v4000_v57  ;;  %v4070_v49 = vadd.f32 %v4069_v52, %v4039_v54  ;;  %7481 = vpow2.f32 %v3987_v59  ;;  %v4045_v33 = vmul.f32 %v10089_v15, %v10089_v15  ;;  %v7462_v6 = vpop.eup %7461 }
 0x98b   : > { %7483 = vpow2.f32 %v3973_v21  ;;  %v3981_v57 = vmul.f32 1.442695, %v3924_v37  ;;  %v4046_v52 = vmul.f32 %v7460_v29, %v7460_v29  ;;  %v7464_v5 = vpop.eup %7463  ;;  %v3979_v63 = vmul.f32 1.442695, %v3923_v16 }
 0x98c   : > { %v4002_v31 = vadd.f32 %v10057_v47, %v4001_v14  ;;  %v4071_v55 = vadd.f32 %v4070_v49, %v4040_v58  ;;  %7485 = vpow2.f32 %v3985_v8  ;;  %v4047_v24 = vmul.f32 %v7462_v6, %v7462_v6  ;;  %v10101_v14 = vpop.eup %7465 }
 0x98d   : > { %7487 = vpow2.f32 %v3975_v61  ;;  %v4048_v18 = vmul.f32 %v7464_v5, %v7464_v5 }
 0x98e   : > { %v4003_v46 = vadd.f32 %v10066_v56, %v4002_v31  ;;  %v4072_v3 = vadd.f32 %v4071_v55, %v4041_v12  ;;  %7489 = vpow2.f32 %v3983_v51  ;;  %v10103_v58 = vpop.eup %7467  ;;  %v4049_v12 = vmul.f32 %v10101_v14, %v10101_v14 }
 0x98f   : > { %7491 = vpow2.f32 %v3977_v50 }
 0x990   : > { %v4004_v22 = vadd.f32 %v10075_v53, %v4003_v46  ;;  %v4073_v30 = vadd.f32 %v4072_v3, %v4042_v40  ;;  %7493 = vpow2.f32 %v3981_v57  ;;  %v10105_v34 = vpop.eup %7469  ;;  %v4050_v46 = vmul.f32 %v10103_v58, %v10103_v58 }
 0x991   : > { %7495 = vpow2.f32 %v3979_v63  ;;  %6504 = vmatprep.subr.mxu1 %v10105_v34 }
 0x992   : > { %v4005_v43 = vadd.f32 %v10082_v32, %v4004_v22  ;;  %v4074_v42 = vadd.f32 %v4073_v30, %v4043_v11  ;;  %v10107_v48 = vpop.eup %7471  ;;  %6505 = vmatpush3.msra.mxu1 %v7464_v5  ;;  %v10127_v30 = vpop.trf.xlu1 }
 0x993   : > { %v10113_v13 = vpop.eup %7473  ;;  %v4051_v59 = vmul.f32 %v10107_v48, %v10107_v48  ;;  %11360 = vst [vmem:[#allocation40_spill] sm:$0xff] %v10127_v30 }
 0x994   : > { %v4006_v62 = vadd.f32 %v10089_v15, %v4005_v43  ;;  %v4075_v39 = vadd.f32 %v4074_v42, %v4044_v10  ;;  %v10115_v41 = vpop.eup %7475  ;;  %6506 = vmatprep.subr.mxu1 %v10113_v13 }
 0x995   : > { %v10121_v3 = vpop.eup %7477  ;;  %6507 = vmatpush3.msra.mxu1 %v7462_v6  ;;  %v4052_v8 = vmul.f32 %v10115_v41, %v10115_v41 }
 0x996   : > { %v4007_v54 = vadd.f32 %v7460_v29, %v4006_v62  ;;  %v4076_v27 = vadd.f32 %v4075_v39, %v4045_v33  ;;  %v7480_v17 = vpop.eup %7479  ;;  %6508 = vmatprep.subr.mxu1 %v10121_v3  ;;  %v10134_v57 = vpop.trf.xlu1 }
 0x997   : > { %v7482_v11 = vpop.eup %7481  ;;  %6509 = vmatpush3.msra.mxu1 %v7460_v29  ;;  %v4053_v61 = vmul.f32 %v7480_v17, %v7480_v17  ;;  %11361 = vst [vmem:[#allocation41_spill] sm:$0xff] %v10134_v57 }
 0x998   : > { %v4008_v60 = vadd.f32 %v7462_v6, %v4007_v54  ;;  %v4077_v7 = vadd.f32 %v4076_v27, %v4046_v52  ;;  %v7484_v37 = vpop.eup %7483  ;;  %6510 = vmatprep.subr.mxu1 %v7482_v11 }
 0x999   : > { %v7486_v10 = vpop.eup %7485  ;;  %6511 = vmatpush3.msra.mxu1 %v10089_v15  ;;  %v4054_v39 = vmul.f32 %v7484_v37, %v7484_v37 }
 0x99a   : > { %v4009_v49 = vadd.f32 %v7464_v5, %v4008_v60  ;;  %v4078_v25 = vadd.f32 %v4077_v7, %v4047_v24  ;;  %v7488_v42 = vpop.eup %7487  ;;  %6512 = vmatprep.subr.mxu1 %v7486_v10 }
 0x99b   : > { %v7490_v62 = vpop.eup %7489  ;;  %6513 = vmatpush3.msra.mxu1 %v10082_v32  ;;  %v4055_v15 = vmul.f32 %v7488_v42, %v7488_v42 }
 0x99c   : > { %v4010_v31 = vadd.f32 %v10101_v14, %v4009_v49  ;;  %v4079_v55 = vadd.f32 %v4078_v25, %v4048_v18  ;;  %v7492_v29 = vpop.eup %7491  ;;  %6514 = vmatprep.subr.mxu1 %v7490_v62  ;;  %v10139_v49 = vpop.trf.xlu1 }
 0x99d   : > { %v7494_v50 = vpop.eup %7493  ;;  %6515 = vmatpush3.msra.mxu1 %v10075_v53  ;;  %v4056_v32 = vmul.f32 %v7492_v29, %v7492_v29  ;;  %11362 = vst [vmem:[#allocation44_spill] sm:$0xff] %v10139_v49 }
 0x99e   : > { %v4011_v36 = vadd.f32 %v10103_v58, %v4010_v31  ;;  %v4080_v40 = vadd.f32 %v4079_v55, %v4049_v12  ;;  %6516 = vmatprep.subr.mxu1 %v7494_v50  ;;  %v7496_v27 = vpop.eup %7495  ;;  %v4058_v18 = vmul.f32 %v7494_v50, %v7494_v50  ;;  %v4059_v31 = vmul.f32 %v7490_v62, %v7490_v62 }
 0x99f   : > { %6517 = vmatpush3.msra.mxu1 %v10066_v56  ;;  %v4057_v24 = vmul.f32 %v7496_v27, %v7496_v27  ;;  %v4060_v55 = vmul.f32 %v7486_v10, %v7486_v10 }
 0x9a0   : > { %v4012_v20 = vadd.f32 %v10107_v48, %v4011_v36  ;;  %v4081_v22 = vadd.f32 %v4080_v40, %v4050_v46  ;;  %6518 = vmatprep.subr.mxu1 %v7496_v27  ;;  %v10144_v46 = vpop.trf.xlu1  ;;  %v4061_v40 = vmul.f32 %v7482_v11, %v7482_v11 }
 0x9a1   : > { %6519 = vmatpush3.msra.mxu1 %v10057_v47  ;;  %11363 = vst [vmem:[#allocation45_spill] sm:$0xff] %v10144_v46 }
 0x9a2   : > { %v4013_v21 = vadd.f32 %v10115_v41, %v4012_v20  ;;  %v4082_v43 = vadd.f32 %v4081_v22, %v4051_v59  ;;  %6520 = vmatprep.subr.mxu1 %v7492_v29 }
 0x9a3   : > { %6521 = vmatpush3.msra.mxu1 %v10046_v38 }
 0x9a4   : > { %v4014_v16 = vadd.f32 %v7480_v17, %v4013_v21  ;;  %v4083_v51 = vadd.f32 %v4082_v43, %v4052_v8  ;;  %6522 = vmatprep.subr.mxu1 %v7488_v42  ;;  %v10158_v22 = vpop.trf.xlu1  ;;  %v11369_v43 = vld [vmem:[#allocation74_spill] sm:$0xff] }
 0x9a5   : > { %6523 = vmatpush3.msra.mxu1 %v10035_v28  ;;  %11364 = vst [vmem:[#allocation46_spill] sm:$0xff] %v10158_v22 }
 0x9a6   : > { %v4015_v33 = vadd.f32 %v7484_v37, %v4014_v16  ;;  %v4084_v6 = vadd.f32 %v4083_v51, %v4053_v61  ;;  %6524 = vmatprep.subr.mxu1 %v7484_v37  ;;  %v11366_v37 = vld [vmem:[#allocation72_spill] sm:$0xff] }
 0x9a7   : > { %6525 = vmatpush3.msra.mxu1 %v10026_v4  ;;  %v4062_v4 = vmul.f32 %v10121_v3, %v10121_v3  ;;  %v11372_v61 = vld [vmem:[#allocation76_spill] sm:$0xff] }
 0x9a8   : > { %v4016_v54 = vadd.f32 %v7488_v42, %v4015_v33  ;;  %v4085_v52 = vadd.f32 %v4084_v6, %v4054_v39  ;;  %6526 = vmatprep.subr.mxu1 %v7480_v17  ;;  %v10170_v21 = vpop.trf.xlu1  ;;  %v11374_v33 = vld [vmem:[#allocation78_spill] sm:$0xff]  ;;  %v11376_v6 = vld [vmem:[#allocation79_spill] sm:$0xff] }
 0x9a9   : > { %6527 = vmatpush3.msra.mxu1 %v10019_v0  ;;  %v4063_v0 = vmul.f32 %v10113_v13, %v10113_v13  ;;  %11367 = vst [vmem:[#allocation47_spill] sm:$0xff] %v10170_v21 }
 0x9aa   : > { %v4017_v5 = vadd.f32 %v7492_v29, %v4016_v54  ;;  %v4086_v63 = vadd.f32 %v4085_v52, %v4055_v15  ;;  %6528 = vmatprep.subr.mxu1 %v10115_v41  ;;  %v11377_v54 = vld [vmem:[#allocation80_spill] sm:$0xff]  ;;  %v11378_v15 = vld [vmem:[#allocation81_spill] sm:$0xff] }
 0x9ab   : > { %6529 = vmatpush3.msra.mxu1 %v10012_v35 }
 0x9ac   : > { %v4018_v60 = vadd.f32 %v7496_v27, %v4017_v5  ;;  %v4087_v7 = vadd.f32 %v4086_v63, %v4056_v32  ;;  %6530 = vmatprep.subr.mxu1 %v10107_v48  ;;  %v11365_v48 = vld [vmem:[#allocation55_spill] sm:$0xff]  ;;  %v10178_v16 = vpop.trf.xlu1  ;;  %v11380_v5 = vld [vmem:[#allocation82_spill] sm:$0xff] }
 0x9ad   : > { %6531 = vmatpush3.msra.mxu1 %v10006_v23  ;;  %v4064_v23 = vmul.f32 %v10105_v34, %v10105_v34  ;;  %11371 = vst [vmem:[#allocation48_spill] sm:$0xff] %v10178_v16  ;;  %v11381_v32 = vld [vmem:[#allocation83_spill] sm:$0xff] }
 0x9ae   : > { %v4019_v53 = vadd.f32 %v7494_v50, %v4018_v60  ;;  %v4088_v25 = vadd.f32 %v4087_v7, %v4057_v24  ;;  %6532 = vmatprep.subr.mxu1 %v10103_v58  ;;  %v11382_v24 = vld [vmem:[#allocation26_spill] sm:$0xff] }
 0x9af   : > { %6533 = vmatpush3.msra.mxu1 %v10000_v19 }
 0x9b0   : > { %v4020_v56 = vadd.f32 %v7490_v62, %v4019_v53  ;;  %v4089_v12 = vadd.f32 %v4088_v25, %v4058_v18  ;;  %6534 = vmatprep.subr.mxu1 %v10101_v14  ;;  %v11368_v14 = vld [vmem:[#allocation73_spill] sm:$0xff]  ;;  %v10186_v39 = vpop.trf.xlu1  ;;  %v11384_v18 = vld [vmem:[#allocation27_spill] sm:$0xff] }
 0x9b1   : > { %6535 = vmatpush3.msra.mxu1 %v9998_v45  ;;  %v11373_v62 = vld [vmem:[#allocation77_spill] sm:$0xff]  ;;  %11375 = vst [vmem:[#allocation49_spill] sm:$0xff] %v10186_v39 }
 0x9b2   : > { %v4021_v47 = vadd.f32 %v7486_v10, %v4020_v56  ;;  %v4090_v36 = vadd.f32 %v4089_v12, %v4059_v31  ;;  %4181 = vmatmul.mubr.f32.vlgmr.msra.gmra.mxu1 %v11301_v26  ;;  %v11370_v10 = vld [vmem:[#allocation75_spill] sm:$0xff]  ;;  %v11385_v56 = vld [vmem:[#allocation28_spill] sm:$0xff]  ;;  %v11386_v12 = vld [vmem:[#allocation29_spill] sm:$0xff] }
 0x9b3   : > { %6977 = vmatprep.mubr.msk.f32.mxu1 %vm446_vm1, %v11366_v37 }
 0x9b4   : > { %v4022_v38 = vadd.f32 %v7482_v11, %v4021_v47  ;;  %v4091_v20 = vadd.f32 %v4090_v36, %v4060_v55  ;;  %v10194_v27 = vpop.trf.xlu1 }
 0x9b5   : > { %11379 = vst [vmem:[#allocation50_spill] sm:$0xff] %v10194_v27 }
 0x9b6   : > { %v4023_v28 = vadd.f32 %v10121_v3, %v4022_v38  ;;  %v4092_v17 = vadd.f32 %v4091_v20, %v4061_v40  ;;  %v4193_v3 = vmul.f32 0.35355338, %v11365_v48 }
 0x9b8   : > { %v4024_v59 = vadd.f32 %v10113_v13, %v4023_v28  ;;  %v4093_v41 = vadd.f32 %v4092_v17, %v4062_v4  ;;  %6975 = vmatprep.subr.mxu1 %v4193_v3  ;;  %v10202_v53 = vpop.trf.xlu1 }
 0x9b9   : > { %6976 = vmatpush3.msra.mxu1 %v4193_v3  ;;  %11383 = vst [vmem:[#allocation51_spill] sm:$0xff] %v10202_v53 }
 0x9ba   : > { %v4025_v35 = vadd.f32 %v10105_v34, %v4024_v59  ;;  %v4094_v11 = vadd.f32 %v4093_v41, %v4063_v0  ;;  %6978 = vmatmul.mubr.msk.f32.vlgmr.msra.gmra.mxu1 %vm446_vm1, %v11368_v14 }
 0x9bb   : > { %6980 = vmatprep.mubr.msk.f32.mxu1 %vm446_vm1, %v11369_v43 }
 0x9bc   : > { %v4026_v58 = vrot.slane %v4025_v35, 4  ;;  %v4095_v13 = vadd.f32 %v4094_v11, %v4064_v23  ;;  %v10211_v47 = vpop.trf.xlu1 }
 0x9bd   : > { %11387 = vst [vmem:[#allocation52_spill] sm:$0xff] %v10211_v47 }
 0x9be   : > { %v4027_v19 = vadd.f32 %v4026_v58, %v4025_v35  ;;  %v4096_v34 = vrot.slane %v4095_v13, 4  ;;  %6981 = vmatmul.mubr.msk.f32.gmra.mxu1 %vm446_vm1, %v11370_v10 }
 0x9bf   : > { %6983 = vmatprep.mubr.msk.f32.mxu1 %vm446_vm1, %v11372_v61 }
 0x9c0   : > { %v4028_v8 = vrot.slane %v4027_v19, 2  ;;  %v4097_v42 = vadd.f32 %v4096_v34, %v4095_v13  ;;  %v10219_v55 = vpop.trf.xlu1 }
 0x9c1   : > { %11388 = vst [vmem:[#allocation53_spill] sm:$0xff] %v10219_v55 }
 0x9c2   : > { %v4029_v45 = vadd.f32 %v4028_v8, %v4027_v19  ;;  %6984 = vmatmul.mubr.msk.f32.gmra.mxu1 %vm446_vm1, %v11373_v62  ;;  %v4098_v29 = vrot.slane %v4097_v42, 2 }
 0x9c3   : > { %6986 = vmatprep.mubr.msk.f32.mxu1 %vm446_vm1, %v11374_v33 }
 0x9c4   : > { %v4030_v26 = vrot.slane %v4029_v45, 1  ;;  %v4099_v50 = vadd.f32 %v4098_v29, %v4097_v42  ;;  %v10227_v36 = vpop.trf.xlu1 }
 0x9c5   : > { %11389 = vst [vmem:[#allocation54_spill] sm:$0xff] %v10227_v36 }
 0x9c6   : > { %v4031_v51 = vadd.f32 %v4030_v26, %v4029_v45  ;;  %6987 = vmatmul.mubr.msk.f32.gmra.mxu1 %vm446_vm1, %v11376_v6  ;;  %v4100_v52 = vrot.slane %v4099_v50, 1 }
 0x9c7   : > { %6989 = vmatprep.mubr.msk.f32.mxu1 %vm446_vm1, %v11377_v54 }
 0x9c8   : > { %7497 = vrcp.f32 %v4031_v51  ;;  %v4101_v63 = vadd.f32 %v4100_v52, %v4099_v50  ;;  %v10235_v38 = vpop.trf.xlu1 }
 0x9c9   : > { %11390 = vst [vmem:[#allocation12_spill] sm:$0xff] %v10235_v38 }
 0x9ca   : > { %6990 = vmatmul.mubr.msk.f32.gmra.mxu1 %vm446_vm1, %v11378_v15 }
 0x9cb   : > { %6992 = vmatprep.mubr.msk.f32.mxu1 %vm446_vm1, %v11380_v5 }
 0x9cc   : > { %v10243_v40 = vpop.trf.xlu1 }
 0x9cd   : > { %11391 = vst [vmem:[#allocation13_spill] sm:$0xff] %v10243_v40 }
 0x9ce   : > { %6993 = vmatmul.mubr.msk.f32.gmra.mxu1 %vm446_vm1, %v11381_v32 }
 0x9cf   : > { %6995 = vmatprep.mubr.msk.f32.mxu1 %vm446_vm1, %v11382_v24 }
 0x9d0   : > { %v10251_v20 = vpop.trf.xlu1 }
 0x9d1   : > { %11392 = vst [vmem:[#allocation15_spill] sm:$0xff] %v10251_v20 }
 0x9d2   : > { %6996 = vmatmul.mubr.msk.f32.gmra.mxu1 %vm446_vm1, %v11384_v18 }
 0x9d3   : > { %6998 = vmatprep.mubr.msk.f32.mxu1 %vm446_vm1, %v11385_v56 }
 0x9d5   : > { %v7498_v60 = vpop.eup %7497 }
 0x9d6   : > { %v4102_v7 = vmul.f32 %v7498_v60, %v4101_v63  ;;  %6999 = vmatmul.mubr.msk.f32.gmra.mxu1 %vm446_vm1, %v11386_v12 }
 0x9d7   : > { %7001 = vmatprep.mubr.msk.f32.mxu1 %vm446_vm1, %v10127_v30 }
 0x9d8   : > { %v4103_v25 = vmul.f32 %v7498_v60, %v4102_v7 }
 0x9da   : > { %v4104_v31 = vsel %vm1010_vm2, %v4103_v25, 0.0  ;;  %7002 = vmatmul.mubr.msk.f32.gmra.mxu1 %vm446_vm1, %v10134_v57 }
 0x9db   : > { %4105 = vadd.xlane.f32.xlu0 %v4104_v31  ;;  %7004 = vmatprep.mubr.msk.f32.mxu1 %vm446_vm1, %v10139_v49 }
 0x9de   : > { %7005 = vmatmul.mubr.msk.f32.gmra.mxu1 %vm446_vm1, %v10144_v46 }
 0x9df   : > { %7007 = vmatprep.mubr.msk.f32.mxu1 %vm446_vm1, %v10158_v22 }
 0x9e2   : > { %7008 = vmatmul.mubr.msk.f32.gmra.mxu1 %vm446_vm1, %v10170_v21 }
 0x9e3   : > { %7010 = vmatprep.mubr.msk.f32.mxu1 %vm446_vm1, %v10178_v16 }
 0x9e6   : > { %7011 = vmatmul.mubr.msk.f32.gmra.mxu1 %vm446_vm1, %v10186_v39 }
 0x9e7   : > { %7013 = vmatprep.mubr.msk.f32.mxu1 %vm446_vm1, %v10194_v27 }
 0x9ea   : > { %7014 = vmatmul.mubr.msk.f32.gmra.mxu1 %vm446_vm1, %v10202_v53 }
 0x9eb   : > { %7016 = vmatprep.mubr.msk.f32.mxu1 %vm446_vm1, %v10211_v47 }
 0x9ee   : > { %7017 = vmatmul.mubr.msk.f32.gmra.mxu1 %vm446_vm1, %v10219_v55 }
 0x9ef   : > { %7019 = vmatprep.mubr.msk.f32.mxu1 %vm446_vm1, %v10227_v36 }
 0x9f2   : > { %7020 = vmatmul.mubr.msk.f32.gmra.mxu1 %vm446_vm1, %v10235_v38 }
 0x9f3   : > { %7022 = vmatprep.mubr.msk.f32.mxu1 %vm446_vm1, %v10243_v40 }
 0x9f6   : > { %7023 = vmatmul.mubr.msk.f32.gmra.mxu1 %vm446_vm1, %v10251_v20 }
 0x9f7   : > { %5450 = vmatprep.mubr.f32.mxu1 %v11356_v1 }
 0xa64   : > { %v4106_v28 = vpop.xlane.xlu0 %4105 }
 0xa65   : > { %v4107_v4 = vrot.slane %v4106_v28, 4 }
 0xa67   : > { %v4108_v17 = vadd.f32 %v4107_v4, %v4106_v28 }
 0xa69   : > { %v4109_v59 = vrot.slane %v4108_v17, 2 }
 0xa6b   : > { %v4110_v0 = vadd.f32 %v4109_v59, %v4108_v17 }
 0xa6d   : > { %v4111_v41 = vrot.slane %v4110_v0, 1 }
 0xa6f   : > { %v4112_v35 = vadd.f32 %v4111_v41, %v4110_v0 }
 0xa71   : > { %7085 = vpush %v4112_v35 }
 0xa72   : > { %v6536_v3 = vpop.f32.mrf.mxu1 }
 0xa74   : > { %v6537_v23 = vpop.f32.mrf.mxu1 }
 0xa75   : > { %v6538_v11 = vadd.f32 %v6537_v23, %v6536_v3 }
 0xa77   : > { %v10258_v13 = vmul.f32 %v7498_v60, %v6538_v11 }
 0xa79   : > { %11393 = vst [vmem:[#allocation17_spill] sm:$0xff] %v10258_v13 }
 0xa7a   : > { %v10256_v58 = vpop.f32.mrf.mxu1 }
 0xa7c   : > { %v10260_v19 = vpop.f32.mrf.mxu1 }
 0xa7e   : > { %v10264_v34 = vpop.f32.mrf.mxu1 }
 0xa80   : > { %v10266_v45 = vpop.f32.mrf.mxu1 }
 0xa82   : > { %v10268_v26 = vpop.f32.mrf.mxu1 }
 0xa83   : > { %v4580_v2 = vmax.f32 %v10256_v58, %v10268_v26 }
 0xa84   : > { %v10270_v42 = vpop.f32.mrf.mxu1 }
 0xa85   : > { %v4579_v44 = vmax.f32 %v10260_v19, %v10270_v42 }
 0xa86   : > { %v10272_v51 = vpop.f32.mrf.mxu1 }
 0xa87   : > { %v4582_v9 = vmax.f32 %v10264_v34, %v10272_v51 }
 0xa88   : > { %v10274_v29 = vpop.f32.mrf.mxu1 }
 0xa89   : > { %v4581_v13 = vmax.f32 %v10266_v45, %v10274_v29 }
 0xa8a   : > { %v10276_v50 = vpop.f32.mrf.mxu1 }
 0xa8b   : > { %v4584_v38 = vmax.f32 %v4580_v2, %v10276_v50 }
 0xa8c   : > { %v10278_v52 = vpop.f32.mrf.mxu1 }
 0xa8d   : > { %v4583_v20 = vmax.f32 %v4579_v44, %v10278_v52 }
 0xa8e   : > { %v10280_v63 = vpop.f32.mrf.mxu1 }
 0xa8f   : > { %v4586_v36 = vmax.f32 %v4582_v9, %v10280_v63 }
 0xa90   : > { %v10282_v60 = vpop.f32.mrf.mxu1 }
 0xa91   : > { %v4585_v55 = vmax.f32 %v4581_v13, %v10282_v60 }
 0xa92   : > { %v10284_v7 = vpop.f32.mrf.mxu1 }
 0xa93   : > { %v4588_v27 = vmax.f32 %v4584_v38, %v10284_v7 }
 0xa94   : > { %v10286_v25 = vpop.f32.mrf.mxu1 }
 0xa95   : > { %v4587_v47 = vmax.f32 %v4583_v20, %v10286_v25 }
 0xa96   : > { %v10288_v31 = vpop.f32.mrf.mxu1 }
 0xa97   : > { %v4590_v39 = vmax.f32 %v4586_v36, %v10288_v31 }
 0xa98   : > { %v10290_v28 = vpop.f32.mrf.mxu1 }
 0xa99   : > { %v4589_v16 = vmax.f32 %v4585_v55, %v10290_v28 }
 0xa9a   : > { %v10292_v4 = vpop.f32.mrf.mxu1 }
 0xa9b   : > { %v4592_v2 = vmax.f32 %v4588_v27, %v10292_v4 }
 0xa9c   : > { %v10294_v17 = vpop.f32.mrf.mxu1 }
 0xa9d   : > { %v4591_v44 = vmax.f32 %v4587_v47, %v10294_v17 }
 0xa9e   : > { %v10296_v59 = vpop.f32.mrf.mxu1 }
 0xa9f   : > { %v4594_v9 = vmax.f32 %v4590_v39, %v10296_v59 }
 0xaa0   : > { %v10298_v0 = vpop.f32.mrf.mxu1 }
 0xaa1   : > { %v4593_v13 = vmax.f32 %v4589_v16, %v10298_v0 }
 0xaa2   : > { %v10300_v41 = vpop.f32.mrf.mxu1  ;;  %s7086_s28 = spop %7085 }
 0xaa3   : > { %v4596_v38 = vmax.f32 %v4592_v2, %v10300_v41 }
 0xaa4   : > { %v10302_v35 = vpop.f32.mrf.mxu1 }
 0xaa5   : > { %v4595_v20 = vmax.f32 %v4591_v44, %v10302_v35 }
 0xaa6   : > { %v10304_v3 = vpop.f32.mrf.mxu1 }
 0xaa7   : > { %v4598_v36 = vmax.f32 %v4594_v9, %v10304_v3 }
 0xaa8   : > { %v10306_v23 = vpop.f32.mrf.mxu1 }
 0xaa9   : > { %v4597_v55 = vmax.f32 %v4593_v13, %v10306_v23 }
 0xaaa   : > { %v10308_v11 = vpop.f32.mrf.mxu1 }
 0xaab   : > { %v4600_v27 = vmax.f32 %v4596_v38, %v10308_v11 }
 0xaac   : > { %v10312_v8 = vpop.f32.mrf.mxu1 }
 0xaad   : > { %v4599_v47 = vmax.f32 %v4595_v20, %v10312_v8 }
 0xaae   : > { %v10321_v40 = vpop.f32.mrf.mxu1 }
 0xaaf   : > { %v4602_v39 = vmax.f32 %v4598_v36, %v10321_v40 }
 0xab0   : > { %v10327_v53 = vpop.f32.mrf.mxu1 }
 0xab1   : > { %v4601_v16 = vmax.f32 %v4597_v55, %v10327_v53 }
 0xab2   : > { %v10333_v21 = vpop.f32.mrf.mxu1 }
 0xab3   : > { %v4604_v2 = vmax.f32 %v4600_v27, %v10333_v21 }
 0xab4   : > { %v10339_v22 = vpop.f32.mrf.mxu1 }
 0xab5   : > { %v4603_v44 = vmax.f32 %v4599_v47, %v10339_v22 }
 0xab6   : > { %v10345_v46 = vpop.f32.mrf.mxu1 }
 0xab7   : > { %v4606_v9 = vmax.f32 %v4602_v39, %v10345_v46  ;;  %v4607_v57 = vmax.f32 %v4603_v44, %v4604_v2 }
 0xab8   : > { %v10351_v49 = vpop.f32.mrf.mxu1 }
 0xab9   : > { %v4605_v13 = vmax.f32 %v4601_v16, %v10351_v49 }
 0xabb   : > { %v4608_v20 = vmax.f32 %v4605_v13, %v4606_v9 }
 0xabd   : > { %v4609_v30 = vmax.f32 %v4607_v57, %v4608_v20 }
 0xabf   : > { %v4610_v12 = vrot.slane %v4609_v30, 4 }
 0xac1   : > { %v4611_v56 = vmax.f32 %v4609_v30, %v4610_v12 }
 0xac3   : > { %v4612_v38 = vrot.slane %v4611_v56, 2 }
 0xac5   : > { %v4613_v18 = vmax.f32 %v4611_v56, %v4612_v38 }
 0xac7   : > { %v4614_v36 = vrot.slane %v4613_v18, 1 }
 0xac9   : > { %v10356_v24 = vmax.f32 %v4613_v18, %v4614_v36 }
 0xacb   : > { %v4616_v55 = vsub.f32 %v10260_v19, %v10356_v24  ;;  %v4617_v47 = vsub.f32 %v10256_v58, %v10356_v24  ;;  %v4618_v27 = vsub.f32 %v10266_v45, %v10356_v24  ;;  %v4619_v39 = vsub.f32 %v10264_v34, %v10356_v24 }
 0xacc   : > { %v4620_v30 = vsub.f32 %v10270_v42, %v10356_v24  ;;  %v4621_v18 = vsub.f32 %v10268_v26, %v10356_v24  ;;  %v4622_v58 = vsub.f32 %v10274_v29, %v10356_v24  ;;  %v4623_v34 = vsub.f32 %v10272_v51, %v10356_v24 }
 0xacd   : > { %v4648_v57 = vmul.f32 1.442695, %v4616_v55  ;;  %v4650_v56 = vmul.f32 1.442695, %v4617_v47  ;;  %v4652_v12 = vmul.f32 1.442695, %v4618_v27  ;;  %v4624_v42 = vsub.f32 %v10278_v52, %v10356_v24 }
 0xace   : > { %v4654_v16 = vmul.f32 1.442695, %v4619_v39  ;;  %v4656_v19 = vmul.f32 1.442695, %v4620_v30  ;;  %v4658_v45 = vmul.f32 1.442695, %v4621_v18  ;;  %v4625_v26 = vsub.f32 %v10276_v50, %v10356_v24 }
 0xacf   : > { %7499 = vpow2.f32 %v4648_v57  ;;  %v4660_v44 = vmul.f32 1.442695, %v4622_v58  ;;  %v4662_v2 = vmul.f32 1.442695, %v4623_v34  ;;  %v4626_v29 = vsub.f32 %v10282_v60, %v10356_v24 }
 0xad0   : > { %7501 = vpow2.f32 %v4650_v56  ;;  %v4664_v9 = vmul.f32 1.442695, %v4624_v42  ;;  %v4627_v51 = vsub.f32 %v10280_v63, %v10356_v24  ;;  %v4666_v13 = vmul.f32 1.442695, %v4625_v26 }
 0xad1   : > { %7503 = vpow2.f32 %v4652_v12  ;;  %v4628_v52 = vsub.f32 %v10286_v25, %v10356_v24  ;;  %v4668_v38 = vmul.f32 1.442695, %v4626_v29  ;;  %v4629_v36 = vsub.f32 %v10284_v7, %v10356_v24 }
 0xad2   : > { %7505 = vpow2.f32 %v4654_v16  ;;  %v4670_v63 = vmul.f32 1.442695, %v4627_v51  ;;  %v4630_v39 = vsub.f32 %v10290_v28, %v10356_v24  ;;  %v4631_v18 = vsub.f32 %v10288_v31, %v10356_v24 }
 0xad3   : > { %7507 = vpow2.f32 %v4656_v19  ;;  %v4672_v30 = vmul.f32 1.442695, %v4628_v52  ;;  %v4674_v16 = vmul.f32 1.442695, %v4629_v36  ;;  %v4633_v42 = vsub.f32 %v10292_v4, %v10356_v24 }
 0xad4   : > { %7509 = vpow2.f32 %v4658_v45  ;;  %v4632_v45 = vsub.f32 %v10294_v17, %v10356_v24  ;;  %v4635_v51 = vsub.f32 %v10296_v59, %v10356_v24  ;;  %v4647_v17 = vsub.f32 %v10345_v46, %v10356_v24 }
 0xad5   : > { %7511 = vpow2.f32 %v4660_v44  ;;  %v4676_v44 = vmul.f32 1.442695, %v4630_v39  ;;  %v4678_v4 = vmul.f32 1.442695, %v4631_v18  ;;  %v4646_v59 = vsub.f32 %v10351_v49, %v10356_v24 }
 0xad6   : > { %7513 = vpow2.f32 %v4662_v2  ;;  %v4680_v46 = vmul.f32 1.442695, %v4632_v45 }
 0xad7   : > { %7515 = vpow2.f32 %v4664_v9  ;;  %v4634_v9 = vsub.f32 %v10298_v0, %v10356_v24  ;;  %v4637_v0 = vsub.f32 %v10300_v41, %v10356_v24  ;;  %v4682_v41 = vmul.f32 1.442695, %v4633_v42 }
 0xad8   : > { %7517 = vpow2.f32 %v4666_v13 }
 0xad9   : > { %7519 = vpow2.f32 %v4668_v38 }
 0xada   : > { %7521 = vpow2.f32 %v4670_v63 }
 0xadb   : > { %7523 = vpow2.f32 %v4672_v30  ;;  %v4638_v30 = vsub.f32 %v10306_v23, %v10356_v24  ;;  %v4644_v23 = vsub.f32 %v10339_v22, %v10356_v24 }
 0xadc   : > { %v10384_v20 = vpop.eup %7499  ;;  %7525 = vpow2.f32 %v4674_v16  ;;  %v4639_v16 = vsub.f32 %v10304_v3, %v10356_v24 }
 0xadd   : > { %v10386_v50 = vpop.eup %7501  ;;  %v4750_v60 = vmul.f32 %v10384_v20, %v10384_v20  ;;  %7527 = vpow2.f32 %v4676_v44  ;;  %v4643_v44 = vsub.f32 %v10321_v40, %v10356_v24 }
 0xade   : > { %v10392_v55 = vpop.eup %7503  ;;  %v4712_v47 = vadd.f32 %v10386_v50, %v10384_v20  ;;  %v4751_v25 = vmul.f32 %v10386_v50, %v10386_v50  ;;  %7529 = vpow2.f32 %v4678_v4 }
 0xadf   : > { %v10398_v27 = vpop.eup %7505  ;;  %v4752_v57 = vmul.f32 %v10392_v55, %v10392_v55  ;;  %7531 = vpow2.f32 %v4680_v46  ;;  %v4690_v46 = vmul.f32 1.442695, %v4637_v0 }
 0xae0   : > { %v4713_v7 = vadd.f32 %v10392_v55, %v4712_v47  ;;  %v4782_v56 = vadd.f32 %v4751_v25, %v4750_v60  ;;  %v10405_v12 = vpop.eup %7507  ;;  %v4753_v28 = vmul.f32 %v10398_v27, %v10398_v27  ;;  %v4636_v60 = vsub.f32 %v10302_v35, %v10356_v24 }
 0xae1   : > { %v10412_v34 = vpop.eup %7509  ;;  %v4754_v26 = vmul.f32 %v10405_v12, %v10405_v12  ;;  %v4645_v35 = vsub.f32 %v10333_v21, %v10356_v24  ;;  %7533 = vpow2.f32 %v4682_v41  ;;  %v4692_v41 = vmul.f32 1.442695, %v4638_v30 }
 0xae2   : > { %v4714_v58 = vadd.f32 %v10398_v27, %v4713_v7  ;;  %v4783_v19 = vadd.f32 %v4782_v56, %v4752_v57  ;;  %v10421_v29 = vpop.eup %7511  ;;  %v4755_v52 = vmul.f32 %v10412_v34, %v10412_v34  ;;  %v4710_v7 = vmul.f32 1.442695, %v4647_v17 }
 0xae3   : > { %v10432_v36 = vpop.eup %7513  ;;  %v4756_v47 = vmul.f32 %v10421_v29, %v10421_v29  ;;  %v4706_v3 = vmul.f32 1.442695, %v4645_v35  ;;  %v4642_v17 = vsub.f32 %v10327_v53, %v10356_v24  ;;  %v4688_v4 = vmul.f32 1.442695, %v4636_v60 }
 0xae4   : > { %v4715_v31 = vadd.f32 %v10405_v12, %v4714_v58  ;;  %v4784_v2 = vadd.f32 %v4783_v19, %v4753_v28  ;;  %v10443_v39 = vpop.eup %7515  ;;  %v4757_v57 = vmul.f32 %v10432_v36, %v10432_v36  ;;  %v4684_v58 = vmul.f32 1.442695, %v4634_v9 }
 0xae5   : > { %v10452_v18 = vpop.eup %7517  ;;  %v4708_v28 = vmul.f32 1.442695, %v4646_v59  ;;  %v4758_v19 = vmul.f32 %v10443_v39, %v10443_v39  ;;  %7535 = vpow2.f32 %v4710_v7  ;;  %v4641_v59 = vsub.f32 %v10308_v11, %v10356_v24 }
 0xae6   : > { %v4716_v13 = vadd.f32 %v10412_v34, %v4715_v31  ;;  %v4785_v38 = vadd.f32 %v4784_v2, %v4754_v26  ;;  %v10461_v42 = vpop.eup %7519  ;;  %v4686_v31 = vmul.f32 1.442695, %v4635_v51  ;;  %v4759_v26 = vmul.f32 %v10452_v18, %v10452_v18 }
 0xae7   : > { %v10468_v9 = vpop.eup %7521  ;;  %7537 = vpow2.f32 %v4684_v58  ;;  %v4760_v51 = vmul.f32 %v10461_v42, %v10461_v42  ;;  %v4640_v35 = vsub.f32 %v10312_v8, %v10356_v24  ;;  %v4700_v7 = vmul.f32 1.442695, %v4642_v17 }
 0xae8   : > { %v4717_v63 = vadd.f32 %v10421_v29, %v4716_v13  ;;  %v4786_v25 = vadd.f32 %v4785_v38, %v4755_v52  ;;  %v4704_v13 = vmul.f32 1.442695, %v4644_v23  ;;  %7539 = vpow2.f32 %v4708_v28  ;;  %v10475_v38 = vpop.eup %7523 }
 0xae9   : > { %7541 = vpow2.f32 %v4686_v31  ;;  %v4761_v60 = vmul.f32 %v10468_v9, %v10468_v9  ;;  %v4762_v0 = vmul.f32 %v10475_v38, %v10475_v38  ;;  %v4698_v23 = vmul.f32 1.442695, %v4641_v59 }
 0xaea   : > { %v4718_v49 = vadd.f32 %v10432_v36, %v4717_v63  ;;  %v4787_v56 = vadd.f32 %v4786_v25, %v4756_v47  ;;  %v4702_v63 = vmul.f32 1.442695, %v4643_v44  ;;  %7543 = vpow2.f32 %v4706_v3  ;;  %v7526_v25 = vpop.eup %7525 }
 0xaeb   : > { %7545 = vpow2.f32 %v4688_v4  ;;  %v4763_v28 = vmul.f32 %v7526_v25, %v7526_v25  ;;  %v4696_v24 = vmul.f32 1.442695, %v4640_v35 }
 0xaec   : > { %v4719_v21 = vadd.f32 %v10443_v39, %v4718_v49  ;;  %v4788_v45 = vadd.f32 %v4787_v56, %v4757_v57  ;;  %7547 = vpow2.f32 %v4704_v13  ;;  %v7528_v57 = vpop.eup %7527  ;;  %v4694_v56 = vmul.f32 1.442695, %v4639_v16 }
 0xaed   : > { %7549 = vpow2.f32 %v4690_v46  ;;  %v4764_v30 = vmul.f32 %v7528_v57, %v7528_v57 }
 0xaee   : > { %v4720_v22 = vadd.f32 %v10452_v18, %v4719_v21  ;;  %v4789_v2 = vadd.f32 %v4788_v45, %v4758_v19  ;;  %7551 = vpow2.f32 %v4702_v63  ;;  %v7530_v19 = vpop.eup %7529 }
 0xaef   : > { %7553 = vpow2.f32 %v4692_v41  ;;  %v10487_v44 = vpop.eup %7531  ;;  %v4765_v16 = vmul.f32 %v7530_v19, %v7530_v19 }
 0xaf0   : > { %v4721_v40 = vadd.f32 %v10461_v42, %v4720_v22  ;;  %v4790_v52 = vadd.f32 %v4789_v2, %v4759_v26  ;;  %7555 = vpow2.f32 %v4700_v7  ;;  %v10489_v31 = vpop.eup %7533  ;;  %v4766_v4 = vmul.f32 %v10487_v44, %v10487_v44 }
 0xaf1   : > { %7557 = vpow2.f32 %v4694_v56  ;;  %v4767_v59 = vmul.f32 %v10489_v31, %v10489_v31 }
 0xaf2   : > { %v4722_v53 = vadd.f32 %v10468_v9, %v4721_v40  ;;  %v4791_v47 = vadd.f32 %v4790_v52, %v4760_v51  ;;  %7559 = vpow2.f32 %v4698_v23  ;;  %v10491_v26 = vpop.eup %7535 }
 0xaf3   : > { %7561 = vpow2.f32 %v4696_v24  ;;  %6572 = vmatprep.subr.mxu0 %v10491_v26 }
 0xaf4   : > { %v4723_v11 = vadd.f32 %v10475_v38, %v4722_v53  ;;  %v4792_v49 = vadd.f32 %v4791_v47, %v4761_v60  ;;  %v10493_v2 = vpop.eup %7537  ;;  %6573 = vmatpush3.msra.mxu0 %v7530_v19 }
 0xaf5   : > { %v10499_v40 = vpop.eup %7539  ;;  %v4768_v47 = vmul.f32 %v10493_v2, %v10493_v2 }
 0xaf6   : > { %v4724_v58 = vadd.f32 %v7526_v25, %v4723_v11  ;;  %v4793_v21 = vadd.f32 %v4792_v49, %v4762_v0  ;;  %v10501_v51 = vpop.eup %7541  ;;  %6574 = vmatprep.subr.mxu0 %v10499_v40 }
 0xaf7   : > { %v10507_v63 = vpop.eup %7543  ;;  %6575 = vmatpush3.msra.mxu0 %v7528_v57  ;;  %v4769_v0 = vmul.f32 %v10501_v51, %v10501_v51 }
 0xaf8   : > { %v4725_v8 = vadd.f32 %v7528_v57, %v4724_v58  ;;  %v4794_v45 = vadd.f32 %v4793_v21, %v4763_v28  ;;  %v7546_v53 = vpop.eup %7545  ;;  %6576 = vmatprep.subr.mxu0 %v10507_v63 }
 0xaf9   : > { %v7548_v41 = vpop.eup %7547  ;;  %6577 = vmatpush3.msra.mxu0 %v7526_v25  ;;  %v4770_v58 = vmul.f32 %v7546_v53, %v7546_v53 }
 0xafa   : > { %v4726_v3 = vadd.f32 %v7530_v19, %v4725_v8  ;;  %v4795_v22 = vadd.f32 %v4794_v45, %v4764_v30  ;;  %v7550_v7 = vpop.eup %7549  ;;  %6578 = vmatprep.subr.mxu0 %v7548_v41 }
 0xafb   : > { %v7552_v57 = vpop.eup %7551  ;;  %6579 = vmatpush3.msra.mxu0 %v10475_v38  ;;  %v4771_v24 = vmul.f32 %v7550_v7, %v7550_v7 }
 0xafc   : > { %v4727_v17 = vadd.f32 %v10487_v44, %v4726_v3  ;;  %v4796_v13 = vadd.f32 %v4795_v22, %v4765_v16  ;;  %v7554_v56 = vpop.eup %7553  ;;  %6580 = vmatprep.subr.mxu0 %v7552_v57 }
 0xafd   : > { %v7556_v21 = vpop.eup %7555  ;;  %6581 = vmatpush3.msra.mxu0 %v10468_v9  ;;  %v4772_v3 = vmul.f32 %v7554_v56, %v7554_v56 }
 0xafe   : > { %v4728_v52 = vadd.f32 %v10489_v31, %v4727_v17  ;;  %v4797_v46 = vadd.f32 %v4796_v13, %v4766_v4  ;;  %v7558_v25 = vpop.eup %7557  ;;  %6582 = vmatprep.subr.mxu0 %v7556_v21 }
 0xaff   : > { %v7560_v30 = vpop.eup %7559  ;;  %6583 = vmatpush3.msra.mxu0 %v10461_v42  ;;  %v4773_v17 = vmul.f32 %v7558_v25, %v7558_v25 }
 0xb00   : > { %v4729_v60 = vadd.f32 %v10493_v2, %v4728_v52  ;;  %v4798_v35 = vadd.f32 %v4797_v46, %v4767_v59  ;;  %6584 = vmatprep.subr.mxu0 %v7560_v30  ;;  %v7562_v16 = vpop.eup %7561  ;;  %v4775_v59 = vmul.f32 %v7560_v30, %v7560_v30 }
 0xb01   : > { %6585 = vmatpush3.msra.mxu0 %v10452_v18  ;;  %v4774_v13 = vmul.f32 %v7562_v16, %v7562_v16  ;;  %v4776_v18 = vmul.f32 %v7556_v21, %v7556_v21 }
 0xb02   : > { %v4730_v11 = vadd.f32 %v10501_v51, %v4729_v60  ;;  %v4799_v49 = vadd.f32 %v4798_v35, %v4768_v47  ;;  %6586 = vmatprep.subr.mxu0 %v7562_v16 }
 0xb03   : > { %6587 = vmatpush3.msra.mxu0 %v10443_v39  ;;  %v4777_v39 = vmul.f32 %v7552_v57, %v7552_v57 }
 0xb04   : > { %v4731_v23 = vadd.f32 %v7546_v53, %v4730_v11  ;;  %v4800_v28 = vadd.f32 %v4799_v49, %v4769_v0  ;;  %6588 = vmatprep.subr.mxu0 %v7558_v25 }
 0xb05   : > { %6589 = vmatpush3.msra.mxu0 %v10432_v36  ;;  %v4778_v36 = vmul.f32 %v7548_v41, %v7548_v41 }
 0xb06   : > { %v4732_v19 = vadd.f32 %v7550_v7, %v4731_v23  ;;  %v4801_v8 = vadd.f32 %v4800_v28, %v4770_v58  ;;  %6590 = vmatprep.subr.mxu0 %v7554_v56  ;;  %v11399_v23 = vld [vmem:[#allocation41_spill] sm:$0xff]  ;;  %v11400_v58 = vld [vmem:[#allocation44_spill] sm:$0xff] }
 0xb07   : > { %6591 = vmatpush3.msra.mxu0 %v10421_v29  ;;  %v11401_v28 = vld [vmem:[#allocation45_spill] sm:$0xff] }
 0xb08   : > { %v4733_v45 = vadd.f32 %v7554_v56, %v4732_v19  ;;  %v4802_v38 = vadd.f32 %v4801_v8, %v4771_v24  ;;  %6592 = vmatprep.subr.mxu0 %v7550_v7  ;;  %v11396_v56 = vld [vmem:[#allocation28_spill] sm:$0xff]  ;;  %v11405_v24 = vld [vmem:[#allocation49_spill] sm:$0xff]  ;;  %v11406_v8 = vld [vmem:[#allocation50_spill] sm:$0xff] }
 0xb09   : > { %6593 = vmatpush3.msra.mxu0 %v10412_v34  ;;  %v4779_v34 = vmul.f32 %v10507_v63, %v10507_v63  ;;  %v11404_v19 = vld [vmem:[#allocation48_spill] sm:$0xff] }
 0xb0a   : > { %v4734_v22 = vadd.f32 %v7558_v25, %v4733_v45  ;;  %v4803_v4 = vadd.f32 %v4802_v38, %v4772_v3  ;;  %6594 = vmatprep.subr.mxu0 %v7546_v53  ;;  %v11403_v25 = vld [vmem:[#allocation47_spill] sm:$0xff]  ;;  %v11408_v3 = vld [vmem:[#allocation52_spill] sm:$0xff]  ;;  %v11409_v38 = vld [vmem:[#allocation53_spill] sm:$0xff] }
 0xb0b   : > { %6595 = vmatpush3.msra.mxu0 %v10405_v12  ;;  %v4780_v12 = vmul.f32 %v10499_v40, %v10499_v40  ;;  %v11407_v45 = vld [vmem:[#allocation51_spill] sm:$0xff] }
 0xb0c   : > { %v4735_v9 = vadd.f32 %v7562_v16, %v4734_v22  ;;  %v4804_v52 = vadd.f32 %v4803_v4, %v4773_v17  ;;  %6596 = vmatprep.subr.mxu0 %v10501_v51  ;;  %v11410_v16 = vld [vmem:[#allocation54_spill] sm:$0xff]  ;;  %v11411_v22 = vld [vmem:[#allocation12_spill] sm:$0xff]  ;;  %v11412_v17 = vld [vmem:[#allocation13_spill] sm:$0xff] }
 0xb0d   : > { %6597 = vmatpush3.msra.mxu0 %v10398_v27  ;;  %v11413_v4 = vld [vmem:[#allocation15_spill] sm:$0xff] }
 0xb0e   : > { %v4736_v42 = vadd.f32 %v7560_v30, %v4735_v9  ;;  %v4805_v46 = vadd.f32 %v4804_v52, %v4774_v13  ;;  %6598 = vmatprep.subr.mxu0 %v10493_v2  ;;  %v4906_v2 = vmul.f32 0.35355338, %v11356_v1  ;;  %v234_v30 = vld [vmem:[%s10970_s4] sm:$0xff] }
 0xb0f   : > { %6599 = vmatpush3.msra.mxu0 %v10392_v55 }
 0xb10   : > { %v4737_v60 = vadd.f32 %v7556_v21, %v4736_v42  ;;  %v4806_v47 = vadd.f32 %v4805_v46, %v4775_v59  ;;  %6600 = vmatprep.subr.mxu0 %v10489_v31  ;;  %v11402_v21 = vld [vmem:[#allocation46_spill] sm:$0xff] }
 0xb11   : > { %6601 = vmatpush3.msra.mxu0 %v10386_v50 }
 0xb12   : > { %v4738_v35 = vadd.f32 %v7552_v57, %v4737_v60  ;;  %v4807_v11 = vadd.f32 %v4806_v47, %v4776_v18  ;;  %6602 = vmatprep.subr.mxu0 %v10487_v44 }
 0xb13   : > { %6603 = vmatpush3.msra.mxu0 %v10384_v20 }
 0xb14   : > { %v4739_v0 = vadd.f32 %v7548_v41, %v4738_v35  ;;  %v4808_v49 = vadd.f32 %v4807_v11, %v4777_v39  ;;  %4898 = vmatmul.mubr.f32.vlgmr.msra.gmra.mxu0 %v11365_v48  ;;  %7025 = vmatprep.subr.mxu0 %v4906_v2  ;;  %v11414_v11 = vld [vmem:[#allocation33_spill] sm:$0xff] }
 0xb15   : > { %7026 = vmatpush3.msra.mxu0 %v4906_v2  ;;  %7027 = vmatprep.mubr.msk.f32.mxu0 %vm446_vm1, %v11366_v37 }
 0xb16   : > { %v4740_v29 = vadd.f32 %v10507_v63, %v4739_v0  ;;  %v4809_v7 = vadd.f32 %v4808_v49, %v4778_v36  ;;  %v4781_v63 = vmul.f32 %v10491_v26, %v10491_v26  ;;  %v10615_v0 = vmul.f32 0.00390625, %v11414_v11 }
 0xb18   : > { %v4741_v53 = vadd.f32 %v10499_v40, %v4740_v29  ;;  %v4810_v51 = vadd.f32 %v4809_v7, %v4779_v34  ;;  %7028 = vmatmul.mubr.msk.f32.vlgmr.msra.gmra.mxu0 %vm446_vm1, %v11368_v14 }
 0xb19   : > { %7030 = vmatprep.mubr.msk.f32.mxu0 %vm446_vm1, %v11369_v43 }
 0xb1a   : > { %v4742_v27 = vadd.f32 %v10491_v26, %v4741_v53  ;;  %v4811_v55 = vadd.f32 %v4810_v51, %v4780_v12 }
 0xb1c   : > { %v4743_v41 = vrot.slane %v4742_v27, 4  ;;  %v4812_v31 = vadd.f32 %v4811_v55, %v4781_v63  ;;  %7031 = vmatmul.mubr.msk.f32.gmra.mxu0 %vm446_vm1, %v11370_v10 }
 0xb1d   : > { %7033 = vmatprep.mubr.msk.f32.mxu0 %vm446_vm1, %v11372_v61 }
 0xb1e   : > { %v4744_v50 = vadd.f32 %v4743_v41, %v4742_v27  ;;  %v4813_v44 = vrot.slane %v4812_v31, 4 }
 0xb20   : > { %v4745_v1 = vrot.slane %v4744_v50, 2  ;;  %v4814_v40 = vadd.f32 %v4813_v44, %v4812_v31  ;;  %7034 = vmatmul.mubr.msk.f32.gmra.mxu0 %vm446_vm1, %v11373_v62  ;;  %v11394_v62 = vld [vmem:[#allocation26_spill] sm:$0xff] }
 0xb21   : > { %7036 = vmatprep.mubr.msk.f32.mxu0 %vm446_vm1, %v11374_v33 }
 0xb22   : > { %v4746_v26 = vadd.f32 %v4745_v1, %v4744_v50  ;;  %v4815_v37 = vrot.slane %v4814_v40, 2 }
 0xb24   : > { %v4747_v20 = vrot.slane %v4746_v26, 1  ;;  %7037 = vmatmul.mubr.msk.f32.gmra.mxu0 %vm446_vm1, %v11376_v6  ;;  %v4816_v14 = vadd.f32 %v4815_v37, %v4814_v40  ;;  %v11395_v6 = vld [vmem:[#allocation27_spill] sm:$0xff] }
 0xb25   : > { %7039 = vmatprep.mubr.msk.f32.mxu0 %vm446_vm1, %v11377_v54 }
 0xb26   : > { %v4748_v57 = vadd.f32 %v4747_v20, %v4746_v26  ;;  %v4817_v43 = vrot.slane %v4816_v14, 1 }
 0xb28   : > { %7563 = vrcp.f32 %v4748_v57  ;;  %7040 = vmatmul.mubr.msk.f32.gmra.mxu0 %vm446_vm1, %v11378_v15  ;;  %v4818_v10 = vadd.f32 %v4817_v43, %v4816_v14 }
 0xb29   : > { %7042 = vmatprep.mubr.msk.f32.mxu0 %vm446_vm1, %v11380_v5  ;;  %v11397_v5 = vld [vmem:[#allocation29_spill] sm:$0xff] }
 0xb2c   : > { %7043 = vmatmul.mubr.msk.f32.gmra.mxu0 %vm446_vm1, %v11381_v32  ;;  %v11398_v32 = vld [vmem:[#allocation40_spill] sm:$0xff] }
 0xb2d   : > { %7045 = vmatprep.mubr.msk.f32.mxu0 %vm446_vm1, %v11394_v62 }
 0xb30   : > { %7046 = vmatmul.mubr.msk.f32.gmra.mxu0 %vm446_vm1, %v11395_v6 }
 0xb31   : > { %7048 = vmatprep.mubr.msk.f32.mxu0 %vm446_vm1, %v11396_v56 }
 0xb34   : > { %7049 = vmatmul.mubr.msk.f32.gmra.mxu0 %vm446_vm1, %v11397_v5 }
 0xb35   : > { %v7564_v61 = vpop.eup %7563  ;;  %7051 = vmatprep.mubr.msk.f32.mxu0 %vm446_vm1, %v11398_v32 }
 0xb36   : > { %v4819_v33 = vmul.f32 %v7564_v61, %v4818_v10 }
 0xb38   : > { %v4820_v54 = vmul.f32 %v7564_v61, %v4819_v33  ;;  %7052 = vmatmul.mubr.msk.f32.gmra.mxu0 %vm446_vm1, %v11399_v23 }
 0xb39   : > { %7054 = vmatprep.mubr.msk.f32.mxu0 %vm446_vm1, %v11400_v58 }
 0xb3a   : > { %v4821_v15 = vsel %vm1010_vm2, %v4820_v54, 0.0 }
 0xb3b   : > { %4822 = vadd.xlane.f32.xlu0 %v4821_v15 }
 0xb3c   : > { %7055 = vmatmul.mubr.msk.f32.gmra.mxu0 %vm446_vm1, %v11401_v28 }
 0xb3d   : > { %7057 = vmatprep.mubr.msk.f32.mxu0 %vm446_vm1, %v11402_v21 }
 0xb40   : > { %7058 = vmatmul.mubr.msk.f32.gmra.mxu0 %vm446_vm1, %v11403_v25 }
 0xb41   : > { %7060 = vmatprep.mubr.msk.f32.mxu0 %vm446_vm1, %v11404_v19 }
 0xb44   : > { %7061 = vmatmul.mubr.msk.f32.gmra.mxu0 %vm446_vm1, %v11405_v24 }
 0xb45   : > { %7063 = vmatprep.mubr.msk.f32.mxu0 %vm446_vm1, %v11406_v8 }
 0xb48   : > { %7064 = vmatmul.mubr.msk.f32.gmra.mxu0 %vm446_vm1, %v11407_v45 }
 0xb49   : > { %7066 = vmatprep.mubr.msk.f32.mxu0 %vm446_vm1, %v11408_v3 }
 0xb4c   : > { %7067 = vmatmul.mubr.msk.f32.gmra.mxu0 %vm446_vm1, %v11409_v38 }
 0xb4d   : > { %7069 = vmatprep.mubr.msk.f32.mxu0 %vm446_vm1, %v11410_v16 }
 0xb50   : > { %7070 = vmatmul.mubr.msk.f32.gmra.mxu0 %vm446_vm1, %v11411_v22 }
 0xb51   : > { %5762 = vperm.xlu0 %7101, %v234_v30   ;;  %7072 = vmatprep.mubr.msk.f32.mxu0 %vm446_vm1, %v11412_v17 }
 0xb54   : > { %7073 = vmatmul.mubr.msk.f32.gmra.mxu0 %vm446_vm1, %v11413_v4 }
 0xbc4   : > { %v4823_v9 = vpop.xlane.xlu0 %4822 }
 0xbc5   : > { %v4824_v13 = vrot.slane %v4823_v9, 4 }
 0xbc7   : > { %v4825_v52 = vadd.f32 %v4824_v13, %v4823_v9 }
 0xbc9   : > { %v4826_v42 = vrot.slane %v4825_v52, 2 }
 0xbcb   : > { %v4827_v59 = vadd.f32 %v4826_v42, %v4825_v52 }
 0xbcd   : > { %v4828_v46 = vrot.slane %v4827_v59, 1 }
 0xbcf   : > { %v4829_v60 = vadd.f32 %v4828_v46, %v4827_v59 }
 0xbd1   : > { %7087 = vpush %v4829_v60 }
 0xbd4   : > { %v6604_v18 = vpop.f32.mrf.mxu0 }
 0xbd6   : > { %v6605_v47 = vpop.f32.mrf.mxu0 }
 0xbd7   : > { %v6606_v35 = vadd.f32 %v6605_v47, %v6604_v18 }
 0xbd8   : > { %v10612_v39 = vpop.f32.mrf.mxu0 }
 0xbd9   : > { %v10617_v36 = vmul.f32 %v7564_v61, %v6606_v35 }
 0xbda   : > { %v10619_v49 = vpop.f32.mrf.mxu0 }
 0xbdb   : > { %v4904_v29 = vsub.f32 %v10617_v36, %v10615_v0 }
 0xbdc   : > { %v10623_v34 = vpop.f32.mrf.mxu0 }
 0xbde   : > { %v10625_v7 = vpop.f32.mrf.mxu0 }
 0xbe0   : > { %v10627_v53 = vpop.f32.mrf.mxu0 }
 0xbe1   : > { %v5133_v6 = vmax.f32 %v10612_v39, %v10627_v53 }
 0xbe2   : > { %v10629_v12 = vpop.f32.mrf.mxu0 }
 0xbe3   : > { %v5132_v62 = vmax.f32 %v10619_v49, %v10629_v12 }
 0xbe4   : > { %v10631_v51 = vpop.f32.mrf.mxu0 }
 0xbe5   : > { %v5135_v54 = vmax.f32 %v10623_v34, %v10631_v51 }
 0xbe6   : > { %v10633_v27 = vpop.f32.mrf.mxu0 }
 0xbe7   : > { %v5134_v56 = vmax.f32 %v10625_v7, %v10633_v27 }
 0xbe8   : > { %v10635_v2 = vpop.f32.mrf.mxu0 }
 0xbe9   : > { %v5137_v32 = vmax.f32 %v5133_v6, %v10635_v2 }
 0xbea   : > { %v10637_v63 = vpop.f32.mrf.mxu0 }
 0xbeb   : > { %v5136_v15 = vmax.f32 %v5132_v62, %v10637_v63 }
 0xbec   : > { %v10639_v55 = vpop.f32.mrf.mxu0 }
 0xbed   : > { %v5139_v23 = vmax.f32 %v5135_v54, %v10639_v55 }
 0xbee   : > { %v10641_v41 = vpop.f32.mrf.mxu0 }
 0xbef   : > { %v5138_v58 = vmax.f32 %v5134_v56, %v10641_v41 }
 0xbf0   : > { %v10643_v31 = vpop.f32.mrf.mxu0 }
 0xbf1   : > { %v5141_v25 = vmax.f32 %v5137_v32, %v10643_v31 }
 0xbf2   : > { %v10645_v50 = vpop.f32.mrf.mxu0 }
 0xbf3   : > { %v5140_v28 = vmax.f32 %v5136_v15, %v10645_v50 }
 0xbf4   : > { %v10647_v1 = vpop.f32.mrf.mxu0 }
 0xbf5   : > { %v5143_v19 = vmax.f32 %v5139_v23, %v10647_v1 }
 0xbf6   : > { %v10649_v44 = vpop.f32.mrf.mxu0 }
 0xbf7   : > { %v5142_v24 = vmax.f32 %v5138_v58, %v10649_v44 }
 0xbf8   : > { %v10651_v26 = vpop.f32.mrf.mxu0 }
 0xbf9   : > { %v5145_v45 = vmax.f32 %v5141_v25, %v10651_v26 }
 0xbfa   : > { %v10653_v20 = vpop.f32.mrf.mxu0 }
 0xbfb   : > { %v5144_v8 = vmax.f32 %v5140_v28, %v10653_v20 }
 0xbfc   : > { %v10655_v40 = vpop.f32.mrf.mxu0 }
 0xbfd   : > { %v5147_v3 = vmax.f32 %v5143_v19, %v10655_v40 }
 0xbfe   : > { %v10657_v57 = vpop.f32.mrf.mxu0 }
 0xbff   : > { %v5146_v38 = vmax.f32 %v5142_v24, %v10657_v57 }
 0xc00   : > { %v10659_v37 = vpop.f32.mrf.mxu0 }
 0xc01   : > { %v5149_v17 = vmax.f32 %v5145_v45, %v10659_v37 }
 0xc02   : > { %v10661_v14 = vpop.f32.mrf.mxu0  ;;  %s7088_s19 = spop %7087 }
 0xc03   : > { %v5148_v16 = vmax.f32 %v5144_v8, %v10661_v14 }
 0xc04   : > { %v10663_v43 = vpop.f32.mrf.mxu0 }
 0xc05   : > { %v5151_v4 = vmax.f32 %v5147_v3, %v10663_v43 }
 0xc06   : > { %v10665_v10 = vpop.f32.mrf.mxu0 }
 0xc07   : > { %v5150_v9 = vmax.f32 %v5146_v38, %v10665_v10 }
 0xc08   : > { %v10667_v61 = vpop.f32.mrf.mxu0 }
 0xc09   : > { %v5153_v42 = vmax.f32 %v5149_v17, %v10667_v61 }
 0xc0a   : > { %v10671_v33 = vpop.f32.mrf.mxu0 }
 0xc0b   : > { %v5152_v13 = vmax.f32 %v5148_v16, %v10671_v33 }
 0xc0c   : > { %v10680_v5 = vpop.f32.mrf.mxu0 }
 0xc0d   : > { %v5155_v59 = vmax.f32 %v5151_v4, %v10680_v5 }
 0xc0e   : > { %v10686_v21 = vpop.f32.mrf.mxu0 }
 0xc0f   : > { %v5154_v46 = vmax.f32 %v5150_v9, %v10686_v21 }
 0xc10   : > { %v10692_v30 = vpop.f32.mrf.mxu0 }
 0xc11   : > { %v5157_v47 = vmax.f32 %v5153_v42, %v10692_v30 }
 0xc12   : > { %v10698_v22 = vpop.f32.mrf.mxu0 }
 0xc13   : > { %v5156_v60 = vmax.f32 %v5152_v13, %v10698_v22 }
 0xc14   : > { %v10704_v52 = vpop.f32.mrf.mxu0 }
 0xc15   : > { %v5159_v35 = vmax.f32 %v5155_v59, %v10704_v52  ;;  %v5160_v62 = vmax.f32 %v5156_v60, %v5157_v47 }
 0xc16   : > { %v10710_v18 = vpop.f32.mrf.mxu0 }
 0xc17   : > { %v5158_v11 = vmax.f32 %v5154_v46, %v10710_v18 }
 0xc19   : > { %v5161_v6 = vmax.f32 %v5158_v11, %v5159_v35 }
 0xc1b   : > { %v5162_v54 = vmax.f32 %v5160_v62, %v5161_v6 }
 0xc1d   : > { %v5163_v56 = vrot.slane %v5162_v54, 4 }
 0xc1f   : > { %v5164_v15 = vmax.f32 %v5162_v54, %v5163_v56 }
 0xc21   : > { %v5165_v32 = vrot.slane %v5164_v15, 2 }
 0xc23   : > { %v5166_v23 = vmax.f32 %v5164_v15, %v5165_v32 }
 0xc25   : > { %v5167_v58 = vrot.slane %v5166_v23, 1 }
 0xc27   : > { %v10715_v28 = vmax.f32 %v5166_v23, %v5167_v58 }
 0xc29   : > { %v5169_v25 = vsub.f32 %v10619_v49, %v10715_v28  ;;  %v5170_v19 = vsub.f32 %v10612_v39, %v10715_v28  ;;  %v5171_v24 = vsub.f32 %v10625_v7, %v10715_v28  ;;  %v5172_v8 = vsub.f32 %v10623_v34, %v10715_v28 }
 0xc2a   : > { %v5173_v45 = vsub.f32 %v10629_v12, %v10715_v28  ;;  %v5174_v17 = vsub.f32 %v10627_v53, %v10715_v28  ;;  %v5175_v39 = vsub.f32 %v10633_v27, %v10715_v28  ;;  %v5176_v34 = vsub.f32 %v10631_v51, %v10715_v28 }
 0xc2b   : > { %v5201_v3 = vmul.f32 1.442695, %v5169_v25  ;;  %v5203_v38 = vmul.f32 1.442695, %v5170_v19  ;;  %v5205_v16 = vmul.f32 1.442695, %v5171_v24  ;;  %v5177_v12 = vsub.f32 %v10637_v63, %v10715_v28 }
 0xc2c   : > { %v5207_v4 = vmul.f32 1.442695, %v5172_v8  ;;  %v5209_v49 = vmul.f32 1.442695, %v5173_v45  ;;  %v5211_v7 = vmul.f32 1.442695, %v5174_v17  ;;  %v5178_v53 = vsub.f32 %v10635_v2, %v10715_v28 }
 0xc2d   : > { %7565 = vpow2.f32 %v5201_v3  ;;  %v5213_v9 = vmul.f32 1.442695, %v5175_v39  ;;  %v5215_v13 = vmul.f32 1.442695, %v5176_v34  ;;  %v5179_v27 = vsub.f32 %v10641_v41, %v10715_v28 }
 0xc2e   : > { %7567 = vpow2.f32 %v5203_v38  ;;  %v5217_v42 = vmul.f32 1.442695, %v5177_v12  ;;  %v5180_v51 = vsub.f32 %v10639_v55, %v10715_v28  ;;  %v5219_v59 = vmul.f32 1.442695, %v5178_v53 }
 0xc2f   : > { %7569 = vpow2.f32 %v5205_v16  ;;  %v5181_v63 = vsub.f32 %v10645_v50, %v10715_v28  ;;  %v5221_v60 = vmul.f32 1.442695, %v5179_v27  ;;  %v5182_v47 = vsub.f32 %v10643_v31, %v10715_v28 }
 0xc30   : > { %7571 = vpow2.f32 %v5207_v4  ;;  %v5223_v55 = vmul.f32 1.442695, %v5180_v51  ;;  %v5183_v6 = vsub.f32 %v10649_v44, %v10715_v28  ;;  %v5184_v23 = vsub.f32 %v10647_v1, %v10715_v28 }
 0xc31   : > { %7573 = vpow2.f32 %v5209_v49  ;;  %v5225_v54 = vmul.f32 1.442695, %v5181_v63  ;;  %v5227_v58 = vmul.f32 1.442695, %v5182_v47  ;;  %v5185_v8 = vsub.f32 %v10653_v20, %v10715_v28 }
 0xc32   : > { %7575 = vpow2.f32 %v5211_v7  ;;  %v5186_v45 = vsub.f32 %v10651_v26, %v10715_v28  ;;  %v5229_v3 = vmul.f32 1.442695, %v5183_v6  ;;  %v5187_v4 = vsub.f32 %v10657_v57, %v10715_v28 }
 0xc33   : > { %7577 = vpow2.f32 %v5213_v9  ;;  %v5188_v39 = vsub.f32 %v10655_v40, %v10715_v28  ;;  %v5200_v20 = vsub.f32 %v10704_v52, %v10715_v28  ;;  %v5231_v26 = vmul.f32 1.442695, %v5184_v23 }
 0xc34   : > { %7579 = vpow2.f32 %v5215_v13  ;;  %v5189_v9 = vsub.f32 %v10661_v14, %v10715_v28  ;;  %v5190_v57 = vsub.f32 %v10659_v37, %v10715_v28  ;;  %v5199_v40 = vsub.f32 %v10710_v18, %v10715_v28 }
 0xc35   : > { %7581 = vpow2.f32 %v5217_v42  ;;  %v5233_v52 = vmul.f32 1.442695, %v5185_v8  ;;  %v5191_v51 = vsub.f32 %v10665_v10, %v10715_v28  ;;  %v5198_v14 = vsub.f32 %v10692_v30, %v10715_v28 }
 0xc36   : > { %7583 = vpow2.f32 %v5219_v59  ;;  %v5235_v37 = vmul.f32 1.442695, %v5186_v45  ;;  %v5263_v59 = vmul.f32 1.442695, %v5200_v20  ;;  %v5197_v10 = vsub.f32 %v10698_v22, %v10715_v28 }
 0xc37   : > { %7585 = vpow2.f32 %v5221_v60 }
 0xc38   : > { %7587 = vpow2.f32 %v5223_v55  ;;  %v5237_v55 = vmul.f32 1.442695, %v5187_v4 }
 0xc39   : > { %7589 = vpow2.f32 %v5225_v54 }
 0xc3a   : > { %v10743_v46 = vpop.eup %7565  ;;  %7591 = vpow2.f32 %v5227_v58 }
 0xc3b   : > { %v10745_v2 = vpop.eup %7567  ;;  %v5303_v41 = vmul.f32 %v10743_v46, %v10743_v46  ;;  %7593 = vpow2.f32 %v5229_v3 }
 0xc3c   : > { %v10751_v35 = vpop.eup %7569  ;;  %v5265_v11 = vadd.f32 %v10745_v2, %v10743_v46  ;;  %v5304_v50 = vmul.f32 %v10745_v2, %v10745_v2  ;;  %7595 = vpow2.f32 %v5231_v26  ;;  %v5193_v26 = vsub.f32 %v10671_v33, %v10715_v28 }
 0xc3d   : > { %v10757_v62 = vpop.eup %7571  ;;  %v5305_v56 = vmul.f32 %v10751_v35, %v10751_v35  ;;  %7597 = vpow2.f32 %v5233_v52 }
 0xc3e   : > { %v5266_v31 = vadd.f32 %v10751_v35, %v5265_v11  ;;  %v5335_v15 = vadd.f32 %v5304_v50, %v5303_v41  ;;  %v10764_v32 = vpop.eup %7573  ;;  %v5306_v44 = vmul.f32 %v10757_v62, %v10757_v62  ;;  %v5192_v41 = vsub.f32 %v10663_v43, %v10715_v28 }
 0xc3f   : > { %v10771_v24 = vpop.eup %7575  ;;  %v5307_v38 = vmul.f32 %v10764_v32, %v10764_v32  ;;  %v5261_v11 = vmul.f32 1.442695, %v5199_v40  ;;  %7599 = vpow2.f32 %v5235_v37  ;;  %v5259_v43 = vmul.f32 1.442695, %v5198_v14 }
 0xc40   : > { %v5267_v25 = vadd.f32 %v10757_v62, %v5266_v31  ;;  %v5336_v19 = vadd.f32 %v5335_v15, %v5305_v56  ;;  %v10780_v17 = vpop.eup %7577  ;;  %v5308_v34 = vmul.f32 %v10771_v24, %v10771_v24  ;;  %v5196_v31 = vsub.f32 %v10680_v5, %v10715_v28 }
 0xc41   : > { %v10791_v12 = vpop.eup %7579  ;;  %v5309_v13 = vmul.f32 %v10780_v17, %v10780_v17  ;;  %v5239_v56 = vmul.f32 1.442695, %v5188_v39  ;;  %7601 = vpow2.f32 %v5263_v59  ;;  %v5247_v40 = vmul.f32 1.442695, %v5192_v41 }
 0xc42   : > { %v5268_v1 = vadd.f32 %v10764_v32, %v5267_v25  ;;  %v5337_v16 = vadd.f32 %v5336_v19, %v5306_v44  ;;  %v10802_v42 = vpop.eup %7581  ;;  %v5310_v63 = vmul.f32 %v10791_v12, %v10791_v12  ;;  %v5195_v25 = vsub.f32 %v10686_v21, %v10715_v28 }
 0xc43   : > { %v10811_v47 = vpop.eup %7583  ;;  %v5311_v50 = vmul.f32 %v10802_v42, %v10802_v42  ;;  %7603 = vpow2.f32 %v5237_v55  ;;  %v5241_v44 = vmul.f32 1.442695, %v5189_v9  ;;  %v5257_v19 = vmul.f32 1.442695, %v5197_v10 }
 0xc44   : > { %v5269_v49 = vadd.f32 %v10771_v24, %v5268_v1  ;;  %v5338_v7 = vadd.f32 %v5337_v16, %v5307_v38  ;;  %v10820_v54 = vpop.eup %7585  ;;  %v5312_v15 = vmul.f32 %v10811_v47, %v10811_v47  ;;  %7605 = vpow2.f32 %v5261_v11 }
 0xc45   : > { %v10827_v58 = vpop.eup %7587  ;;  %v5313_v8 = vmul.f32 %v10820_v54, %v10820_v54  ;;  %v5194_v1 = vsub.f32 %v10667_v61, %v10715_v28  ;;  %7607 = vpow2.f32 %v5239_v56  ;;  %v5243_v38 = vmul.f32 1.442695, %v5190_v57 }
 0xc46   : > { %v5270_v53 = vadd.f32 %v10780_v17, %v5269_v49  ;;  %v5339_v27 = vadd.f32 %v5338_v7, %v5308_v34  ;;  %v10834_v3 = vpop.eup %7589  ;;  %v5255_v16 = vmul.f32 1.442695, %v5196_v31  ;;  %7609 = vpow2.f32 %v5259_v43 }
 0xc47   : > { %v5314_v4 = vmul.f32 %v10827_v58, %v10827_v58  ;;  %v7592_v20 = vpop.eup %7591  ;;  %7611 = vpow2.f32 %v5241_v44  ;;  %v5245_v49 = vmul.f32 1.442695, %v5191_v51  ;;  %v5253_v34 = vmul.f32 1.442695, %v5195_v25 }
 0xc48   : > { %v5271_v18 = vadd.f32 %v10791_v12, %v5270_v53  ;;  %v5340_v60 = vadd.f32 %v5339_v27, %v5309_v13  ;;  %7613 = vpow2.f32 %v5257_v19  ;;  %v5315_v7 = vmul.f32 %v10834_v3, %v10834_v3  ;;  %v7594_v57 = vpop.eup %7593 }
 0xc49   : > { %7615 = vpow2.f32 %v5243_v38  ;;  %v5251_v52 = vmul.f32 1.442695, %v5194_v1  ;;  %v5316_v13 = vmul.f32 %v7592_v20, %v7592_v20  ;;  %v7596_v14 = vpop.eup %7595  ;;  %v5249_v33 = vmul.f32 1.442695, %v5193_v26 }
 0xc4a   : > { %v5272_v30 = vadd.f32 %v10802_v42, %v5271_v18  ;;  %v5341_v6 = vadd.f32 %v5340_v60, %v5310_v63  ;;  %7617 = vpow2.f32 %v5255_v16  ;;  %v5317_v51 = vmul.f32 %v7594_v57, %v7594_v57  ;;  %v10846_v59 = vpop.eup %7597 }
 0xc4b   : > { %7619 = vpow2.f32 %v5245_v49  ;;  %v5318_v60 = vmul.f32 %v7596_v14, %v7596_v14 }
 0xc4c   : > { %v5273_v22 = vadd.f32 %v10811_v47, %v5272_v30  ;;  %v5342_v23 = vadd.f32 %v5341_v6, %v5311_v50  ;;  %7621 = vpow2.f32 %v5253_v34  ;;  %v10848_v18 = vpop.eup %7599  ;;  %v5319_v30 = vmul.f32 %v10846_v59, %v10846_v59 }
 0xc4d   : > { %7623 = vpow2.f32 %v5247_v40  ;;  %v5320_v43 = vmul.f32 %v10848_v18, %v10848_v18 }
 0xc4e   : > { %v5274_v5 = vadd.f32 %v10820_v54, %v5273_v22  ;;  %v5343_v45 = vadd.f32 %v5342_v23, %v5312_v15  ;;  %7625 = vpow2.f32 %v5251_v52  ;;  %v10850_v10 = vpop.eup %7601 }
 0xc4f   : > { %7627 = vpow2.f32 %v5249_v33  ;;  %6640 = vmatprep.subr.mxu1 %v10850_v10 }
 0xc50   : > { %v5275_v21 = vadd.f32 %v10827_v58, %v5274_v5  ;;  %v5344_v39 = vadd.f32 %v5343_v45, %v5313_v8  ;;  %v10852_v55 = vpop.eup %7603  ;;  %6641 = vmatpush3.msra.mxu1 %v7596_v14 }
 0xc51   : > { %v10858_v6 = vpop.eup %7605  ;;  %v5321_v44 = vmul.f32 %v10852_v55, %v10852_v55 }
 0xc52   : > { %v5276_v61 = vadd.f32 %v10834_v3, %v5275_v21  ;;  %v5345_v9 = vadd.f32 %v5344_v39, %v5314_v4  ;;  %v10860_v31 = vpop.eup %7607  ;;  %6642 = vmatprep.subr.mxu1 %v10858_v6 }
 0xc53   : > { %v10866_v15 = vpop.eup %7609  ;;  %6643 = vmatpush3.msra.mxu1 %v7594_v57  ;;  %v5322_v1 = vmul.f32 %v10860_v31, %v10860_v31 }
 0xc54   : > { %v5277_v53 = vadd.f32 %v7592_v20, %v5276_v61  ;;  %v5346_v27 = vadd.f32 %v5345_v9, %v5315_v7  ;;  %v7612_v23 = vpop.eup %7611  ;;  %6644 = vmatprep.subr.mxu1 %v10866_v15 }
 0xc55   : > { %v7614_v5 = vpop.eup %7613  ;;  %6645 = vmatpush3.msra.mxu1 %v7592_v20  ;;  %v5323_v39 = vmul.f32 %v7612_v23, %v7612_v23 }
 0xc56   : > { %v5278_v28 = vadd.f32 %v7594_v57, %v5277_v53  ;;  %v5347_v37 = vadd.f32 %v5346_v27, %v5316_v13  ;;  %v7616_v8 = vpop.eup %7615  ;;  %6646 = vmatprep.subr.mxu1 %v7614_v5 }
 0xc57   : > { %v7618_v16 = vpop.eup %7617  ;;  %6647 = vmatpush3.msra.mxu1 %v10834_v3  ;;  %v5324_v61 = vmul.f32 %v7616_v8, %v7616_v8 }
 0xc58   : > { %v5279_v63 = vadd.f32 %v7596_v14, %v5278_v28  ;;  %v5348_v41 = vadd.f32 %v5347_v37, %v5317_v51  ;;  %v7620_v21 = vpop.eup %7619  ;;  %6648 = vmatprep.subr.mxu1 %v7618_v16 }
 0xc59   : > { %v7622_v49 = vpop.eup %7621  ;;  %6649 = vmatpush3.msra.mxu1 %v10827_v58  ;;  %v5325_v40 = vmul.f32 %v7620_v21, %v7620_v21 }
 0xc5a   : > { %v5280_v11 = vadd.f32 %v10846_v59, %v5279_v63  ;;  %v5349_v50 = vadd.f32 %v5348_v41, %v5318_v60  ;;  %v7624_v20 = vpop.eup %7623  ;;  %6650 = vmatprep.subr.mxu1 %v7622_v49 }
 0xc5b   : > { %v7626_v9 = vpop.eup %7625  ;;  %6651 = vmatpush3.msra.mxu1 %v10820_v54  ;;  %v5326_v13 = vmul.f32 %v7624_v20, %v7624_v20 }
 0xc5c   : > { %v5281_v56 = vadd.f32 %v10848_v18, %v5280_v11  ;;  %v5350_v22 = vadd.f32 %v5349_v50, %v5319_v30  ;;  %6652 = vmatprep.subr.mxu1 %v7626_v9  ;;  %v7628_v52 = vpop.eup %7627  ;;  %v5328_v28 = vmul.f32 %v7626_v9, %v7626_v9 }
 0xc5d   : > { %6653 = vmatpush3.msra.mxu1 %v10811_v47  ;;  %v5327_v14 = vmul.f32 %v7628_v52, %v7628_v52  ;;  %v5329_v47 = vmul.f32 %v7622_v49, %v7622_v49 }
 0xc5e   : > { %v5282_v25 = vadd.f32 %v10852_v55, %v5281_v56  ;;  %v5351_v19 = vadd.f32 %v5350_v22, %v5320_v43  ;;  %6654 = vmatprep.subr.mxu1 %v7628_v52  ;;  %v370_v56 = vpop.xlane.xlu1 %369  ;;  %v11415_v43 = vld [vmem:[#allocation37_spill] sm:$0xff] }
 0xc5f   : > { %6655 = vmatpush3.msra.mxu1 %v10802_v42  ;;  %v5330_v42 = vmul.f32 %v7618_v16, %v7618_v16 }
 0xc60   : > { %v5283_v45 = vadd.f32 %v10860_v31, %v5282_v25  ;;  %v5352_v38 = vadd.f32 %v5351_v19, %v5321_v44  ;;  %6656 = vmatprep.subr.mxu1 %v7624_v20  ;;  %v11417_v44 = vld [vmem:[#allocation35_spill] sm:$0xff]  ;;  %v11418_v19 = vld [vmem:[#allocation25_spill] sm:$0xff] }
 0xc61   : > { %6657 = vmatpush3.msra.mxu1 %v10791_v12  ;;  %v5331_v12 = vmul.f32 %v7614_v5, %v7614_v5 }
 0xc62   : > { %v5284_v4 = vadd.f32 %v7612_v23, %v5283_v45  ;;  %v5353_v26 = vadd.f32 %v5352_v38, %v5322_v1  ;;  %6658 = vmatprep.subr.mxu1 %v7620_v21  ;;  %v11422_v38 = vld [vmem:[#allocation30_spill] sm:$0xff] }
 0xc63   : > { %6659 = vmatpush3.msra.mxu1 %v10780_v17 }
 0xc64   : > { %v5285_v34 = vadd.f32 %v7616_v8, %v5284_v4  ;;  %v5354_v7 = vadd.f32 %v5353_v26, %v5323_v39  ;;  %6660 = vmatprep.subr.mxu1 %v7616_v8  ;;  %v11420_v8 = vld [vmem:[#allocation31_spill] sm:$0xff]  ;;  %v11425_v39 = vld [vmem:[#allocation17_spill] sm:$0xff]  ;;  %v11426_v26 = vld [vmem:[#allocation38_spill] sm:$0xff] }
 0xc65   : > { %6661 = vmatpush3.msra.mxu1 %v10771_v24  ;;  %v5332_v24 = vmul.f32 %v10866_v15, %v10866_v15 }
 0xc66   : > { %v5286_v57 = vadd.f32 %v7620_v21, %v5285_v34  ;;  %v5355_v3 = vadd.f32 %v5354_v7, %v5324_v61  ;;  %6662 = vmatprep.subr.mxu1 %v7612_v23  ;;  %v11428_v7 = vld [vmem:[#allocation39_spill] sm:$0xff] }
 0xc67   : > { %6663 = vmatpush3.msra.mxu1 %v10764_v32  ;;  %v11416_v32 = vld [vmem:[#allocation36_spill] sm:$0xff] }
 0xc68   : > { %v5287_v53 = vadd.f32 %v7624_v20, %v5286_v57  ;;  %v5356_v27 = vadd.f32 %v5355_v3, %v5325_v40  ;;  %6664 = vmatprep.subr.mxu1 %v10860_v31  ;;  %v2916_v22 = vmul.f32 %v11416_v32, %v11415_v43 }
 0xc69   : > { %6665 = vmatpush3.msra.mxu1 %v10757_v62  ;;  %v5333_v62 = vmul.f32 %v10858_v6, %v10858_v6 }
 0xc6a   : > { %v5288_v58 = vadd.f32 %v7628_v52, %v5287_v53  ;;  %v5357_v33 = vadd.f32 %v5356_v27, %v5326_v13  ;;  %6666 = vmatprep.subr.mxu1 %v10852_v55  ;;  %v378_v55 = vmul.f32 0.00390625, %v370_v56 }
 0xc6b   : > { %6667 = vmatpush3.msra.mxu1 %v10751_v35  ;;  %v5334_v35 = vmul.f32 %v10850_v10, %v10850_v10 }
 0xc6c   : > { %v5289_v54 = vadd.f32 %v7626_v9, %v5288_v58  ;;  %v5358_v51 = vadd.f32 %v5357_v33, %v5327_v14  ;;  %6668 = vmatprep.subr.mxu1 %v10848_v18  ;;  %v2917_v45 = vsub.f32 %v2916_v22, %v378_v55  ;;  %v11429_v9 = vsub.f32 %v11428_v7, %v11426_v26 }
 0xc6d   : > { %6669 = vmatpush3.msra.mxu1 %v10745_v2  ;;  %v1574_v33 = vstv %s7078_s23 }
 0xc6e   : > { %v5290_v37 = vadd.f32 %v7622_v49, %v5289_v54  ;;  %v5359_v63 = vadd.f32 %v5358_v51, %v5328_v28  ;;  %6670 = vmatprep.subr.mxu1 %v10846_v59  ;;  %v11423_v59 = vsub.f32 %v11422_v38, %v11420_v8  ;;  %v11427_v49 = vsub.f32 %v11425_v39, %v11426_v26  ;;  %v7640_v26 = vld [vmem:[%s7707_s25 + $0x8] sm:$0xff] }
 0xc6f   : > { %6671 = vmatpush3.msra.mxu1 %v10743_v46  ;;  %v1021_v54 = vstv %s7076_s21  ;;  %v2844_v51 = vstv %s7082_s26 }
 0xc70   : > { %v5291_v60 = vadd.f32 %v7618_v16, %v5290_v37  ;;  %v5360_v41 = vadd.f32 %v5359_v63, %v5329_v47  ;;  %5451 = vmatmul.mubr.f32.vlgmr.msra.gmra.mxu1 %v11365_v48  ;;  %v10916_v16 = vld [vmem:[%s10969_s3] sm:$0xff]  ;;  %v1575_v28 = vadd.f32 %v1574_v33, %v1021_v54  ;;  %v2291_v63 = vstv %s7080_s24 }
 0xc71   : > { %v4831_v54 = vstv %s7088_s19 }
 0xc72   : > { %v5292_v11 = vadd.f32 %v7614_v5, %v5291_v60  ;;  %v5361_v30 = vadd.f32 %v5360_v41, %v5330_v42  ;;  %v2363_v5 = vmul.f32 %v11418_v19, %v11417_v44  ;;  %v1649_v60 = vmul.f32 1.5258789e-05, %v1575_v28 }
 0xc73   : > { %v2845_v42 = vadd.f32 %v2844_v51, %v2291_v63 }
 0xc74   : > { %v5293_v17 = vadd.f32 %v10866_v15, %v5292_v11  ;;  %v5362_v50 = vadd.f32 %v5361_v30, %v5331_v12  ;;  %v2364_v48 = vsub.f32 %v2363_v5, %v378_v55  ;;  %v4114_v11 = vstv %s7086_s28 }
 0xc75   : > { %v3561_v30 = vstv %s7084_s27 }
 0xc76   : > { %v5294_v31 = vadd.f32 %v10858_v6, %v5293_v17  ;;  %v5363_v23 = vadd.f32 %v5362_v50, %v5332_v24  ;;  %v11419_v6 = vld [vmem:[#allocation34_spill] sm:$0xff]  ;;  %v5927_v17 = vadd.f32 -1.5258789e-05, %v1649_v60  ;;  %v2919_v24 = vmul.f32 1.5258789e-05, %v2845_v42 }
 0xc77   : > { %v11421_v2 = vsub.f32 %v11419_v6, %v11420_v8  ;;  %v4115_v50 = vadd.f32 %v4114_v11, %v3561_v30  ;;  %v5763_v8 = vpop.permute.xlu0 %5762  ;;  %v7645_v30 = vld [vmem:[%s7707_s25 + $0x30] sm:$0xff] }
 0xc78   : > { %v5295_v15 = vadd.f32 %v10850_v10, %v5294_v31  ;;  %v5364_v25 = vadd.f32 %v5363_v23, %v5333_v62  ;;  %v11424_v10 = vmov 0.0   ;;  %v1651_v32 = vadd.f32 1e-05, %v5927_v17 }
 0xc79   : > { %5504 = vmatprep.subr.mxu1 %v11421_v2  ;;  %5538 = vmatprep.mubr.f32.mxu1 %v11424_v10  ;;  %v5992_v22 = vadd.f32 -1.5258789e-05, %v2919_v24  ;;  %v4189_v31 = vmul.f32 1.5258789e-05, %v4115_v50  ;;  %v7646_v50 = vld [vmem:[%s7707_s25 + $0x38] sm:$0xff] }
 0xc7a   : > { %v5296_v18 = vrot.slane %v5295_v15, 4  ;;  %v5365_v1 = vadd.f32 %v5364_v25, %v5334_v35  ;;  %5505 = vmatpush1.msra.mxu1 %v11423_v59 }
 0xc7b   : > { %5575 = vmatprep.subr.mxu1 %v2917_v45  ;;  %6123 = vmatmul.mubr.msk.f32.vlgmr.msra.gmra.mxu1 %vm446_vm1, %v10916_v16  ;;  %v2921_v23 = vadd.f32 1e-05, %v5992_v22  ;;  %v6057_v55 = vadd.f32 -1.5258789e-05, %v4189_v31 }
 0xc7c   : > { %v5297_v46 = vadd.f32 %v5296_v18, %v5295_v15  ;;  %v5366_v4 = vrot.slane %v5365_v1, 4  ;;  %5576 = vmatpush1.msra.mxu1 %v2364_v48  ;;  %5609 = vmatprep.mubr.f32.mxu1 %v11424_v10 }
 0xc7d   : > { %5646 = vmatprep.subr.mxu1 %v11427_v49  ;;  %v4191_v15 = vadd.f32 1e-05, %v6057_v55 }
 0xc7e   : > { %v5298_v21 = vrot.slane %v5297_v46, 2  ;;  %v5367_v61 = vadd.f32 %v5366_v4, %v5365_v1 }
 0xc7f   : > { %6124 = vmatmul.mubr.msk.f32.vlgmr.msra.gmra.mxu1 %vm446_vm1, %v10916_v16 }
 0xc80   : > { %v5299_v20 = vadd.f32 %v5298_v21, %v5297_v46  ;;  %5647 = vmatpush1.msra.mxu1 %v11429_v9  ;;  %5680 = vmatprep.mubr.f32.mxu1 %v11424_v10  ;;  %v5368_v40 = vrot.slane %v5367_v61, 2  ;;  %v7639_v46 = vld [vmem:[%s7707_s25] sm:$0xff]  ;;  %v7641_v9 = vld [vmem:[%s7707_s25 + $0x10] sm:$0xff] }
 0xc82   : > { %v5300_v34 = vrot.slane %v5299_v20, 1  ;;  %v5369_v3 = vadd.f32 %v5368_v40, %v5367_v61  ;;  %v7642_v40 = vld [vmem:[%s7707_s25 + $0x18] sm:$0xff] }
 0xc83   : > { %6125 = vmatmul.mubr.msk.f32.vlgmr.msra.gmra.mxu1 %vm446_vm1, %v10916_v16 }
 0xc84   : > { %v5301_v57 = vadd.f32 %v5300_v34, %v5299_v20  ;;  %5751 = vmatprep.mubr.f32.mxu1 %v11424_v10  ;;  %v5370_v52 = vrot.slane %v5369_v3, 1 }
 0xc86   : > { %7629 = vrcp.f32 %v5301_v57  ;;  %v5371_v53 = vadd.f32 %v5370_v52, %v5369_v3 }
 0xc87   : > { %7631 = vrsqrt.f32 %v1651_v32 }
 0xc88   : > { %7633 = vrsqrt.f32 %v2921_v23 }
 0xc89   : > { %7635 = vrsqrt.f32 %v4191_v15 }
 0xc93   : > { %v7630_v13 = vpop.eup %7629 }
 0xc94   : > { %v5372_v27 = vmul.f32 %v7630_v13, %v5371_v53  ;;  %v7632_v19 = vpop.eup %7631 }
 0xc95   : > { %v7634_v59 = vpop.eup %7633 }
 0xc96   : > { %v5373_v58 = vmul.f32 %v7630_v13, %v5372_v27  ;;  %v7636_v61 = vpop.eup %7635 }
 0xc98   : > { %v5374_v14 = vsel %vm1010_vm2, %v5373_v58, 0.0  ;;  %v7644_v58 = vld [vmem:[%s7707_s25 + $0x28] sm:$0xff] }
 0xc99   : > { %5375 = vadd.xlane.f32.xlu1 %v5374_v14 }
 0xd22   : > { %v5376_v37 = vpop.xlane.xlu1 %5375 }
 0xd23   : > { %v5377_v47 = vrot.slane %v5376_v37, 4 }
 0xd25   : > { %v5378_v41 = vadd.f32 %v5377_v47, %v5376_v37 }
 0xd27   : > { %v5379_v12 = vrot.slane %v5378_v41, 2 }
 0xd29   : > { %v5380_v56 = vadd.f32 %v5379_v12, %v5378_v41 }
 0xd2b   : > { %v5381_v43 = vrot.slane %v5380_v56, 1 }
 0xd2d   : > { %v5382_v62 = vadd.f32 %v5381_v43, %v5380_v56 }
 0xd2f   : > { %7089 = vpush %v5382_v62 }
 0xd30   : > { %v6672_v35 = vpop.f32.mrf.mxu1 }
 0xd32   : > { %v6673_v25 = vpop.f32.mrf.mxu1 }
 0xd33   : > { %v6674_v44 = vadd.f32 %v6673_v25, %v6672_v35 }
 0xd35   : > { %v5456_v18 = vmul.f32 %v7630_v13, %v6674_v44  ;;  %v7643_v13 = vld [vmem:[%s7707_s25 + $0x20] sm:$0xff] }
 0xd37   : > { %v5457_v38 = vsub.f32 %v5456_v18, %v10615_v0 }
 0xd39   : > { %5717 = vmatprep.subr.mxu1 %v5457_v38 }
 0xd3a   : > { %5718 = vmatpush1.msra.mxu1 %v4904_v29 }
 0xd3b   : > { %v5540_v5 = vpop.f32.mrf.mxu1  ;;  %6126 = vmatmul.mubr.msk.f32.vlgmr.msra.gmra.mxu1 %vm446_vm1, %v10916_v16 }
 0xd3c   : > { %v5758_v6 = vmul.f32 %v7632_v19, %v5540_v5 }
 0xd3d   : > { %v5542_v2 = vpop.f32.mrf.mxu1 }
 0xd3e   : > { %v5765_v45 = vadd.f32 %v5763_v8, %v5758_v6  ;;  %v5759_v1 = vmul.f32 %v7632_v19, %v5542_v2 }
 0xd3f   : > { %v5611_v10 = vpop.f32.mrf.mxu1 }
 0xd40   : > { %v5767_v48 = vadd.f32 %v7639_v46, %v5765_v45  ;;  %v5766_v21 = vadd.f32 %v5763_v8, %v5759_v1  ;;  %v5771_v4 = vmul.f32 %v7634_v59, %v5611_v10 }
 0xd41   : > { %v5613_v39 = vpop.f32.mrf.mxu1 }
 0xd42   : > { %5769 = vst [vmem:[%s10940_s6] sm:$0xff] %v5767_v48  ;;  %v5768_v49 = vadd.f32 %v7640_v26, %v5766_v21  ;;  %v5773_v20 = vadd.f32 %v5771_v4, %v5763_v8  ;;  %v5772_v34 = vmul.f32 %v7634_v59, %v5613_v39 }
 0xd43   : > { %v5682_v7 = vpop.f32.mrf.mxu1 }
 0xd44   : > { %5770 = vst [vmem:[%s10940_s6 + $0x8] sm:$0xff] %v5768_v49  ;;  %v5775_v0 = vadd.f32 %v7641_v9, %v5773_v20  ;;  %v5774_v36 = vadd.f32 %v5772_v34, %v5763_v8  ;;  %v5779_v29 = vmul.f32 %v7636_v61, %v5682_v7 }
 0xd45   : > { %v5684_v57 = vpop.f32.mrf.mxu1 }
 0xd46   : > { %5777 = vst [vmem:[%s10940_s6 + $0x10] sm:$0xff] %v5775_v0  ;;  %v5776_v3 = vadd.f32 %v7642_v40, %v5774_v36  ;;  %v5781_v52 = vadd.f32 %v5779_v29, %v5763_v8  ;;  %v5780_v53 = vmul.f32 %v7636_v61, %v5684_v57 }
 0xd48   : > { %5778 = vst [vmem:[%s10940_s6 + $0x18] sm:$0xff] %v5776_v3  ;;  %v5783_v27 = vadd.f32 %v7643_v13, %v5781_v52  ;;  %v5782_v16 = vadd.f32 %v5780_v53, %v5763_v8 }
 0xd4a   : > { %5785 = vst [vmem:[%s10940_s6 + $0x20] sm:$0xff] %v5783_v27  ;;  %v5784_v14 = vadd.f32 %v7644_v58, %v5782_v16 }
 0xd4c   : > { %5786 = vst [vmem:[%s10940_s6 + $0x28] sm:$0xff] %v5784_v14 }
 0xd60   : > { %s7090_s22 = spop %7089 }
 0xd61   : > { %v5384_v33 = vstv %s7090_s22 }
 0xd62   : > { %v5385_v28 = vadd.f32 %v5384_v33, %v4831_v54 }
 0xd64   : > { %v5459_v51 = vmul.f32 1.5258789e-05, %v5385_v28 }
 0xd66   : > { %v6122_v37 = vadd.f32 -1.5258789e-05, %v5459_v51 }
 0xd68   : > { %v5461_v47 = vadd.f32 1e-05, %v6122_v37 }
 0xd6a   : > { %7637 = vrsqrt.f32 %v5461_v47 }
 0xd77   : > { %v7638_v63 = vpop.eup %7637 }
 0xdfb   : > { %v5753_v60 = vpop.f32.mrf.mxu1 }
 0xdfc   : > { %v5787_v42 = vmul.f32 %v7638_v63, %v5753_v60 }
 0xdfd   : > { %v5755_v41 = vpop.f32.mrf.mxu1 }
 0xdfe   : > { %v5789_v11 = vadd.f32 %v5787_v42, %v5763_v8  ;;  %v5788_v12 = vmul.f32 %v7638_v63, %v5755_v41 }
 0xe00   : > { %v5791_v17 = vadd.f32 %v7645_v30, %v5789_v11  ;;  %v5790_v24 = vadd.f32 %v5788_v12, %v5763_v8 }
 0xe02   : > { %5793 = vst [vmem:[%s10940_s6 + $0x30] sm:$0xff] %v5791_v17  ;;  %v5792_v56 = vadd.f32 %v7646_v50, %v5790_v24 }
 0xe04   : > { %5794 = vst [vmem:[%s10940_s6 + $0x38] sm:$0xff] %v5792_v56 }
 0xe05 PF: > { %s15_s18 = sadd.s32 1, %s7653_s18  }
 0xe06   : > { %p12_p4 = scmp.ge.s32.totalorder %s15_s18, 4  }
 0xe08   :  { %14 = sbr.rel (!%p12_p4) target bundleno = 1 (0x1), region = 70 }

</bundles_post_ra>
